<compile_context>
chip_gen: v7x
topology: tpu7x:2x2x1
jax: 0.10.0
libtpu: 0.0.40
codegen_flags: <defaults>
</compile_context>

<pallas_src>
import jax
import jax.numpy as jnp
import numpy as np
from jax.experimental import pallas as pl
from jax.experimental.pallas import tpu as pltpu


def _vmem_limit_bytes():
    """Scoped-VMEM limit per generation: ~48 MiB on v7x (64 MiB physical per
    TensorCore), ~96 MiB on v5e/v6e (128 MiB physical)."""
    cap = 64 * 1024 * 1024
    try:
        cap = int(pltpu.get_tpu_info().vmem_capacity_bytes)
    except Exception:
        pass  # conservative fallback (v7x-sized)
    return int(min(96 * 1024 * 1024,
                   max(32 * 1024 * 1024, cap - 16 * 1024 * 1024)))


def _pick_tile_h(h, w, cin, cout, tile_budget_bytes, n_batch):
    """Largest divisor of `h` whose per-step working set fits the budget."""
    # Approximate f32 VMEM bytes per row of tile height:
    #   output block (1,TH,2,W,2*Cout), double-buffered:  32 * W * Cout
    #   input body block (TH,W,Cin), double-buffered:      8 * W * Cin
    #   z_slab scratch + blend temporaries:               ~40 * W * Cout
    per_row = 72 * w * cout + 8 * w * cin
    cap = max(1, min(h, tile_budget_bytes // per_row, 512))
    if n_batch == 1 and cap >= h and h > 1:
        cap = max(1, h // 2)  # keep >= 2 grid steps for megacore when N == 1
    th = int(cap)
    while h % th:
        th -= 1
    return th


def _make_kernel(TH, W, Cin, Cout, use_mxu):
    def kernel(xb_ref, xt_ref, xbot_ref, w_ref, shift_ref, o_ref, z_slab):
        def conv_bn(x3):
            """1x1 conv (BN scale folded into the weight) + per-channel shift."""
            r = x3.shape[0]
            if use_mxu:
                # bf16 operands hit the native MXU rate; accumulate in f32.
                z = jnp.dot(x3.reshape(r * W, Cin).astype(jnp.bfloat16),
                            w_ref[...].astype(jnp.bfloat16),
                            preferred_element_type=jnp.float32)
                return (z + shift_ref[...]).reshape(r, W, Cout)
            # Tiny Cin: skip the MXU, unrolled VPU broadcast-FMA over Cin.
            wt = w_ref[...]
            z = x3[:, :, 0:1] * wt[0:1, :][None]
            for c in range(1, Cin):
                z = z + x3[:, :, c:c + 1] * wt[c:c + 1, :][None]
            return z + shift_ref[...][None]

        # Conv (+BN) at INPUT resolution on the TH body rows and the two
        # edge-clamped halo rows, staged into a (TH+2, W, Cout) slab so the
        # x2 row blend is pure leading-axis slices (no H concatenates).
        z_slab[pl.ds(1, TH)] = conv_bn(xb_ref[...])
        z_slab[pl.ds(0, 1)] = conv_bn(xt_ref[...])
        z_slab[pl.ds(TH + 1, 1)] = conv_bn(xbot_ref[...])

        z_top = z_slab[pl.ds(0, TH)]
        z_mid = z_slab[pl.ds(1, TH)]
        z_bot = z_slab[pl.ds(2, TH)]
        r_even = 0.25 * z_top + 0.75 * z_mid       # output rows 2r
        r_odd = 0.75 * z_mid + 0.25 * z_bot        # output rows 2r+1

        # x2 column blend per row phase; pack the two column phases along the
        # channel (lane) axis and emit ONE full lane-dense store per row phase.
        for ri, v in ((0, r_even), (1, r_odd)):
            left = v[:, :W - 1]
            right = v[:, 1:]
            c_even = jnp.concatenate(
                [v[:, 0:1], 0.25 * left + 0.75 * right], axis=1)
            c_odd = jnp.concatenate(
                [0.75 * left + 0.25 * right, v[:, W - 1:W]], axis=1)
            packed = jnp.concatenate([c_even, c_odd], axis=-1)  # (TH, W, 2*Cout)
            o_ref[0, :, ri, :, :] = jnp.maximum(packed, 0.0).astype(o_ref.dtype)

    return kernel


def interp_conv_pallas(x_nchw, w_io, gamma, beta, run_mean, run_var,
                       eps=1e-5, tile_h=None, out_dtype=jnp.float32):
    """InterpConv forward: (N, Cin, H, W) -> (N, Cout, 2H, 2W)."""
    # NCHW -> NHWC (channels on the 128-lane axis).  In an NHWC model both
    # wrapper transposes disappear.
    x = jnp.transpose(x_nchw, (0, 2, 3, 1)).astype(jnp.float32)
    N, H, W, Cin = x.shape
    Cout = w_io.shape[1]
    assert W >= 2 and H >= 1

    vmem_limit = _vmem_limit_bytes()
    TH = tile_h if tile_h is not None else _pick_tile_h(
        H, W, Cin, Cout, vmem_limit // 2, N)
    assert H % TH == 0, (H, TH)
    nH = H // TH

    # Fold BN (inference stats) into the conv weight + a per-channel shift.
    scale = (gamma / jnp.sqrt(run_var + eps)).astype(jnp.float32)
    shift = (beta - run_mean * scale).astype(jnp.float32).reshape(1, Cout)
    w_folded = w_io.astype(jnp.float32) * scale[None, :]            # (Cin, Cout)

    # Flatten batch+rows so every row fetch is a single leading-axis block.
    x_flat = x.reshape(N * H, W, Cin)

    use_mxu = Cin > 16
    kernel = _make_kernel(TH, W, Cin, Cout, use_mxu)

    # Body rows: normal auto-pipelined (double-buffered, prefetched) block.
    body_spec = pl.BlockSpec((TH, W, Cin), lambda n, i: (n * nH + i, 0, 0))
    # Bilinear halo rows (1 above, 1 below the tile), edge-clamped inside the
    # image, also auto-pipelined -> no exposed manual DMA anywhere.
    top_spec = pl.BlockSpec(
        (1, W, Cin), lambda n, i: (n * H + jnp.maximum(i * TH - 1, 0), 0, 0))
    bot_spec = pl.BlockSpec(
        (1, W, Cin), lambda n, i: (n * H + jnp.minimum(i * TH + TH, H - 1), 0, 0))

    out_itemsize = np.dtype(out_dtype).itemsize
    conv_rows = N * (H + 2 * nH)                 # body + halo recompute
    flops = 2 * conv_rows * W * Cin * Cout + 22 * N * H * W * Cout
    bytes_accessed = (4 * conv_rows * W * Cin + 4 * (Cin * Cout + Cout)
                      + out_itemsize * 4 * N * H * W * Cout)

    phases = pl.pallas_call(
        kernel,
        out_shape=jax.ShapeDtypeStruct((N, H, 2, W, 2 * Cout), out_dtype),
        grid_spec=pltpu.PrefetchScalarGridSpec(
            num_scalar_prefetch=0,
            grid=(N, nH),
            in_specs=[
                body_spec,
                top_spec,
                bot_spec,
                pl.BlockSpec((Cin, Cout), lambda n, i: (0, 0)),
                pl.BlockSpec((1, Cout), lambda n, i: (0, 0)),
            ],
            out_specs=pl.BlockSpec((1, TH, 2, W, 2 * Cout),
                                   lambda n, i: (n, i, 0, 0, 0)),
            scratch_shapes=[pltpu.VMEM((TH + 2, W, Cout), jnp.float32)],
        ),
        compiler_params=pltpu.CompilerParams(
            dimension_semantics=("parallel", "parallel"),
            vmem_limit_bytes=vmem_limit,
        ),
        cost_estimate=pl.CostEstimate(
            flops=int(flops), transcendentals=0,
            bytes_accessed=int(bytes_accessed)),
    )(x_flat, x_flat, x_flat, w_folded, shift)

    # Free (layout-preserving) reshape:
    #   up[n, 2h+ri, 2j+ci, c] == phases[n, h, ri, j, ci*Cout + c]
    up = phases.reshape(N, 2 * H, 2 * W, Cout)
    return jnp.transpose(up, (0, 3, 1, 2))       # back to NCHW


def interp_conv_reference(x_nchw, w_io, gamma, beta, run_mean, run_var, eps=1e-5):
    """Pure-JAX reference (PyTorch bilinear x2, align_corners=False formula)."""
    x = jnp.transpose(x_nchw, (0, 2, 3, 1)).astype(jnp.float32)  # NHWC
    N, H, W, C = x.shape

    def idx(n_in):
        src = (jnp.arange(2 * n_in, dtype=jnp.float32) + 0.5) / 2.0 - 0.5
        src = jnp.maximum(src, 0.0)
        i0 = jnp.floor(src).astype(jnp.int32)
        lam = src - i0.astype(jnp.float32)
        i1 = jnp.minimum(i0 + 1, n_in - 1)
        return i0, i1, lam

    r0, r1, rl = idx(H)
    c0, c1, cl = idx(W)
    xr = (x[:, r0] * (1.0 - rl)[None, :, None, None]
          + x[:, r1] * rl[None, :, None, None])
    up = (xr[:, :, c0] * (1.0 - cl)[None, None, :, None]
          + xr[:, :, c1] * cl[None, None, :, None])
    y = jnp.einsum("nhwc,co->nhwo", up, w_io.astype(jnp.float32))
    scale = gamma / jnp.sqrt(run_var + eps)
    shift = beta - run_mean * scale
    y = jnp.maximum(y * scale + shift, 0.0)
    return jnp.transpose(y, (0, 3, 1, 2))


if __name__ == "__main__":
    key = jax.random.PRNGKey(0)
    k_x, k_w, k_g, k_b, k_m, k_v = jax.random.split(key, 6)

    N, Cin, H, W = 2, 4, 16, 16
    Cout = 8

    x = jax.random.normal(k_x, (N, Cin, H, W), dtype=jnp.float32)

    # Conv2d(kernel_size=1, bias=False because norm_cfg is set): (Cout, Cin, 1, 1)
    w_oihw = jax.random.normal(k_w, (Cout, Cin, 1, 1), dtype=jnp.float32) * 0.1
    w_io = jnp.transpose(w_oihw[:, :, 0, 0], (1, 0))  # (Cin, Cout)

    # BatchNorm2d params / running stats (inference semantics).
    gamma = jax.random.uniform(k_g, (Cout,), jnp.float32, 0.5, 1.5)
    beta = jax.random.normal(k_b, (Cout,), jnp.float32) * 0.1
    run_mean = jax.random.normal(k_m, (Cout,), jnp.float32) * 0.1
    run_var = jax.random.uniform(k_v, (Cout,), jnp.float32, 0.5, 1.5)

    out = interp_conv_pallas(x, w_io, gamma, beta, run_mean, run_var)
    out = jax.block_until_ready(out)

    ref = interp_conv_reference(x, w_io, gamma, beta, run_mean, run_var)
    ref = jax.block_until_ready(ref)

    assert out.shape == (N, Cout, 2 * H, 2 * W), out.shape
    assert jnp.allclose(out, ref, atol=1e-4, rtol=1e-4), float(
        jnp.max(jnp.abs(out - ref))
    )

    print("KERNEL_OK")
</pallas_src>

<mosaic_0001>
module attributes {stable_mosaic.version = 11 : i64} {
  func.func @kernel(%arg0: i32, %arg1: i32, %arg2: memref<16x16x4xf32, #tpu.memory_space<vmem>>, %arg3: memref<1x16x4xf32, #tpu.memory_space<vmem>>, %arg4: memref<1x16x4xf32, #tpu.memory_space<vmem>>, %arg5: memref<4x8xf32, #tpu.memory_space<vmem>>, %arg6: memref<1x8xf32, #tpu.memory_space<vmem>>, %arg7: memref<1x16x2x16x16xf32, #tpu.memory_space<vmem>>, %arg8: memref<18x16x8xf32, #tpu.memory_space<vmem>>) attributes {dimension_semantics = [#tpu.dimension_semantics<parallel>, #tpu.dimension_semantics<parallel>], iteration_bounds = array<i64: 2, 1>, scalar_prefetch = 0 : i64, scratch_operands = 1 : i64, tpu.core_type = #tpu.core_type<tc>, window_params = [{transform_indices = @transform_0, window_bounds = array<i64: 16, 16, 4>}, {transform_indices = @transform_1, window_bounds = array<i64: 1, 16, 4>}, {transform_indices = @transform_2, window_bounds = array<i64: 1, 16, 4>}, {pipeline_mode = #tpu.pipeline_mode<synchronous>, transform_indices = @transform_3, window_bounds = array<i64: 4, 8>}, {pipeline_mode = #tpu.pipeline_mode<synchronous>, transform_indices = @transform_4, window_bounds = array<i64: 1, 8>}, {transform_indices = @transform_5, window_bounds = array<i64: 1, 16, 2, 16, 16>}]} {
    %c0 = arith.constant 0 : index
    %c0_0 = arith.constant 0 : index
    %c0_1 = arith.constant 0 : index
    %0 = vector.load %arg2[%c0, %c0_0, %c0_1] : memref<16x16x4xf32, #tpu.memory_space<vmem>>, vector<16x16x4xf32>
    %c0_2 = arith.constant 0 : index
    %c0_3 = arith.constant 0 : index
    %1 = vector.load %arg5[%c0_2, %c0_3] : memref<4x8xf32, #tpu.memory_space<vmem>>, vector<4x8xf32>
    %2 = vector.extract_strided_slice %0 {offsets = [0, 0, 0], sizes = [16, 16, 1], strides = [1, 1, 1]} : vector<16x16x4xf32> to vector<16x16x1xf32>
    %3 = vector.extract_strided_slice %1 {offsets = [0, 0], sizes = [1, 8], strides = [1, 1]} : vector<4x8xf32> to vector<1x8xf32>
    %4 = vector.shape_cast %3 : vector<1x8xf32> to vector<1x1x8xf32>
    %5 = vector.broadcast %2 : vector<16x16x1xf32> to vector<16x16x8xf32>
    %6 = vector.broadcast %4 : vector<1x1x8xf32> to vector<16x16x8xf32>
    %7 = arith.mulf %5, %6 : vector<16x16x8xf32>
    %8 = vector.extract_strided_slice %0 {offsets = [0, 0, 1], sizes = [16, 16, 1], strides = [1, 1, 1]} : vector<16x16x4xf32> to vector<16x16x1xf32>
    %9 = vector.extract_strided_slice %1 {offsets = [1, 0], sizes = [1, 8], strides = [1, 1]} : vector<4x8xf32> to vector<1x8xf32>
    %10 = vector.shape_cast %9 : vector<1x8xf32> to vector<1x1x8xf32>
    %11 = vector.broadcast %8 : vector<16x16x1xf32> to vector<16x16x8xf32>
    %12 = vector.broadcast %10 : vector<1x1x8xf32> to vector<16x16x8xf32>
    %13 = arith.mulf %11, %12 : vector<16x16x8xf32>
    %14 = arith.addf %7, %13 : vector<16x16x8xf32>
    %15 = vector.extract_strided_slice %0 {offsets = [0, 0, 2], sizes = [16, 16, 1], strides = [1, 1, 1]} : vector<16x16x4xf32> to vector<16x16x1xf32>
    %16 = vector.extract_strided_slice %1 {offsets = [2, 0], sizes = [1, 8], strides = [1, 1]} : vector<4x8xf32> to vector<1x8xf32>
    %17 = vector.shape_cast %16 : vector<1x8xf32> to vector<1x1x8xf32>
    %18 = vector.broadcast %15 : vector<16x16x1xf32> to vector<16x16x8xf32>
    %19 = vector.broadcast %17 : vector<1x1x8xf32> to vector<16x16x8xf32>
    %20 = arith.mulf %18, %19 : vector<16x16x8xf32>
    %21 = arith.addf %14, %20 : vector<16x16x8xf32>
    %22 = vector.extract_strided_slice %0 {offsets = [0, 0, 3], sizes = [16, 16, 1], strides = [1, 1, 1]} : vector<16x16x4xf32> to vector<16x16x1xf32>
    %23 = vector.extract_strided_slice %1 {offsets = [3, 0], sizes = [1, 8], strides = [1, 1]} : vector<4x8xf32> to vector<1x8xf32>
    %24 = vector.shape_cast %23 : vector<1x8xf32> to vector<1x1x8xf32>
    %25 = vector.broadcast %22 : vector<16x16x1xf32> to vector<16x16x8xf32>
    %26 = vector.broadcast %24 : vector<1x1x8xf32> to vector<16x16x8xf32>
    %27 = arith.mulf %25, %26 : vector<16x16x8xf32>
    %28 = arith.addf %21, %27 : vector<16x16x8xf32>
    %c0_4 = arith.constant 0 : index
    %c0_5 = arith.constant 0 : index
    %29 = vector.load %arg6[%c0_4, %c0_5] : memref<1x8xf32, #tpu.memory_space<vmem>>, vector<1x8xf32>
    %30 = vector.shape_cast %29 : vector<1x8xf32> to vector<1x1x8xf32>
    %31 = vector.broadcast %30 : vector<1x1x8xf32> to vector<16x16x8xf32>
    %32 = arith.addf %28, %31 : vector<16x16x8xf32>
    %c1 = arith.constant 1 : index
    %c0_6 = arith.constant 0 : index
    %c0_7 = arith.constant 0 : index
    %33 = vector.load %arg8[%c1, %c0_6, %c0_7] : memref<18x16x8xf32, #tpu.memory_space<vmem>>, vector<16x16x8xf32>
    tpu.vector_store %arg8[%c1, %c0_6, %c0_7], %32 {strides = array<i32>} : memref<18x16x8xf32, #tpu.memory_space<vmem>>, vector<16x16x8xf32>,
    %c0_8 = arith.constant 0 : index
    %c0_9 = arith.constant 0 : index
    %c0_10 = arith.constant 0 : index
    %34 = vector.load %arg3[%c0_8, %c0_9, %c0_10] : memref<1x16x4xf32, #tpu.memory_space<vmem>>, vector<1x16x4xf32>
    %c0_11 = arith.constant 0 : index
    %c0_12 = arith.constant 0 : index
    %35 = vector.load %arg5[%c0_11, %c0_12] : memref<4x8xf32, #tpu.memory_space<vmem>>, vector<4x8xf32>
    %36 = vector.extract_strided_slice %34 {offsets = [0, 0, 0], sizes = [1, 16, 1], strides = [1, 1, 1]} : vector<1x16x4xf32> to vector<1x16x1xf32>
    %37 = vector.extract_strided_slice %35 {offsets = [0, 0], sizes = [1, 8], strides = [1, 1]} : vector<4x8xf32> to vector<1x8xf32>
    %38 = vector.shape_cast %37 : vector<1x8xf32> to vector<1x1x8xf32>
    %39 = vector.broadcast %36 : vector<1x16x1xf32> to vector<1x16x8xf32>
    %40 = vector.broadcast %38 : vector<1x1x8xf32> to vector<1x16x8xf32>
    %41 = arith.mulf %39, %40 : vector<1x16x8xf32>
    %42 = vector.extract_strided_slice %34 {offsets = [0, 0, 1], sizes = [1, 16, 1], strides = [1, 1, 1]} : vector<1x16x4xf32> to vector<1x16x1xf32>
    %43 = vector.extract_strided_slice %35 {offsets = [1, 0], sizes = [1, 8], strides = [1, 1]} : vector<4x8xf32> to vector<1x8xf32>
    %44 = vector.shape_cast %43 : vector<1x8xf32> to vector<1x1x8xf32>
    %45 = vector.broadcast %42 : vector<1x16x1xf32> to vector<1x16x8xf32>
    %46 = vector.broadcast %44 : vector<1x1x8xf32> to vector<1x16x8xf32>
    %47 = arith.mulf %45, %46 : vector<1x16x8xf32>
    %48 = arith.addf %41, %47 : vector<1x16x8xf32>
    %49 = vector.extract_strided_slice %34 {offsets = [0, 0, 2], sizes = [1, 16, 1], strides = [1, 1, 1]} : vector<1x16x4xf32> to vector<1x16x1xf32>
    %50 = vector.extract_strided_slice %35 {offsets = [2, 0], sizes = [1, 8], strides = [1, 1]} : vector<4x8xf32> to vector<1x8xf32>
    %51 = vector.shape_cast %50 : vector<1x8xf32> to vector<1x1x8xf32>
    %52 = vector.broadcast %49 : vector<1x16x1xf32> to vector<1x16x8xf32>
    %53 = vector.broadcast %51 : vector<1x1x8xf32> to vector<1x16x8xf32>
    %54 = arith.mulf %52, %53 : vector<1x16x8xf32>
    %55 = arith.addf %48, %54 : vector<1x16x8xf32>
    %56 = vector.extract_strided_slice %34 {offsets = [0, 0, 3], sizes = [1, 16, 1], strides = [1, 1, 1]} : vector<1x16x4xf32> to vector<1x16x1xf32>
    %57 = vector.extract_strided_slice %35 {offsets = [3, 0], sizes = [1, 8], strides = [1, 1]} : vector<4x8xf32> to vector<1x8xf32>
    %58 = vector.shape_cast %57 : vector<1x8xf32> to vector<1x1x8xf32>
    %59 = vector.broadcast %56 : vector<1x16x1xf32> to vector<1x16x8xf32>
    %60 = vector.broadcast %58 : vector<1x1x8xf32> to vector<1x16x8xf32>
    %61 = arith.mulf %59, %60 : vector<1x16x8xf32>
    %62 = arith.addf %55, %61 : vector<1x16x8xf32>
    %c0_13 = arith.constant 0 : index
    %c0_14 = arith.constant 0 : index
    %63 = vector.load %arg6[%c0_13, %c0_14] : memref<1x8xf32, #tpu.memory_space<vmem>>, vector<1x8xf32>
    %64 = vector.shape_cast %63 : vector<1x8xf32> to vector<1x1x8xf32>
    %65 = vector.broadcast %64 : vector<1x1x8xf32> to vector<1x16x8xf32>
    %66 = arith.addf %62, %65 : vector<1x16x8xf32>
    %c0_15 = arith.constant 0 : index
    %c0_16 = arith.constant 0 : index
    %c0_17 = arith.constant 0 : index
    %67 = vector.load %arg8[%c0_15, %c0_16, %c0_17] : memref<18x16x8xf32, #tpu.memory_space<vmem>>, vector<1x16x8xf32>
    tpu.vector_store %arg8[%c0_15, %c0_16, %c0_17], %66 {strides = array<i32>} : memref<18x16x8xf32, #tpu.memory_space<vmem>>, vector<1x16x8xf32>,
    %c0_18 = arith.constant 0 : index
    %c0_19 = arith.constant 0 : index
    %c0_20 = arith.constant 0 : index
    %68 = vector.load %arg4[%c0_18, %c0_19, %c0_20] : memref<1x16x4xf32, #tpu.memory_space<vmem>>, vector<1x16x4xf32>
    %c0_21 = arith.constant 0 : index
    %c0_22 = arith.constant 0 : index
    %69 = vector.load %arg5[%c0_21, %c0_22] : memref<4x8xf32, #tpu.memory_space<vmem>>, vector<4x8xf32>
    %70 = vector.extract_strided_slice %68 {offsets = [0, 0, 0], sizes = [1, 16, 1], strides = [1, 1, 1]} : vector<1x16x4xf32> to vector<1x16x1xf32>
    %71 = vector.extract_strided_slice %69 {offsets = [0, 0], sizes = [1, 8], strides = [1, 1]} : vector<4x8xf32> to vector<1x8xf32>
    %72 = vector.shape_cast %71 : vector<1x8xf32> to vector<1x1x8xf32>
    %73 = vector.broadcast %70 : vector<1x16x1xf32> to vector<1x16x8xf32>
    %74 = vector.broadcast %72 : vector<1x1x8xf32> to vector<1x16x8xf32>
    %75 = arith.mulf %73, %74 : vector<1x16x8xf32>
    %76 = vector.extract_strided_slice %68 {offsets = [0, 0, 1], sizes = [1, 16, 1], strides = [1, 1, 1]} : vector<1x16x4xf32> to vector<1x16x1xf32>
    %77 = vector.extract_strided_slice %69 {offsets = [1, 0], sizes = [1, 8], strides = [1, 1]} : vector<4x8xf32> to vector<1x8xf32>
    %78 = vector.shape_cast %77 : vector<1x8xf32> to vector<1x1x8xf32>
    %79 = vector.broadcast %76 : vector<1x16x1xf32> to vector<1x16x8xf32>
    %80 = vector.broadcast %78 : vector<1x1x8xf32> to vector<1x16x8xf32>
    %81 = arith.mulf %79, %80 : vector<1x16x8xf32>
    %82 = arith.addf %75, %81 : vector<1x16x8xf32>
    %83 = vector.extract_strided_slice %68 {offsets = [0, 0, 2], sizes = [1, 16, 1], strides = [1, 1, 1]} : vector<1x16x4xf32> to vector<1x16x1xf32>
    %84 = vector.extract_strided_slice %69 {offsets = [2, 0], sizes = [1, 8], strides = [1, 1]} : vector<4x8xf32> to vector<1x8xf32>
    %85 = vector.shape_cast %84 : vector<1x8xf32> to vector<1x1x8xf32>
    %86 = vector.broadcast %83 : vector<1x16x1xf32> to vector<1x16x8xf32>
    %87 = vector.broadcast %85 : vector<1x1x8xf32> to vector<1x16x8xf32>
    %88 = arith.mulf %86, %87 : vector<1x16x8xf32>
    %89 = arith.addf %82, %88 : vector<1x16x8xf32>
    %90 = vector.extract_strided_slice %68 {offsets = [0, 0, 3], sizes = [1, 16, 1], strides = [1, 1, 1]} : vector<1x16x4xf32> to vector<1x16x1xf32>
    %91 = vector.extract_strided_slice %69 {offsets = [3, 0], sizes = [1, 8], strides = [1, 1]} : vector<4x8xf32> to vector<1x8xf32>
    %92 = vector.shape_cast %91 : vector<1x8xf32> to vector<1x1x8xf32>
    %93 = vector.broadcast %90 : vector<1x16x1xf32> to vector<1x16x8xf32>
    %94 = vector.broadcast %92 : vector<1x1x8xf32> to vector<1x16x8xf32>
    %95 = arith.mulf %93, %94 : vector<1x16x8xf32>
    %96 = arith.addf %89, %95 : vector<1x16x8xf32>
    %c0_23 = arith.constant 0 : index
    %c0_24 = arith.constant 0 : index
    %97 = vector.load %arg6[%c0_23, %c0_24] : memref<1x8xf32, #tpu.memory_space<vmem>>, vector<1x8xf32>
    %98 = vector.shape_cast %97 : vector<1x8xf32> to vector<1x1x8xf32>
    %99 = vector.broadcast %98 : vector<1x1x8xf32> to vector<1x16x8xf32>
    %100 = arith.addf %96, %99 : vector<1x16x8xf32>
    %c17 = arith.constant 17 : index
    %c0_25 = arith.constant 0 : index
    %c0_26 = arith.constant 0 : index
    %101 = vector.load %arg8[%c17, %c0_25, %c0_26] : memref<18x16x8xf32, #tpu.memory_space<vmem>>, vector<1x16x8xf32>
    tpu.vector_store %arg8[%c17, %c0_25, %c0_26], %100 {strides = array<i32>} : memref<18x16x8xf32, #tpu.memory_space<vmem>>, vector<1x16x8xf32>,
    %c0_27 = arith.constant 0 : index
    %c0_28 = arith.constant 0 : index
    %c0_29 = arith.constant 0 : index
    %102 = vector.load %arg8[%c0_27, %c0_28, %c0_29] : memref<18x16x8xf32, #tpu.memory_space<vmem>>, vector<16x16x8xf32>
    %c1_30 = arith.constant 1 : index
    %c0_31 = arith.constant 0 : index
    %c0_32 = arith.constant 0 : index
    %103 = vector.load %arg8[%c1_30, %c0_31, %c0_32] : memref<18x16x8xf32, #tpu.memory_space<vmem>>, vector<16x16x8xf32>
    %c2 = arith.constant 2 : index
    %c0_33 = arith.constant 0 : index
    %c0_34 = arith.constant 0 : index
    %104 = vector.load %arg8[%c2, %c0_33, %c0_34] : memref<18x16x8xf32, #tpu.memory_space<vmem>>, vector<16x16x8xf32>
    %cst = arith.constant 2.500000e-01 : f32
    %105 = vector.broadcast %cst : f32 to vector<16x16x8xf32>
    %106 = arith.mulf %105, %102 : vector<16x16x8xf32>
    %cst_35 = arith.constant 7.500000e-01 : f32
    %107 = vector.broadcast %cst_35 : f32 to vector<16x16x8xf32>
    %108 = arith.mulf %107, %103 : vector<16x16x8xf32>
    %109 = arith.addf %106, %108 : vector<16x16x8xf32>
    %cst_36 = arith.constant 7.500000e-01 : f32
    %110 = vector.broadcast %cst_36 : f32 to vector<16x16x8xf32>
    %111 = arith.mulf %110, %103 : vector<16x16x8xf32>
    %cst_37 = arith.constant 2.500000e-01 : f32
    %112 = vector.broadcast %cst_37 : f32 to vector<16x16x8xf32>
    %113 = arith.mulf %112, %104 : vector<16x16x8xf32>
    %114 = arith.addf %111, %113 : vector<16x16x8xf32>
    %115 = vector.extract_strided_slice %109 {offsets = [0, 0, 0], sizes = [16, 15, 8], strides = [1, 1, 1]} : vector<16x16x8xf32> to vector<16x15x8xf32>
    %116 = vector.extract_strided_slice %109 {offsets = [0, 1, 0], sizes = [16, 15, 8], strides = [1, 1, 1]} : vector<16x16x8xf32> to vector<16x15x8xf32>
    %117 = vector.extract_strided_slice %109 {offsets = [0, 0, 0], sizes = [16, 1, 8], strides = [1, 1, 1]} : vector<16x16x8xf32> to vector<16x1x8xf32>
    %cst_38 = arith.constant 2.500000e-01 : f32
    %118 = vector.broadcast %cst_38 : f32 to vector<16x15x8xf32>
    %119 = arith.mulf %118, %115 : vector<16x15x8xf32>
    %cst_39 = arith.constant 7.500000e-01 : f32
    %120 = vector.broadcast %cst_39 : f32 to vector<16x15x8xf32>
    %121 = arith.mulf %120, %116 : vector<16x15x8xf32>
    %122 = arith.addf %119, %121 : vector<16x15x8xf32>
    %123 = tpu.concatenate %117, %122 in 1 : vector<16x1x8xf32>, vector<16x15x8xf32> -> vector<16x16x8xf32>
    %cst_40 = arith.constant 7.500000e-01 : f32
    %124 = vector.broadcast %cst_40 : f32 to vector<16x15x8xf32>
    %125 = arith.mulf %124, %115 : vector<16x15x8xf32>
    %cst_41 = arith.constant 2.500000e-01 : f32
    %126 = vector.broadcast %cst_41 : f32 to vector<16x15x8xf32>
    %127 = arith.mulf %126, %116 : vector<16x15x8xf32>
    %128 = arith.addf %125, %127 : vector<16x15x8xf32>
    %129 = vector.extract_strided_slice %109 {offsets = [0, 15, 0], sizes = [16, 1, 8], strides = [1, 1, 1]} : vector<16x16x8xf32> to vector<16x1x8xf32>
    %130 = tpu.concatenate %128, %129 in 1 : vector<16x15x8xf32>, vector<16x1x8xf32> -> vector<16x16x8xf32>
    %131 = tpu.concatenate %123, %130 in 2 : vector<16x16x8xf32>, vector<16x16x8xf32> -> vector<16x16x16xf32>
    %cst_42 = arith.constant 0.000000e+00 : f32
    %132 = vector.broadcast %cst_42 : f32 to vector<16x16x16xf32>
    %133 = arith.maximumf %131, %132 : vector<16x16x16xf32>
    %c0_43 = arith.constant 0 : index
    %c0_44 = arith.constant 0 : index
    %c0_45 = arith.constant 0 : index
    %c0_46 = arith.constant 0 : index
    %c0_47 = arith.constant 0 : index
    %134 = vector.load %arg7[%c0_43, %c0_44, %c0_45, %c0_46, %c0_47] : memref<1x16x2x16x16xf32, #tpu.memory_space<vmem>>, vector<1x16x1x16x16xf32>
    %135 = vector.shape_cast %134 : vector<1x16x1x16x16xf32> to vector<16x16x16xf32>
    %136 = vector.shape_cast %133 : vector<16x16x16xf32> to vector<1x16x1x16x16xf32>
    tpu.vector_store %arg7[%c0_43, %c0_44, %c0_45, %c0_46, %c0_47], %136 {strides = array<i32>} : memref<1x16x2x16x16xf32, #tpu.memory_space<vmem>>, vector<1x16x1x16x16xf32>,
    %137 = vector.extract_strided_slice %114 {offsets = [0, 0, 0], sizes = [16, 15, 8], strides = [1, 1, 1]} : vector<16x16x8xf32> to vector<16x15x8xf32>
    %138 = vector.extract_strided_slice %114 {offsets = [0, 1, 0], sizes = [16, 15, 8], strides = [1, 1, 1]} : vector<16x16x8xf32> to vector<16x15x8xf32>
    %139 = vector.extract_strided_slice %114 {offsets = [0, 0, 0], sizes = [16, 1, 8], strides = [1, 1, 1]} : vector<16x16x8xf32> to vector<16x1x8xf32>
    %cst_48 = arith.constant 2.500000e-01 : f32
    %140 = vector.broadcast %cst_48 : f32 to vector<16x15x8xf32>
    %141 = arith.mulf %140, %137 : vector<16x15x8xf32>
    %cst_49 = arith.constant 7.500000e-01 : f32
    %142 = vector.broadcast %cst_49 : f32 to vector<16x15x8xf32>
    %143 = arith.mulf %142, %138 : vector<16x15x8xf32>
    %144 = arith.addf %141, %143 : vector<16x15x8xf32>
    %145 = tpu.concatenate %139, %144 in 1 : vector<16x1x8xf32>, vector<16x15x8xf32> -> vector<16x16x8xf32>
    %cst_50 = arith.constant 7.500000e-01 : f32
    %146 = vector.broadcast %cst_50 : f32 to vector<16x15x8xf32>
    %147 = arith.mulf %146, %137 : vector<16x15x8xf32>
    %cst_51 = arith.constant 2.500000e-01 : f32
    %148 = vector.broadcast %cst_51 : f32 to vector<16x15x8xf32>
    %149 = arith.mulf %148, %138 : vector<16x15x8xf32>
    %150 = arith.addf %147, %149 : vector<16x15x8xf32>
    %151 = vector.extract_strided_slice %114 {offsets = [0, 15, 0], sizes = [16, 1, 8], strides = [1, 1, 1]} : vector<16x16x8xf32> to vector<16x1x8xf32>
    %152 = tpu.concatenate %150, %151 in 1 : vector<16x15x8xf32>, vector<16x1x8xf32> -> vector<16x16x8xf32>
    %153 = tpu.concatenate %145, %152 in 2 : vector<16x16x8xf32>, vector<16x16x8xf32> -> vector<16x16x16xf32>
    %cst_52 = arith.constant 0.000000e+00 : f32
    %154 = vector.broadcast %cst_52 : f32 to vector<16x16x16xf32>
    %155 = arith.maximumf %153, %154 : vector<16x16x16xf32>
    %c0_53 = arith.constant 0 : index
    %c0_54 = arith.constant 0 : index
    %c1_55 = arith.constant 1 : index
    %c0_56 = arith.constant 0 : index
    %c0_57 = arith.constant 0 : index
    %156 = vector.load %arg7[%c0_53, %c0_54, %c1_55, %c0_56, %c0_57] : memref<1x16x2x16x16xf32, #tpu.memory_space<vmem>>, vector<1x16x1x16x16xf32>
    %157 = vector.shape_cast %156 : vector<1x16x1x16x16xf32> to vector<16x16x16xf32>
    %158 = vector.shape_cast %155 : vector<16x16x16xf32> to vector<1x16x1x16x16xf32>
    tpu.vector_store %arg7[%c0_53, %c0_54, %c1_55, %c0_56, %c0_57], %158 {strides = array<i32>} : memref<1x16x2x16x16xf32, #tpu.memory_space<vmem>>, vector<1x16x1x16x16xf32>,
    return
  }
  func.func @transform_0(%arg0: i32, %arg1: i32) -> (i32, i32, i32) {
    %c1_i32 = arith.constant 1 : i32
    %0 = arith.muli %arg0, %c1_i32 : i32
    %1 = arith.addi %0, %arg1 : i32
    %c0_i32 = arith.constant 0 : i32
    %c0_i32_0 = arith.constant 0 : i32
    %c0_i32_1 = arith.constant 0 : i32
    return %1, %c0_i32, %c0_i32_0 : i32, i32, i32
  }
  func.func @transform_1(%arg0: i32, %arg1: i32) -> (i32, i32, i32) {
    %c16_i32 = arith.constant 16 : i32
    %0 = arith.muli %arg0, %c16_i32 : i32
    %c16_i32_0 = arith.constant 16 : i32
    %1 = arith.muli %arg1, %c16_i32_0 : i32
    %c1_i32 = arith.constant 1 : i32
    %2 = arith.subi %1, %c1_i32 : i32
    %c0_i32 = arith.constant 0 : i32
    %3 = arith.maxsi %2, %c0_i32 : i32
    %4 = arith.addi %0, %3 : i32
    %c0_i32_1 = arith.constant 0 : i32
    %c0_i32_2 = arith.constant 0 : i32
    %c0_i32_3 = arith.constant 0 : i32
    return %4, %c0_i32_1, %c0_i32_2 : i32, i32, i32
  }
  func.func @transform_2(%arg0: i32, %arg1: i32) -> (i32, i32, i32) {
    %c16_i32 = arith.constant 16 : i32
    %0 = arith.muli %arg0, %c16_i32 : i32
    %c16_i32_0 = arith.constant 16 : i32
    %1 = arith.muli %arg1, %c16_i32_0 : i32
    %c16_i32_1 = arith.constant 16 : i32
    %2 = arith.addi %1, %c16_i32_1 : i32
    %c15_i32 = arith.constant 15 : i32
    %3 = arith.minsi %2, %c15_i32 : i32
    %4 = arith.addi %0, %3 : i32
    %c0_i32 = arith.constant 0 : i32
    %c0_i32_2 = arith.constant 0 : i32
    %c0_i32_3 = arith.constant 0 : i32
    return %4, %c0_i32, %c0_i32_2 : i32, i32, i32
  }
  func.func @transform_3(%arg0: i32, %arg1: i32) -> (i32, i32) {
    %c0_i32 = arith.constant 0 : i32
    %c0_i32_0 = arith.constant 0 : i32
    %c0_i32_1 = arith.constant 0 : i32
    return %c0_i32, %c0_i32_0 : i32, i32
  }
  func.func @transform_4(%arg0: i32, %arg1: i32) -> (i32, i32) {
    %c0_i32 = arith.constant 0 : i32
    %c0_i32_0 = arith.constant 0 : i32
    %c0_i32_1 = arith.constant 0 : i32
    return %c0_i32, %c0_i32_0 : i32, i32
  }
  func.func @transform_5(%arg0: i32, %arg1: i32) -> (i32, i32, i32, i32, i32) {
    %c0_i32 = arith.constant 0 : i32
    %c0_i32_0 = arith.constant 0 : i32
    %c0_i32_1 = arith.constant 0 : i32
    %c0_i32_2 = arith.constant 0 : i32
    return %arg0, %arg1, %c0_i32, %c0_i32_0, %c0_i32_1 : i32, i32, i32, i32, i32
  }
}

</mosaic_0001>

<bundles_post_ra>
// kernel: tpu_custom_call.1
= control target key start
LH: loop header
LB: loop body
LE: loop exit
PB: predicated region body
PF: predicated region fallthrough
CT: control target
= control target key end

     0   :  { %10 = vsyncpa [#allocation4], 0  ;;  %s5976_s0 = inlined_call_operand.vmem [shape: f32[32,16,4], index: 0, kind: input, shape index: {}]   ;;  %s5977_s1 = inlined_call_operand.vmem [shape: f32[32,16,4], index: 1, kind: input, shape index: {}]   ;;  %s5978_s2 = inlined_call_operand.vmem [shape: f32[32,16,4], index: 2, kind: input, shape index: {}]   ;;  %s5979_s3 = inlined_call_operand.vmem [shape: f32[4,8], index: 3, kind: input, shape index: {}]   ;;  %s5980_s4 = inlined_call_operand.vmem [shape: f32[1,8], index: 4, kind: input, shape index: {}]   ;;  %s5981_s5 = inlined_call_operand.hbm [shape: f32[2,16,2,16,16], index: 5, kind: output, shape index: {}]  }
   0x1   :  { %12 = vsyncpa [#allocation4 + $0x1], 0  ;;  %s3495_s18 = smov 0   ;;  %s3497_s19 = smov 0  }
   0x2   :  { %s3499_s20 = smov 0   ;;  %s3501_s21 = smov 0  }
   0x3   :  { %s3503_s22 = smov 0   ;;  %s3505_s23 = smov 0  }
   0x4 LB: > { %s3236_s24 = sadd.s32 4294967295, %s3456_s23   ;;  %s3237_s25 = sadd.s32 4294967294, %s3456_s23   ;;  %s3456_s23 = sphi %s3505_s23, %s18_s23   ;;  %s3452_s22 = sphi %s3503_s22, %s6535_s22   ;;  %s3448_s21 = sphi %s3501_s21, %s6534_s21   ;;  %s3444_s20 = sphi %s3499_s20, %s6533_s20   ;;  %s3440_s19 = sphi %s3497_s19, %s6532_s19   ;;  %s3436_s18 = sphi %s3495_s18, %s6531_s18  }
   0x5   : > { %s30_s26 = sadd.s32 1, %s3452_s22  ;;  %s185_s27 = sadd.s32 1, %s3444_s20 }
   0x6   : > { %p32_p0 = scmp.ge.s32.totalorder %s30_s26, 2  ;;  %p195_p1 = scmp.ne.s32.totalorder %s3444_s20, %s3440_s19 }
   0x7   : > { %p196_p2 = scmp.eq.s32.totalorder %s3236_s24, 1  ;;  %p201_p3 = scmp.ne.s32.totalorder %s3440_s19, %s3436_s18 }
   0x8   : > { %s6537_s26 = smov (%p32_p0, %s30_s26), 0  ;;  %p202_p5 = scmp.eq.s32.totalorder %s3237_s25, 1 }
   0x9   : > { %p3535_p4 = por %p196_p2, %p195_p1  ;;  %s180_s29 = ssub.s32 %s3452_s22, %s6537_s26 }
   0xa   : > { %p3244_p6 = scmp.ge.s32.totalorder %s3456_s23, 1  ;;  %p183_p7 = scmp.eq.s32.totalorder %s180_s29, 0 }
   0xb   : > { %p3542_p8 = por %p202_p5, %p201_p3  ;;  %p278_p9 = scmp.lt.s32.totalorder %s3456_s23, 3 }
   0xc   : > { %s3548_s6 = scalar_select %p183_p7, %s3444_s20, %s185_s27  }
   0xd   : > { %p279_p10 = pnand %p3244_p6, %p278_p9 }
   0xf   : > { %282 = sbr.rel (%p279_p10) target bundleno = 723 (0x2d3), region = 40 }
  0x16   : > { %s3551_s7 = sshll.u32 %s3448_s21, 4  ;;  %v5988_v0 = vmov 0   ;;  %v5986_v34 = vmov 1   ;;  %v5982_v35 = vmov 3   ;;  %v5984_v38 = vmov 2   ;;  %s3462_s14 = smov 8  }
  0x17   : > { %3361 = vset.pattern.permute.xlu1 %v5988_v0  ;;  %3360 = vset.pattern.permute.xlu0 %v5988_v0  ;;  %p332_p11 = scmp.lt.s32.totalorder %s3551_s7, 31  ;;  %s361_s16 = sadd.s32 15, %s3551_s7  ;;  %vm1231_vm0 = vcmask 64512   ;;  %vm1774_vm1 = vcmask 1046528   ;;  %vm1919_vm2 = vcmask 1040384   ;;  %vm2368_vm3 = vcmask 130048  }
  0x18   : > { %p362_p12 = scmp.lt.s32.totalorder %s361_s16, 31  ;;  %s3463_s11 = smov [#allocation3]  }
  0x19   : > { %s3557_s8 = scalar_select %p332_p11, %s3551_s7, 31 }
  0x1a   : > { %s6539_s16 = smov (!%p362_p12, %s361_s16), 31 }
  0x1b   : > { %s3295_s9 = sshll.u32 %s3557_s8, 4  ;;  %s3297_s17 = sshll.u32 %s6539_s16, 4 }
  0x1c   : > { %s3565_s12 = scalar_lea.vmem %s5976_s0, %s3295_s9  ;;  %s3698_s15 = scalar_lea.vmem %s5977_s1, %s3295_s9 }
  0x1d   : > { %v3568_v1 = vld [vmem:[%s3565_s12 + $0x10] sm:$0xff]  ;;  %v3571_v2 = vld [vmem:[%s3565_s12] sm:$0xff]  ;;  %v3576_v3 = vld [vmem:[%s3565_s12 + $0x18] sm:$0xff]  ;;  %s3851_s27 = scalar_lea.vmem %s5978_s2, %s3297_s17  ;;  %s327_s17 = sand.u32 1, %s3440_s19  }
  0x1e   : > { %419 = vperm.xlu1 %3361, %v3568_v1   ;;  %409 = vperm.xlu0 %3360, %v3571_v2   ;;  %v3579_v4 = vld [vmem:[%s3565_s12 + $0x8] sm:$0xff]  ;;  %v3587_v6 = vld [vmem:[%s3565_s12 + $0x20] sm:$0xff]  ;;  %v3592_v7 = vld [vmem:[%s3565_s12 + $0x38] sm:$0xff]  ;;  %s3245_s24 = sshll.u32 %s327_s17, 9 }
  0x1f   : > { %v3584_v5 = vld [vmem:[%s3565_s12 + $0x28] sm:$0xff]  ;;  %v3595_v8 = vld [vmem:[%s3565_s12 + $0x30] sm:$0xff]  ;;  %v3603_v10 = vld [vmem:[%s3565_s12 + $0x40] sm:$0xff]  ;;  %s5492_s25 = scalar_lea.vmem [#allocation3], %s3245_s24 }
  0x20   : > { %v3600_v9 = vld [vmem:[%s3565_s12 + $0x48] sm:$0xff]  ;;  %v3608_v11 = vld [vmem:[%s3565_s12 + $0x58] sm:$0xff]  ;;  %v3611_v12 = vld [vmem:[%s3565_s12 + $0x50] sm:$0xff]  ;;  %s3139_s29 = sshll.u32 %s5492_s25, 4  ;;  %s5923_s29 = int_to_ptr.vmem [resolvable:$true] %s3139_s29 }
  0x21   : > { %v3616_v13 = vld [vmem:[%s3565_s12 + $0x68] sm:$0xff]  ;;  %v3619_v14 = vld [vmem:[%s3565_s12 + $0x60] sm:$0xff]  ;;  %v3624_v15 = vld [vmem:[%s3565_s12 + $0x78] sm:$0xff]  ;;  %s3378_s10 = scalar_lea.vmem %s5923_s29, 8192 }
  0x22   : > { %424 = vperm.xlu1 %3361, %v3576_v3   ;;  %414 = vperm.xlu0 %3360, %v3579_v4   ;;  %v3627_v16 = vld [vmem:[%s3565_s12 + $0x70] sm:$0xff]  ;;  %v3632_v17 = vld [vmem:[%s3565_s12 + $0x88] sm:$0xff]  ;;  %v3635_v18 = vld [vmem:[%s3565_s12 + $0x80] sm:$0xff]  ;;  %p3379_p13 = scmp.ne.s32.totalorder %s5923_s29, %s3378_s10 }
  0x23   : > { %v3640_v19 = vld [vmem:[%s3565_s12 + $0x98] sm:$0xff]  ;;  %v3643_v20 = vld [vmem:[%s3565_s12 + $0x90] sm:$0xff]  ;;  %v3648_v21 = vld [vmem:[%s3565_s12 + $0xa8] sm:$0xff] }
  0x24   : > { %v3651_v22 = vld [vmem:[%s3565_s12 + $0xa0] sm:$0xff]  ;;  %v3656_v23 = vld [vmem:[%s3565_s12 + $0xb8] sm:$0xff]  ;;  %v3659_v24 = vld [vmem:[%s3565_s12 + $0xb0] sm:$0xff]  ;;  %p3380_p0 = pnand %p3379_p13, %p3535_p4 }
  0x25   : > { %v3664_v25 = vld [vmem:[%s3565_s12 + $0xc8] sm:$0xff]  ;;  %v3667_v26 = vld [vmem:[%s3565_s12 + $0xc0] sm:$0xff]  ;;  %v3672_v27 = vld [vmem:[%s3565_s12 + $0xd8] sm:$0xff] }
  0x26   : > { %434 = vperm.xlu1 %3361, %v3584_v5   ;;  %429 = vperm.xlu0 %3360, %v3587_v6   ;;  %v3675_v28 = vld [vmem:[%s3565_s12 + $0xd0] sm:$0xff]  ;;  %v3680_v29 = vld [vmem:[%s3565_s12 + $0xe8] sm:$0xff]  ;;  %v3683_v30 = vld [vmem:[%s3565_s12 + $0xe0] sm:$0xff]  ;;  %p3381_p1 = pneg %p3380_p0 }
  0x27   : > { %v3688_v31 = vld [vmem:[%s3565_s12 + $0xf8] sm:$0xff]  ;;  %v3691_v32 = vld [vmem:[%s3565_s12 + $0xf0] sm:$0xff]  ;;  %v3703_v33 = vld [vmem:[%s3698_s15 + $0x8] sm:$0xff]  ;;  %s3382_s12 = sshll.u32 %s3463_s11, 4  ;;  %s3383_s12 = int_to_ptr.vmem [resolvable:$false] %s3382_s12 }
  0x28   : > { %s3384_s13 = scalar_lea.vmem %s3383_s12, 16384  ;;  %p3385_p2 = scmp.lt.s32.totalorder %s5923_s29, %s3383_s12 }
  0x29   : > { %p3386_p3 = scmp.lt.s32.totalorder %s3384_s13, %s3378_s10 }
  0x2a   : > { %444 = vperm.xlu1 %3361, %v3592_v7   ;;  %439 = vperm.xlu0 %3360, %v3595_v8  }
  0x2b   : > { %p3387_p5 = por %p3386_p3, %p3385_p2 }
  0x2d   : > { %p3388_p6 = pnand %p3387_p5, %p3381_p1 }
  0x2e   : > { %454 = vperm.xlu1 %3361, %v3600_v9   ;;  %449 = vperm.xlu0 %3360, %v3603_v10  }
  0x32   : > { %464 = vperm.xlu1 %3361, %v3608_v11   ;;  %459 = vperm.xlu0 %3360, %v3611_v12  }
  0x36   : > { %474 = vperm.xlu1 %3361, %v3616_v13   ;;  %469 = vperm.xlu0 %3360, %v3619_v14  }
  0x3a   : > { %484 = vperm.xlu1 %3361, %v3624_v15   ;;  %479 = vperm.xlu0 %3360, %v3627_v16  }
  0x3e   : > { %494 = vperm.xlu1 %3361, %v3632_v17   ;;  %489 = vperm.xlu0 %3360, %v3635_v18  }
  0x42   : > { %504 = vperm.xlu1 %3361, %v3640_v19   ;;  %499 = vperm.xlu0 %3360, %v3643_v20  }
  0x46   : > { %514 = vperm.xlu1 %3361, %v3648_v21   ;;  %509 = vperm.xlu0 %3360, %v3651_v22  }
  0x4a   : > { %524 = vperm.xlu1 %3361, %v3656_v23   ;;  %519 = vperm.xlu0 %3360, %v3659_v24  }
  0x4e   : > { %534 = vperm.xlu1 %3361, %v3664_v25   ;;  %529 = vperm.xlu0 %3360, %v3667_v26  }
  0x52   : > { %544 = vperm.xlu1 %3361, %v3672_v27   ;;  %539 = vperm.xlu0 %3360, %v3675_v28  }
  0x56   : > { %554 = vperm.xlu1 %3361, %v3680_v29   ;;  %549 = vperm.xlu0 %3360, %v3683_v30  }
  0x5a   : > { %564 = vperm.xlu1 %3361, %v3688_v31   ;;  %559 = vperm.xlu0 %3360, %v3691_v32  }
  0x5e   : > { %3362 = vset.pattern.permute.xlu1 %v5986_v34  ;;  %1274 = vperm.xlu0 %3360, %v3703_v33  }
  0x5f   : > { %608 = vperm.xlu1 %3362, %v3579_v4  }
  0x62   : > { %3366 = vset.pattern.permute.xlu0 %v5982_v35 }
  0x63   : > { %612 = vperm.xlu1 %3362, %v3568_v1   ;;  %996 = vperm.xlu0 %3366, %v3571_v2  }
  0x67   : > { %620 = vperm.xlu1 %3362, %v3587_v6   ;;  %1008 = vperm.xlu0 %3366, %v3576_v3  }
  0x6b   : > { %628 = vperm.xlu1 %3362, %v3595_v8   ;;  %1016 = vperm.xlu0 %3366, %v3584_v5  }
  0x6f   : > { %636 = vperm.xlu1 %3362, %v3603_v10   ;;  %1024 = vperm.xlu0 %3366, %v3592_v7  }
  0x73   : > { %644 = vperm.xlu1 %3362, %v3611_v12   ;;  %1032 = vperm.xlu0 %3366, %v3600_v9  }
  0x77   : > { %652 = vperm.xlu1 %3362, %v3619_v14   ;;  %1040 = vperm.xlu0 %3366, %v3608_v11  }
  0x7b   : > { %660 = vperm.xlu1 %3362, %v3627_v16   ;;  %1048 = vperm.xlu0 %3366, %v3616_v13  }
  0x7f   : > { %668 = vperm.xlu1 %3362, %v3635_v18   ;;  %1056 = vperm.xlu0 %3366, %v3624_v15  }
  0x83   : > { %676 = vperm.xlu1 %3362, %v3643_v20   ;;  %1064 = vperm.xlu0 %3366, %v3632_v17  }
  0x87   : > { %684 = vperm.xlu1 %3362, %v3651_v22   ;;  %1072 = vperm.xlu0 %3366, %v3640_v19  }
  0x8b   : > { %692 = vperm.xlu1 %3362, %v3659_v24   ;;  %1080 = vperm.xlu0 %3366, %v3648_v21  }
  0x8f   : > { %700 = vperm.xlu1 %3362, %v3667_v26   ;;  %1088 = vperm.xlu0 %3366, %v3656_v23  }
  0x93   : > { %708 = vperm.xlu1 %3362, %v3675_v28   ;;  %1096 = vperm.xlu0 %3366, %v3664_v25  }
  0x97   : > { %716 = vperm.xlu1 %3362, %v3683_v30   ;;  %1104 = vperm.xlu0 %3366, %v3672_v27  }
  0x9b   : > { %724 = vperm.xlu1 %3362, %v3691_v32   ;;  %1112 = vperm.xlu0 %3366, %v3680_v29  }
  0x9d   : > { %v3739_v36 = vpop.permute.xlu1 %419  ;;  %v3741_v37 = vpop.permute.xlu0 %409 }
  0x9f   : > { %3363 = vset.pattern.permute.xlu1 %v5984_v38  ;;  %1120 = vperm.xlu0 %3366, %v3688_v31  }
  0xa0   : > { %800 = vperm.xlu1 %3363, %v3571_v2  }
  0xa1   : > { %v3746_v39 = vpop.permute.xlu1 %424  ;;  %v3748_v40 = vpop.permute.xlu0 %414 }
  0xa3   : > { %1320 = vperm.xlu0 %3366, %v3703_v33  }
  0xa4   : > { %808 = vperm.xlu1 %3363, %v3568_v1  }
  0xa5   : > { %v3752_v41 = vpop.permute.xlu1 %434  ;;  %v3754_v42 = vpop.permute.xlu0 %429 }
  0xa7   : > { %3370 = vset.pattern.permute.xlu0 %v5986_v34 }
  0xa8   : > { %812 = vperm.xlu1 %3363, %v3576_v3   ;;  %604 = vperm.xlu0 %3370, %v3571_v2  }
  0xa9   : > { %v3759_v43 = vpop.permute.xlu1 %444  ;;  %v3761_v44 = vpop.permute.xlu0 %439 }
  0xaa   : > { %6150 = vst [vmem:[#allocation6_spill] sm:$0xff] %v3761_v44 }
  0xac   : > { %820 = vperm.xlu1 %3363, %v3584_v5   ;;  %616 = vperm.xlu0 %3370, %v3576_v3  }
  0xad   : > { %v3765_v45 = vpop.permute.xlu1 %454  ;;  %v3767_v46 = vpop.permute.xlu0 %449 }
  0xae   : > { %6151 = vst [vmem:[#allocation7_spill] sm:$0xff] %v3767_v46 }
  0xb0   : > { %828 = vperm.xlu1 %3363, %v3592_v7   ;;  %624 = vperm.xlu0 %3370, %v3584_v5  }
  0xb1   : > { %v3771_v47 = vpop.permute.xlu1 %464  ;;  %v3773_v48 = vpop.permute.xlu0 %459 }
  0xb2   : > { %6152 = vst [vmem:[#allocation8_spill] sm:$0xff] %v3773_v48 }
  0xb4   : > { %836 = vperm.xlu1 %3363, %v3600_v9   ;;  %632 = vperm.xlu0 %3370, %v3592_v7  }
  0xb5   : > { %v3777_v49 = vpop.permute.xlu1 %474  ;;  %v3779_v50 = vpop.permute.xlu0 %469 }
  0xb6   : > { %6153 = vst [vmem:[#allocation9_spill] sm:$0xff] %v3779_v50 }
  0xb8   : > { %844 = vperm.xlu1 %3363, %v3608_v11   ;;  %640 = vperm.xlu0 %3370, %v3600_v9  }
  0xb9   : > { %v3783_v51 = vpop.permute.xlu1 %484  ;;  %v3785_v52 = vpop.permute.xlu0 %479 }
  0xba   : > { %6154 = vst [vmem:[#allocation10_spill] sm:$0xff] %v3785_v52 }
  0xbc   : > { %852 = vperm.xlu1 %3363, %v3616_v13   ;;  %648 = vperm.xlu0 %3370, %v3608_v11  }
  0xbd   : > { %v3789_v53 = vpop.permute.xlu1 %494  ;;  %v3791_v54 = vpop.permute.xlu0 %489 }
  0xbe   : > { %6155 = vst [vmem:[#allocation11_spill] sm:$0xff] %v3791_v54  ;;  %v6182_v54 = vmov 0  }
  0xc0   : > { %860 = vperm.xlu1 %3363, %v3624_v15   ;;  %656 = vperm.xlu0 %3370, %v3616_v13  }
  0xc1   : > { %v3795_v55 = vpop.permute.xlu1 %504  ;;  %v3797_v56 = vpop.permute.xlu0 %499 }
  0xc2   : > { %6156 = vst [vmem:[#allocation12_spill] sm:$0xff] %v3797_v56  ;;  %v3962_v56 = vld [vmem:[%s3698_s15] sm:$0xff] }
  0xc4   : > { %868 = vperm.xlu1 %3363, %v3632_v17   ;;  %664 = vperm.xlu0 %3370, %v3624_v15  }
  0xc5   : > { %v3801_v57 = vpop.permute.xlu1 %514  ;;  %v3803_v58 = vpop.permute.xlu0 %509 }
  0xc6   : > { %6157 = vst [vmem:[#allocation13_spill] sm:$0xff] %v3803_v58 }
  0xc8   : > { %876 = vperm.xlu1 %3363, %v3640_v19   ;;  %672 = vperm.xlu0 %3370, %v3632_v17  }
  0xc9   : > { %v3807_v59 = vpop.permute.xlu1 %524  ;;  %v3809_v60 = vpop.permute.xlu0 %519 }
  0xca   : > { %6158 = vst [vmem:[#allocation14_spill] sm:$0xff] %v3809_v60 }
  0xcc   : > { %884 = vperm.xlu1 %3363, %v3648_v21   ;;  %680 = vperm.xlu0 %3370, %v3640_v19   ;;  %v3857_v19 = vld [vmem:[%s3851_s27] sm:$0xff] }
  0xcd   : > { %v3813_v61 = vpop.permute.xlu1 %534  ;;  %v3815_v62 = vpop.permute.xlu0 %529 }
  0xce   : > { %6159 = vst [vmem:[#allocation15_spill] sm:$0xff] %v3815_v62 }
  0xd0   : > { %892 = vperm.xlu1 %3363, %v3656_v23   ;;  %688 = vperm.xlu0 %3370, %v3648_v21  }
  0xd1   : > { %v3819_v63 = vpop.permute.xlu1 %544  ;;  %v3821_v2 = vpop.permute.xlu0 %539 }
  0xd2   : > { %6160 = vst [vmem:[#allocation16_spill] sm:$0xff] %v3821_v2 }
  0xd4   : > { %900 = vperm.xlu1 %3363, %v3664_v25   ;;  %696 = vperm.xlu0 %3370, %v3656_v23  }
  0xd5   : > { %v3826_v3 = vpop.permute.xlu1 %554  ;;  %v3828_v5 = vpop.permute.xlu0 %549 }
  0xd6   : > { %6161 = vst [vmem:[#allocation17_spill] sm:$0xff] %v3828_v5 }
  0xd8   : > { %908 = vperm.xlu1 %3363, %v3672_v27   ;;  %704 = vperm.xlu0 %3370, %v3664_v25  }
  0xd9   : > { %v3832_v7 = vpop.permute.xlu1 %564  ;;  %v3834_v9 = vpop.permute.xlu0 %559 }
  0xda   : > { %6162 = vst [vmem:[#allocation18_spill] sm:$0xff] %v3834_v9 }
  0xdc   : > { %916 = vperm.xlu1 %3363, %v3680_v29   ;;  %712 = vperm.xlu0 %3370, %v3672_v27  }
  0xdd   : > { %v3838_v11 = vpop.permute.xlu0 %1274 }
  0xde   : > { %6163 = vst [vmem:[#allocation19_spill] sm:$0xff] %v3838_v11  ;;  %v3840_v13 = vpop.permute.xlu1 %608 }
  0xe0   : > { %924 = vperm.xlu1 %3363, %v3688_v31   ;;  %720 = vperm.xlu0 %3370, %v3680_v29  }
  0xe2   : > { %v3844_v15 = vpop.permute.xlu1 %612  ;;  %v3846_v17 = vpop.permute.xlu0 %996 }
  0xe4   : > { %3364 = vset.pattern.permute.xlu1 %v5982_v35  ;;  %728 = vperm.xlu0 %3370, %v3688_v31  }
  0xe5   : > { %1000 = vperm.xlu1 %3364, %v3579_v4  }
  0xe6   : > { %v3859_v21 = vpop.permute.xlu1 %620  ;;  %v3861_v23 = vpop.permute.xlu0 %1008 }
  0xe8   : > { %1362 = vperm.xlu0 %3370, %v3857_v19  }
  0xe9   : > { %1004 = vperm.xlu1 %3364, %v3568_v1  }
  0xea   : > { %v3865_v25 = vpop.permute.xlu1 %628  ;;  %v3867_v27 = vpop.permute.xlu0 %1016 }
  0xeb   : > { %6164 = vst [vmem:[#allocation20_spill] sm:$0xff] %v3865_v25  ;;  %v6184_v25 = vmov 3  }
  0xec   : > { %3372 = vset.pattern.permute.xlu0 %v5984_v38 }
  0xed   : > { %1012 = vperm.xlu1 %3364, %v3587_v6   ;;  %804 = vperm.xlu0 %3372, %v3579_v4  }
  0xee   : > { %v3872_v29 = vpop.permute.xlu1 %636  ;;  %v3874_v31 = vpop.permute.xlu0 %1024 }
  0xef   : > { %6165 = vst [vmem:[#allocation21_spill] sm:$0xff] %v3872_v29 }
  0xf1   : > { %1020 = vperm.xlu1 %3364, %v3595_v8   ;;  %816 = vperm.xlu0 %3372, %v3587_v6  }
  0xf2   : > { %v3878_v35 = vpop.permute.xlu1 %644  ;;  %v3880_v1 = vpop.permute.xlu0 %1032 }
  0xf3   : > { %6166 = vst [vmem:[#allocation22_spill] sm:$0xff] %v3878_v35 }
  0xf5   : > { %1028 = vperm.xlu1 %3364, %v3603_v10   ;;  %824 = vperm.xlu0 %3372, %v3595_v8  }
  0xf6   : > { %v3884_v38 = vpop.permute.xlu1 %652  ;;  %v3886_v34 = vpop.permute.xlu0 %1040 }
  0xf7   : > { %6167 = vst [vmem:[#allocation23_spill] sm:$0xff] %v3884_v38  ;;  %v6183_v38 = vmov 1  }
  0xf9   : > { %1036 = vperm.xlu1 %3364, %v3611_v12   ;;  %832 = vperm.xlu0 %3372, %v3603_v10  }
  0xfa   : > { %v3890_v4 = vpop.permute.xlu1 %660  ;;  %v3892_v0 = vpop.permute.xlu0 %1048 }
  0xfb   : > { %6168 = vst [vmem:[#allocation24_spill] sm:$0xff] %v3890_v4 }
  0xfd   : > { %1044 = vperm.xlu1 %3364, %v3619_v14   ;;  %840 = vperm.xlu0 %3372, %v3611_v12  }
  0xfe   : > { %v3896_v6 = vpop.permute.xlu1 %668  ;;  %v3898_v11 = vpop.permute.xlu0 %1056 }
  0xff   : > { %6169 = vst [vmem:[#allocation25_spill] sm:$0xff] %v3896_v6 }
 0x101   : > { %1052 = vperm.xlu1 %3364, %v3627_v16   ;;  %848 = vperm.xlu0 %3372, %v3619_v14  }
 0x102   : > { %v3902_v8 = vpop.permute.xlu1 %676  ;;  %v3904_v9 = vpop.permute.xlu0 %1064 }
 0x103   : > { %6170 = vst [vmem:[#allocation26_spill] sm:$0xff] %v3902_v8 }
 0x105   : > { %1060 = vperm.xlu1 %3364, %v3635_v18   ;;  %856 = vperm.xlu0 %3372, %v3627_v16  }
 0x106   : > { %v3908_v10 = vpop.permute.xlu1 %684  ;;  %v3910_v5 = vpop.permute.xlu0 %1072 }
 0x107   : > { %6171 = vst [vmem:[#allocation27_spill] sm:$0xff] %v3908_v10 }
 0x109   : > { %1068 = vperm.xlu1 %3364, %v3643_v20   ;;  %864 = vperm.xlu0 %3372, %v3635_v18  }
 0x10a   : > { %v3914_v12 = vpop.permute.xlu1 %692  ;;  %v3916_v2 = vpop.permute.xlu0 %1080 }
 0x10b   : > { %6172 = vst [vmem:[#allocation28_spill] sm:$0xff] %v3914_v12 }
 0x10d   : > { %1076 = vperm.xlu1 %3364, %v3651_v22   ;;  %872 = vperm.xlu0 %3372, %v3643_v20   ;;  %v567_v20 = vlaneseq }
 0x10e   : > { %v3920_v14 = vpop.permute.xlu1 %700  ;;  %v3922_v62 = vpop.permute.xlu0 %1088 }
 0x10f   : > { %6173 = vst [vmem:[#allocation29_spill] sm:$0xff] %v3920_v14 }
 0x111   : > { %1084 = vperm.xlu1 %3364, %v3659_v24   ;;  %880 = vperm.xlu0 %3372, %v3651_v22  }
 0x112   : > { %v3926_v16 = vpop.permute.xlu1 %708  ;;  %v3928_v60 = vpop.permute.xlu0 %1096 }
 0x113   : > { %6174 = vst [vmem:[#allocation30_spill] sm:$0xff] %v3926_v16  ;;  %v568_v16 = vshrl.u32 %v567_v20, 7 }
 0x115   : > { %1092 = vperm.xlu1 %3364, %v3667_v26   ;;  %888 = vperm.xlu0 %3372, %v3659_v24   ;;  %v3948_v58 = vsub.s32 0, %v568_v16  ;;  %v3952_v10 = vsub.s32 2, %v568_v16  ;;  %v3964_v8 = vsub.s32 3, %v568_v16 }
 0x116   : > { %v3932_v18 = vpop.permute.xlu1 %716  ;;  %v3934_v12 = vpop.permute.xlu0 %1104 }
 0x117   : > { %6175 = vst [vmem:[#allocation31_spill] sm:$0xff] %v3932_v18  ;;  %6177 = vst [vmem:[#allocation33_spill] sm:$0xff] %v3948_v58 }
 0x118   : > { %6179 = vst [vmem:[#allocation35_spill] sm:$0xff] %v3952_v10  ;;  %6181 = vst [vmem:[#allocation37_spill] sm:$0xff] %v3964_v8 }
 0x119   : > { %1100 = vperm.xlu1 %3364, %v3675_v28   ;;  %896 = vperm.xlu0 %3372, %v3667_v26   ;;  %v3950_v26 = vsub.s32 1, %v568_v16 }
 0x11a   : > { %v3938_v14 = vpop.permute.xlu1 %724  ;;  %v3940_v22 = vpop.permute.xlu0 %1112 }
 0x11b   : > { %6176 = vst [vmem:[#allocation32_spill] sm:$0xff] %v3938_v14  ;;  %6178 = vst [vmem:[#allocation34_spill] sm:$0xff] %v3950_v26 }
 0x11d   : > { %1108 = vperm.xlu1 %3364, %v3683_v30   ;;  %904 = vperm.xlu0 %3372, %v3675_v28   ;;  %v406_v28 = vld [vmem:[%s5979_s3] sm:$0xf] }
 0x11e   : > { %v3944_v24 = vpop.permute.xlu0 %1120  ;;  %v3975_v6 = vrot.slane %v406_v28, %v3952_v10  ;;  %v3981_v50 = vrot.slane %v406_v28, %v3964_v8  ;;  %v3988_v10 = vld [vmem:[%s3851_s27 + $0x8] sm:$0xff]  ;;  %s3298_s27 = sshll.u32 %s3448_s21, 13  ;;  %s5929_s21 = scalar_lea.sflag [#allocation4], %s327_s17 }
 0x11f   : > { %v801_v18 = vpop.permute.xlu1 %800  ;;  %s5921_s9 = scalar_lea.hbm %s5981_s5, %s3298_s27 }
 0x121   : > { %1116 = vperm.xlu1 %3364, %v3691_v32   ;;  %912 = vperm.xlu0 %3372, %v3683_v30   ;;  %v3969_v30 = vrot.slane %v406_v28, %v3948_v58  ;;  %v931_v58 = vmul.f32 %v3975_v6, %v801_v18  ;;  %v3999_v18 = vld [vmem:[%s5980_s4] ss:$0 sm:$0xff] }
 0x122   : > { %v3954_v14 = vpop.permute.xlu0 %1320 }
 0x123   : > { %6180 = vst [vmem:[#allocation36_spill] sm:$0xff] %v3954_v14  ;;  %v3959_v20 = vpop.permute.xlu1 %808  ;;  %v3972_v14 = vrot.slane %v406_v28, %v3950_v26  ;;  %v571_v16 = vmul.f32 %v3969_v30, %v3741_v37  ;;  %v574_v37 = vmul.f32 %v3969_v30, %v3746_v39  ;;  %v1127_v28 = vmul.f32 %v3981_v50, %v3846_v17 }
 0x124   : > { %v576_v39 = vmul.f32 %v3969_v30, %v3752_v41 }
 0x125   : > { %3365 = vset.pattern.permute.xlu1 %v6182_v54  ;;  %920 = vperm.xlu0 %3372, %v3691_v32  }
 0x126   : > { %1269 = vperm.xlu1 %3365, %v3962_v56  }
 0x127   : > { %v813_v52 = vpop.permute.xlu1 %812  ;;  %v605_v4 = vpop.permute.xlu0 %604 }
 0x128   : > { %v735_v32 = vmul.f32 %v3972_v14, %v605_v4 }
 0x129   : > { %1300 = vperm.xlu0 %3372, %v3962_v56  }
 0x12a   : > { %v767_v26 = vadd.f32 %v735_v32, %v571_v16  ;;  %3367 = vset.pattern.permute.xlu1 %v6183_v38  ;;  %v934_v16 = vmul.f32 %v3975_v6, %v813_v52 }
 0x12b   : > { %1284 = vperm.xlu1 %3367, %v3962_v56   ;;  %v821_v48 = vpop.permute.xlu1 %820  ;;  %v617_v35 = vpop.permute.xlu0 %616 }
 0x12c   : > { %v963_v4 = vadd.f32 %v931_v58, %v767_v26  ;;  %v738_v8 = vmul.f32 %v3972_v14, %v617_v35  ;;  %v1130_v35 = vmul.f32 %v3981_v50, %v3861_v23  ;;  %v936_v52 = vmul.f32 %v3975_v6, %v821_v48 }
 0x12d   : > { %1382 = vperm.xlu0 %3372, %v3988_v10  }
 0x12e   : > { %v1159_v32 = vadd.f32 %v1127_v28, %v963_v4  ;;  %v770_v46 = vadd.f32 %v738_v8, %v574_v37  ;;  %v578_v37 = vmul.f32 %v3969_v30, %v3759_v43  ;;  %v6185_v28 = vmov 2  }
 0x12f   : > { %1288 = vperm.xlu1 %3367, %v3703_v33   ;;  %v829_v58 = vpop.permute.xlu1 %828  ;;  %v625_v17 = vpop.permute.xlu0 %624 }
 0x130   : > { %v1198_v26 = vadd.f32 %v3999_v18, %v1159_v32  ;;  %v966_v29 = vadd.f32 %v934_v16, %v770_v46  ;;  %v740_v44 = vmul.f32 %v3972_v14, %v625_v17  ;;  %v1132_v46 = vmul.f32 %v3981_v50, %v3867_v27 }
 0x131   : > { %3376 = vset.pattern.permute.xlu0 %v6184_v25  ;;  %v1134_v27 = vmul.f32 %v3981_v50, %v3874_v31 }
 0x132   : > { %1232 = vst.msk [vmem:[#allocation2 + $0x10] sm:$0xff] %vm1231_vm0, %v1198_v26  ;;  %v1162_v41 = vadd.f32 %v1130_v35, %v966_v29  ;;  %v772_v8 = vadd.f32 %v740_v44, %v576_v39  ;;  %v938_v44 = vmul.f32 %v3975_v6, %v829_v58  ;;  %v580_v29 = vmul.f32 %v3969_v30, %v3765_v45 }
 0x133   : > { %3368 = vset.pattern.permute.xlu1 %v6185_v28  ;;  %v837_v4 = vpop.permute.xlu1 %836  ;;  %v633_v23 = vpop.permute.xlu0 %632 }
 0x134   : > { %v1201_v16 = vadd.f32 %v3999_v18, %v1162_v41  ;;  %v968_v32 = vadd.f32 %v936_v52, %v772_v8  ;;  %v742_v17 = vmul.f32 %v3972_v14, %v633_v23  ;;  %1304 = vperm.xlu1 %3368, %v3703_v33   ;;  %v940_v33 = vmul.f32 %v3975_v6, %v837_v4 }
 0x135   : > { %v582_v8 = vmul.f32 %v3969_v30, %v3771_v47  ;;  %v1136_v23 = vmul.f32 %v3981_v50, %v3880_v1  ;;  %v584_v47 = vmul.f32 %v3969_v30, %v3777_v49  ;;  %v586_v49 = vmul.f32 %v3969_v30, %v3783_v51 }
 0x136   : > { %1235 = vst.msk [vmem:[#allocation2 + $0x28] sm:$0xff] %vm1231_vm0, %v1201_v16  ;;  %v1164_v48 = vadd.f32 %v1132_v46, %v968_v32  ;;  %v774_v43 = vadd.f32 %v742_v17, %v578_v37  ;;  %v588_v51 = vmul.f32 %v3969_v30, %v3789_v53  ;;  %v590_v53 = vmul.f32 %v3969_v30, %v3795_v55 }
 0x137   : > { %v845_v39 = vpop.permute.xlu1 %844  ;;  %v641_v35 = vpop.permute.xlu0 %640 }
 0x138   : > { %v1203_v26 = vadd.f32 %v3999_v18, %v1164_v48  ;;  %v970_v52 = vadd.f32 %v938_v44, %v774_v43  ;;  %v744_v41 = vmul.f32 %v3972_v14, %v641_v35  ;;  %3369 = vset.pattern.permute.xlu1 %v6184_v25  ;;  %v1138_v48 = vmul.f32 %v3981_v50, %v3886_v34 }
 0x139   : > { %1316 = vperm.xlu1 %3369, %v3962_v56   ;;  %v942_v56 = vmul.f32 %v3975_v6, %v845_v39  ;;  %v1140_v34 = vmul.f32 %v3981_v50, %v3892_v0 }
 0x13a   : > { %1237 = vst.msk [vmem:[#allocation2 + $0x38] sm:$0xff] %vm1231_vm0, %v1203_v26  ;;  %v1166_v58 = vadd.f32 %v1134_v27, %v970_v52  ;;  %v776_v45 = vadd.f32 %v744_v41, %v580_v29 }
 0x13b   : > { %v853_v37 = vpop.permute.xlu1 %852  ;;  %v649_v31 = vpop.permute.xlu0 %648 }
 0x13c   : > { %v1205_v46 = vadd.f32 %v3999_v18, %v1166_v58  ;;  %v972_v16 = vadd.f32 %v940_v33, %v776_v45  ;;  %v746_v32 = vmul.f32 %v3972_v14, %v649_v31  ;;  %v944_v39 = vmul.f32 %v3975_v6, %v853_v37 }
 0x13d   : > { %3371 = vset.pattern.permute.xlu1 %v6182_v54 }
 0x13e   : > { %1239 = vst.msk [vmem:[#allocation2 + $0x48] sm:$0xff] %vm1231_vm0, %v1205_v46  ;;  %v1168_v4 = vadd.f32 %v1136_v23, %v972_v16  ;;  %v778_v17 = vadd.f32 %v746_v32, %v582_v8  ;;  %1347 = vperm.xlu1 %3371, %v3857_v19   ;;  %v1142_v23 = vmul.f32 %v3981_v50, %v3898_v11 }
 0x13f   : > { %v861_v44 = vpop.permute.xlu1 %860  ;;  %v657_v1 = vpop.permute.xlu0 %656  ;;  %v1144_v11 = vmul.f32 %v3981_v50, %v3904_v9  ;;  %v1146_v9 = vmul.f32 %v3981_v50, %v3910_v5 }
 0x140   : > { %v1207_v43 = vadd.f32 %v3999_v18, %v1168_v4  ;;  %v974_v29 = vadd.f32 %v942_v56, %v778_v17  ;;  %v748_v54 = vmul.f32 %v3972_v14, %v657_v1  ;;  %v946_v45 = vmul.f32 %v3975_v6, %v861_v44 }
 0x142   : > { %1241 = vst.msk [vmem:[#allocation2 + $0x58] sm:$0xff] %vm1231_vm0, %v1207_v43  ;;  %v1170_v35 = vadd.f32 %v1138_v48, %v974_v29  ;;  %v780_v27 = vadd.f32 %v748_v54, %v584_v47  ;;  %1352 = vperm.xlu1 %3371, %v3988_v10  }
 0x143   : > { %v869_v26 = vpop.permute.xlu1 %868  ;;  %v665_v52 = vpop.permute.xlu0 %664 }
 0x144   : > { %v1209_v41 = vadd.f32 %v3999_v18, %v1170_v35  ;;  %v976_v33 = vadd.f32 %v944_v39, %v780_v27  ;;  %v750_v58 = vmul.f32 %v3972_v14, %v665_v52  ;;  %v948_v56 = vmul.f32 %v3975_v6, %v869_v26 }
 0x146   : > { %1243 = vst.msk [vmem:[#allocation2 + $0x68] sm:$0xff] %vm1231_vm0, %v1209_v41  ;;  %v1172_v8 = vadd.f32 %v1140_v34, %v976_v33  ;;  %v782_v37 = vadd.f32 %v750_v58, %v586_v49  ;;  %3373 = vset.pattern.permute.xlu1 %v6183_v38  ;;  %v594_v34 = vmul.f32 %v3969_v30, %v3807_v59 }
 0x147   : > { %1366 = vperm.xlu1 %3373, %v3988_v10   ;;  %v877_v31 = vpop.permute.xlu1 %876  ;;  %v673_v0 = vpop.permute.xlu0 %672  ;;  %v1148_v33 = vmul.f32 %v3981_v50, %v3916_v2  ;;  %v596_v59 = vmul.f32 %v3969_v30, %v3813_v61  ;;  %v1150_v2 = vmul.f32 %v3981_v50, %v3922_v62 }
 0x148   : > { %v1211_v46 = vadd.f32 %v3999_v18, %v1172_v8  ;;  %v978_v16 = vadd.f32 %v946_v45, %v782_v37  ;;  %v752_v32 = vmul.f32 %v3972_v14, %v673_v0  ;;  %v950_v43 = vmul.f32 %v3975_v6, %v877_v31 }
 0x14a   : > { %1245 = vst.msk [vmem:[#allocation2 + $0x78] sm:$0xff] %vm1231_vm0, %v1211_v46  ;;  %v1174_v38 = vadd.f32 %v1142_v23, %v978_v16  ;;  %v784_v4 = vadd.f32 %v752_v32, %v588_v51 }
 0x14b   : > { %3374 = vset.pattern.permute.xlu1 %v6185_v28  ;;  %v885_v17 = vpop.permute.xlu1 %884  ;;  %v681_v47 = vpop.permute.xlu0 %680  ;;  %v592_v28 = vmul.f32 %v3969_v30, %v3801_v57 }
 0x14c   : > { %v1213_v44 = vadd.f32 %v3999_v18, %v1174_v38  ;;  %v980_v1 = vadd.f32 %v948_v56, %v784_v4  ;;  %v754_v48 = vmul.f32 %v3972_v14, %v681_v47  ;;  %1378 = vperm.xlu1 %3374, %v3857_v19   ;;  %v952_v26 = vmul.f32 %v3975_v6, %v885_v17 }
 0x14d   : > { %v598_v56 = vmul.f32 %v3969_v30, %v3819_v63  ;;  %v1152_v4 = vmul.f32 %v3981_v50, %v3928_v60 }
 0x14e   : > { %1247 = vst.msk [vmem:[#allocation2 + $0x88] sm:$0xff] %vm1231_vm0, %v1213_v44  ;;  %v1176_v29 = vadd.f32 %v1144_v11, %v980_v1  ;;  %v786_v55 = vadd.f32 %v754_v48, %v590_v53  ;;  %v600_v1 = vmul.f32 %v3969_v30, %v3826_v3  ;;  %v737_v3 = vmul.f32 %v3972_v14, %v3844_v15 }
 0x14f   : > { %v893_v54 = vpop.permute.xlu1 %892  ;;  %v689_v39 = vpop.permute.xlu0 %688 }
 0x150   : > { %v1215_v35 = vadd.f32 %v3999_v18, %v1176_v29  ;;  %v982_v27 = vadd.f32 %v950_v43, %v786_v55  ;;  %v756_v49 = vmul.f32 %v3972_v14, %v689_v39  ;;  %3375 = vset.pattern.permute.xlu1 %v6184_v25  ;;  %v1154_v43 = vmul.f32 %v3981_v50, %v3934_v12 }
 0x151   : > { %1394 = vperm.xlu1 %3375, %v3857_v19   ;;  %v954_v19 = vmul.f32 %v3975_v6, %v893_v54  ;;  %v1156_v12 = vmul.f32 %v3981_v50, %v3940_v22 }
 0x152   : > { %1249 = vst.msk [vmem:[#allocation2 + $0x98] sm:$0xff] %vm1231_vm0, %v1215_v35  ;;  %v1178_v52 = vadd.f32 %v1146_v9, %v982_v27  ;;  %v788_v57 = vadd.f32 %v756_v49, %v592_v28  ;;  %v602_v9 = vmul.f32 %v3969_v30, %v3832_v7 }
 0x153   : > { %v901_v41 = vpop.permute.xlu1 %900  ;;  %v697_v5 = vpop.permute.xlu0 %696 }
 0x154   : > { %v1217_v58 = vadd.f32 %v3999_v18, %v1178_v52  ;;  %v984_v45 = vadd.f32 %v952_v26, %v788_v57  ;;  %v758_v25 = vmul.f32 %v3972_v14, %v697_v5  ;;  %v573_v57 = vmul.f32 %v3969_v30, %v3739_v36 }
 0x155   : > { %1398 = vperm.xlu1 %3375, %v3988_v10   ;;  %v956_v10 = vmul.f32 %v3975_v6, %v901_v41  ;;  %v736_v36 = vmul.f32 %v3972_v14, %v3840_v13 }
 0x156   : > { %1251 = vst.msk [vmem:[#allocation2 + $0xa8] sm:$0xff] %vm1231_vm0, %v1217_v58  ;;  %v1180_v8 = vadd.f32 %v1148_v33, %v984_v45  ;;  %v790_v37 = vadd.f32 %v758_v25, %v594_v34  ;;  %v933_v34 = vmul.f32 %v3975_v6, %v3959_v20  ;;  %v769_v5 = vadd.f32 %v737_v3, %v573_v57 }
 0x157   : > { %v909_v51 = vpop.permute.xlu1 %908  ;;  %v705_v31 = vpop.permute.xlu0 %704  ;;  %v1158_v33 = vmul.f32 %v3981_v50, %v3944_v24 }
 0x158   : > { %v1219_v0 = vadd.f32 %v3999_v18, %v1180_v8  ;;  %v986_v23 = vadd.f32 %v954_v19, %v790_v37  ;;  %v760_v46 = vmul.f32 %v3972_v14, %v705_v31  ;;  %v958_v47 = vmul.f32 %v3975_v6, %v909_v51 }
 0x159   : > { %v965_v20 = vadd.f32 %v933_v34, %v769_v5  ;;  %v572_v37 = vmul.f32 %v3969_v30, %v3748_v40 }
 0x15a   : > { %1253 = vst.msk [vmem:[#allocation2 + $0xb8] sm:$0xff] %vm1231_vm0, %v1219_v0  ;;  %v1182_v16 = vadd.f32 %v1150_v2, %v986_v23  ;;  %v792_v32 = vadd.f32 %v760_v46, %v596_v59  ;;  %v739_v0 = vmul.f32 %v3972_v14, %v3859_v21  ;;  %v575_v46 = vmul.f32 %v3969_v30, %v3754_v42 }
 0x15b   : > { %v917_v61 = vpop.permute.xlu1 %916  ;;  %v713_v38 = vpop.permute.xlu0 %712  ;;  %v768_v2 = vadd.f32 %v736_v36, %v572_v37 }
 0x15c   : > { %v1221_v62 = vadd.f32 %v3999_v18, %v1182_v16  ;;  %v988_v53 = vadd.f32 %v956_v10, %v792_v32  ;;  %v762_v17 = vmul.f32 %v3972_v14, %v713_v38  ;;  %v960_v28 = vmul.f32 %v3975_v6, %v917_v61  ;;  %v6186_v61 = vld [vmem:[#allocation20_spill] sm:$0xff] }
 0x15d   : > { %v741_v21 = vmul.f32 %v3972_v14, %v6186_v61 }
 0x15e   : > { %1255 = vst.msk [vmem:[#allocation2 + $0xc8] sm:$0xff] %vm1231_vm0, %v1221_v62  ;;  %v1184_v11 = vadd.f32 %v1152_v4, %v988_v53  ;;  %v794_v44 = vadd.f32 %v762_v17, %v598_v56  ;;  %v771_v56 = vadd.f32 %v739_v0, %v575_v46  ;;  %v6187_v62 = vld [vmem:[#allocation6_spill] sm:$0xff] }
 0x15f   : > { %v925_v63 = vpop.permute.xlu1 %924  ;;  %v721_v48 = vpop.permute.xlu0 %720  ;;  %v577_v53 = vmul.f32 %v3969_v30, %v6187_v62  ;;  %v6195_v46 = vld [vmem:[#allocation10_spill] sm:$0xff] }
 0x160   : > { %v1223_v60 = vadd.f32 %v3999_v18, %v1184_v11  ;;  %v990_v29 = vadd.f32 %v958_v47, %v794_v44  ;;  %v764_v55 = vmul.f32 %v3972_v14, %v721_v48  ;;  %v962_v7 = vmul.f32 %v3975_v6, %v925_v63  ;;  %v6188_v63 = vld [vmem:[#allocation21_spill] sm:$0xff] }
 0x161   : > { %v743_v48 = vmul.f32 %v3972_v14, %v6188_v63 }
 0x162   : > { %1257 = vst.msk [vmem:[#allocation2 + $0xd8] sm:$0xff] %vm1231_vm0, %v1223_v60  ;;  %v1186_v54 = vadd.f32 %v1154_v43, %v990_v29  ;;  %v796_v39 = vadd.f32 %v764_v55, %v600_v1  ;;  %v773_v1 = vadd.f32 %v741_v21, %v577_v53  ;;  %v6189_v29 = vld [vmem:[#allocation7_spill] sm:$0xff] }
 0x163   : > { %v729_v35 = vpop.permute.xlu0 %728  ;;  %v579_v55 = vmul.f32 %v3969_v30, %v6189_v29 }
 0x164   : > { %v1225_v27 = vadd.f32 %v3999_v18, %v1186_v54  ;;  %v992_v49 = vadd.f32 %v960_v28, %v796_v39  ;;  %v766_v26 = vmul.f32 %v3972_v14, %v729_v35  ;;  %v1001_v52 = vpop.permute.xlu1 %1000 }
 0x165   : > { %v1128_v40 = vmul.f32 %v3981_v50, %v1001_v52  ;;  %v775_v35 = vadd.f32 %v743_v48, %v579_v55  ;;  %v6191_v52 = vld [vmem:[#allocation8_spill] sm:$0xff] }
 0x166   : > { %1259 = vst.msk [vmem:[#allocation2 + $0xe8] sm:$0xff] %vm1231_vm0, %v1225_v27  ;;  %v1188_v15 = vadd.f32 %v1156_v12, %v992_v49  ;;  %v798_v41 = vadd.f32 %v766_v26, %v602_v9  ;;  %v6190_v12 = vld [vmem:[#allocation22_spill] sm:$0xff]  ;;  %v581_v57 = vmul.f32 %v3969_v30, %v6191_v52 }
 0x167   : > { %v4137_v22 = vpop.permute.xlu0 %1362  ;;  %v745_v27 = vmul.f32 %v3972_v14, %v6190_v12 }
 0x168   : > { %v1227_v58 = vadd.f32 %v3999_v18, %v1188_v15  ;;  %v994_v45 = vadd.f32 %v962_v7, %v798_v41  ;;  %v1005_v25 = vpop.permute.xlu1 %1004 }
 0x169   : > { %v1129_v19 = vmul.f32 %v3981_v50, %v1005_v25 }
 0x16a   : > { %1261 = vst.msk [vmem:[#allocation2 + $0xf8] sm:$0xff] %vm1231_vm0, %v1227_v58  ;;  %v1190_v8 = vadd.f32 %v1158_v33, %v994_v45  ;;  %v777_v33 = vadd.f32 %v745_v27, %v581_v57  ;;  %v6192_v58 = vld [vmem:[#allocation23_spill] sm:$0xff] }
 0x16b   : > { %v1161_v59 = vadd.f32 %v1129_v19, %v965_v20  ;;  %v747_v45 = vmul.f32 %v3972_v14, %v6192_v58  ;;  %v6193_v20 = vld [vmem:[#allocation9_spill] sm:$0xff] }
 0x16c   : > { %v1229_v51 = vadd.f32 %v3999_v18, %v1190_v8  ;;  %v1013_v24 = vpop.permute.xlu1 %1012  ;;  %v805_v31 = vpop.permute.xlu0 %804  ;;  %v583_v19 = vmul.f32 %v3969_v30, %v6193_v20 }
 0x16d   : > { %v1200_v13 = vadd.f32 %v3999_v18, %v1161_v59  ;;  %v932_v23 = vmul.f32 %v3975_v6, %v805_v31  ;;  %v1131_v17 = vmul.f32 %v3981_v50, %v1013_v24 }
 0x16e   : > { %1263 = vst.msk [vmem:[#allocation2 + $0x108] sm:$0xff] %vm1231_vm0, %v1229_v51  ;;  %v779_v31 = vadd.f32 %v747_v45, %v583_v19 }
 0x16f   : > { %1234 = vst.msk [vmem:[#allocation2 + $0x20] sm:$0xff] %vm1231_vm0, %v1200_v13  ;;  %v964_v10 = vadd.f32 %v932_v23, %v768_v2  ;;  %v6194_v2 = vld [vmem:[#allocation24_spill] sm:$0xff] }
 0x170   : > { %v1021_v16 = vpop.permute.xlu1 %1020  ;;  %v817_v32 = vpop.permute.xlu0 %816  ;;  %v749_v0 = vmul.f32 %v3972_v14, %v6194_v2 }
 0x171   : > { %v1160_v38 = vadd.f32 %v1128_v40, %v964_v10  ;;  %v935_v4 = vmul.f32 %v3975_v6, %v817_v32  ;;  %v1133_v28 = vmul.f32 %v3981_v50, %v1021_v16  ;;  %v585_v40 = vmul.f32 %v3969_v30, %v6195_v46 }
 0x173   : > { %v1199_v42 = vadd.f32 %v3999_v18, %v1160_v38  ;;  %v967_v47 = vadd.f32 %v935_v4, %v771_v56  ;;  %v781_v21 = vadd.f32 %v749_v0, %v585_v40  ;;  %v6196_v38 = vld [vmem:[#allocation25_spill] sm:$0xff] }
 0x174   : > { %v1029_v11 = vpop.permute.xlu1 %1028  ;;  %v825_v44 = vpop.permute.xlu0 %824  ;;  %v751_v4 = vmul.f32 %v3972_v14, %v6196_v38 }
 0x175   : > { %1233 = vst.msk [vmem:[#allocation2 + $0x18] sm:$0xff] %vm1231_vm0, %v1199_v42  ;;  %v1163_v43 = vadd.f32 %v1131_v17, %v967_v47  ;;  %v937_v60 = vmul.f32 %v3975_v6, %v825_v44  ;;  %v1135_v34 = vmul.f32 %v3981_v50, %v1029_v11  ;;  %v6197_v17 = vld [vmem:[#allocation11_spill] sm:$0xff] }
 0x176   : > { %v587_v42 = vmul.f32 %v3969_v30, %v6197_v17 }
 0x177   : > { %v1202_v54 = vadd.f32 %v3999_v18, %v1163_v43  ;;  %v969_v39 = vadd.f32 %v937_v60, %v773_v1  ;;  %v6198_v43 = vld [vmem:[#allocation26_spill] sm:$0xff] }
 0x178   : > { %v1037_v9 = vpop.permute.xlu1 %1036  ;;  %v833_v3 = vpop.permute.xlu0 %832  ;;  %v783_v48 = vadd.f32 %v751_v4, %v587_v42  ;;  %v753_v60 = vmul.f32 %v3972_v14, %v6198_v43 }
 0x179   : > { %1236 = vst.msk [vmem:[#allocation2 + $0x30] sm:$0xff] %vm1231_vm0, %v1202_v54  ;;  %v1165_v49 = vadd.f32 %v1133_v28, %v969_v39  ;;  %v939_v26 = vmul.f32 %v3975_v6, %v833_v3  ;;  %v1137_v8 = vmul.f32 %v3981_v50, %v1037_v9  ;;  %v6199_v28 = vld [vmem:[#allocation12_spill] sm:$0xff] }
 0x17a   : > { %v589_v54 = vmul.f32 %v3969_v30, %v6199_v28 }
 0x17b   : > { %v1204_v7 = vadd.f32 %v3999_v18, %v1165_v49  ;;  %v971_v15 = vadd.f32 %v939_v26, %v775_v35  ;;  %v6200_v49 = vld [vmem:[#allocation27_spill] sm:$0xff] }
 0x17c   : > { %v1045_v41 = vpop.permute.xlu1 %1044  ;;  %v841_v5 = vpop.permute.xlu0 %840  ;;  %v785_v27 = vadd.f32 %v753_v60, %v589_v54  ;;  %v755_v26 = vmul.f32 %v3972_v14, %v6200_v49 }
 0x17d   : > { %1238 = vst.msk [vmem:[#allocation2 + $0x40] sm:$0xff] %vm1231_vm0, %v1204_v7  ;;  %v1167_v25 = vadd.f32 %v1135_v34, %v971_v15  ;;  %v941_v36 = vmul.f32 %v3975_v6, %v841_v5  ;;  %v1139_v10 = vmul.f32 %v3981_v50, %v1045_v41  ;;  %v6201_v34 = vld [vmem:[#allocation13_spill] sm:$0xff] }
 0x17e   : > { %v591_v7 = vmul.f32 %v3969_v30, %v6201_v34 }
 0x17f   : > { %v1206_v37 = vadd.f32 %v3999_v18, %v1167_v25  ;;  %v973_v59 = vadd.f32 %v941_v36, %v777_v33  ;;  %v6202_v25 = vld [vmem:[#allocation28_spill] sm:$0xff] }
 0x180   : > { %v1053_v51 = vpop.permute.xlu1 %1052  ;;  %v849_v24 = vpop.permute.xlu0 %848  ;;  %v787_v45 = vadd.f32 %v755_v26, %v591_v7  ;;  %v757_v36 = vmul.f32 %v3972_v14, %v6202_v25 }
 0x181   : > { %1240 = vst.msk [vmem:[#allocation2 + $0x50] sm:$0xff] %vm1231_vm0, %v1206_v37  ;;  %v1169_v13 = vadd.f32 %v1137_v8, %v973_v59  ;;  %v943_v23 = vmul.f32 %v3975_v6, %v849_v24  ;;  %v1141_v47 = vmul.f32 %v3981_v50, %v1053_v51  ;;  %v6203_v8 = vld [vmem:[#allocation14_spill] sm:$0xff] }
 0x182   : > { %v593_v37 = vmul.f32 %v3969_v30, %v6203_v8 }
 0x183   : > { %v1208_v16 = vadd.f32 %v3999_v18, %v1169_v13  ;;  %v975_v32 = vadd.f32 %v943_v23, %v779_v31  ;;  %v6204_v13 = vld [vmem:[#allocation29_spill] sm:$0xff] }
 0x184   : > { %v1061_v56 = vpop.permute.xlu1 %1060  ;;  %v857_v61 = vpop.permute.xlu0 %856  ;;  %v789_v0 = vadd.f32 %v757_v36, %v593_v37  ;;  %v759_v23 = vmul.f32 %v3972_v14, %v6204_v13 }
 0x185   : > { %1242 = vst.msk [vmem:[#allocation2 + $0x60] sm:$0xff] %vm1231_vm0, %v1208_v16  ;;  %v1171_v62 = vadd.f32 %v1139_v10, %v975_v32  ;;  %v945_v53 = vmul.f32 %v3975_v6, %v857_v61  ;;  %v1143_v39 = vmul.f32 %v3981_v50, %v1061_v56  ;;  %v6205_v10 = vld [vmem:[#allocation15_spill] sm:$0xff] }
 0x186   : > { %v595_v16 = vmul.f32 %v3969_v30, %v6205_v10 }
 0x187   : > { %v1210_v11 = vadd.f32 %v3999_v18, %v1171_v62  ;;  %v977_v44 = vadd.f32 %v945_v53, %v781_v21  ;;  %v6206_v62 = vld [vmem:[#allocation30_spill] sm:$0xff] }
 0x188   : > { %v1069_v1 = vpop.permute.xlu1 %1068  ;;  %v865_v63 = vpop.permute.xlu0 %864  ;;  %v791_v4 = vadd.f32 %v759_v23, %v595_v16  ;;  %v761_v53 = vmul.f32 %v3972_v14, %v6206_v62  ;;  %v1464_v16 = vld [vmem:[#allocation2 + $0x68] sm:$0xff] }
 0x189   : > { %1244 = vst.msk [vmem:[#allocation2 + $0x70] sm:$0xff] %vm1231_vm0, %v1210_v11  ;;  %v1173_v29 = vadd.f32 %v1141_v47, %v977_v44  ;;  %v947_v55 = vmul.f32 %v3975_v6, %v865_v63  ;;  %v1145_v15 = vmul.f32 %v3981_v50, %v1069_v1  ;;  %v6207_v47 = vld [vmem:[#allocation16_spill] sm:$0xff] }
 0x18a   : > { %v597_v11 = vmul.f32 %v3969_v30, %v6207_v47 }
 0x18b   : > { %v1212_v9 = vadd.f32 %v3999_v18, %v1173_v29  ;;  %v979_v3 = vadd.f32 %v947_v55, %v783_v48  ;;  %v6208_v29 = vld [vmem:[#allocation31_spill] sm:$0xff] }
 0x18c   : > { %v1077_v35 = vpop.permute.xlu1 %1076  ;;  %v873_v12 = vpop.permute.xlu0 %872  ;;  %v793_v60 = vadd.f32 %v761_v53, %v597_v11  ;;  %v763_v55 = vmul.f32 %v3972_v14, %v6208_v29  ;;  %v6216_v53 = vld [vmem:[#allocation19_spill] sm:$0xff] }
 0x18d   : > { %1246 = vst.msk [vmem:[#allocation2 + $0x80] sm:$0xff] %vm1231_vm0, %v1212_v9  ;;  %v1175_v52 = vadd.f32 %v1143_v39, %v979_v3  ;;  %v949_v57 = vmul.f32 %v3975_v6, %v873_v12  ;;  %v1147_v59 = vmul.f32 %v3981_v50, %v1077_v35  ;;  %v6209_v39 = vld [vmem:[#allocation17_spill] sm:$0xff] }
 0x18e   : > { %v599_v9 = vmul.f32 %v3969_v30, %v6209_v39 }
 0x18f   : > { %v1214_v41 = vadd.f32 %v3999_v18, %v1175_v52  ;;  %v981_v5 = vadd.f32 %v949_v57, %v785_v27  ;;  %v6210_v52 = vld [vmem:[#allocation32_spill] sm:$0xff] }
 0x190   : > { %v1085_v33 = vpop.permute.xlu1 %1084  ;;  %v881_v58 = vpop.permute.xlu0 %880  ;;  %v795_v26 = vadd.f32 %v763_v55, %v599_v9  ;;  %v765_v57 = vmul.f32 %v3972_v14, %v6210_v52 }
 0x191   : > { %1248 = vst.msk [vmem:[#allocation2 + $0x90] sm:$0xff] %vm1231_vm0, %v1214_v41  ;;  %v1177_v20 = vadd.f32 %v1145_v15, %v981_v5  ;;  %v951_v19 = vmul.f32 %v3975_v6, %v881_v58  ;;  %v1149_v32 = vmul.f32 %v3981_v50, %v1085_v33  ;;  %v6211_v15 = vld [vmem:[#allocation18_spill] sm:$0xff] }
 0x192   : > { %v601_v41 = vmul.f32 %v3969_v30, %v6211_v15 }
 0x193   : > { %v1216_v51 = vadd.f32 %v3999_v18, %v1177_v20  ;;  %v983_v24 = vadd.f32 %v951_v19, %v787_v45 }
 0x194   : > { %v1093_v31 = vpop.permute.xlu1 %1092  ;;  %v889_v2 = vpop.permute.xlu0 %888  ;;  %v797_v25 = vadd.f32 %v765_v57, %v601_v41 }
 0x195   : > { %1250 = vst.msk [vmem:[#allocation2 + $0xa0] sm:$0xff] %vm1231_vm0, %v1216_v51  ;;  %v1179_v46 = vadd.f32 %v1147_v59, %v983_v24  ;;  %v953_v40 = vmul.f32 %v3975_v6, %v889_v2  ;;  %v1151_v44 = vmul.f32 %v3981_v50, %v1093_v31  ;;  %v1266_v51 = vld [vmem:[%s5979_s3] sm:$0xf]  ;;  %v1458_v31 = vld [vmem:[#allocation2 + $0x38] sm:$0xff] }
 0x196   : > { %v4275_v10 = vmul.f32 0.75, %v1458_v31  ;;  %v4287_v11 = vmul.f32 0.25, %v1458_v31 }
 0x197   : > { %v1218_v56 = vadd.f32 %v3999_v18, %v1179_v46  ;;  %v985_v61 = vadd.f32 %v953_v40, %v789_v0  ;;  %v1460_v0 = vld [vmem:[#allocation2 + $0x48] sm:$0xff]  ;;  %v1462_v40 = vld [vmem:[#allocation2 + $0x58] sm:$0xff] }
 0x198   : > { %v1101_v21 = vpop.permute.xlu1 %1100  ;;  %v897_v38 = vpop.permute.xlu0 %896  ;;  %v4273_v46 = vld [vmem:[#allocation2 + $0x28] sm:$0xff]  ;;  %v4283_v62 = vmul.f32 0.75, %v1462_v40  ;;  %v4303_v39 = vmul.f32 0.25, %v1462_v40 }
 0x199   : > { %1252 = vst.msk [vmem:[#allocation2 + $0xb0] sm:$0xff] %vm1231_vm0, %v1218_v56  ;;  %v1181_v17 = vadd.f32 %v1149_v32, %v985_v61  ;;  %v955_v42 = vmul.f32 %v3975_v6, %v897_v38  ;;  %v1153_v3 = vmul.f32 %v3981_v50, %v1101_v21  ;;  %v4277_v56 = vmul.f32 0.75, %v1460_v0  ;;  %v6214_v61 = vld [vmem:[#allocation37_spill] sm:$0xff] }
 0x19a   : > { %v1326_v21 = vrot.slane %v1266_v51, %v6214_v61  ;;  %6215 = vst [vmem:[#allocation20_spill] sm:$0xff] %v4283_v62 }
 0x19b   : > { %v1220_v1 = vadd.f32 %v3999_v18, %v1181_v17  ;;  %v987_v63 = vadd.f32 %v955_v42, %v791_v4  ;;  %v4281_v4 = vmul.f32 0.25, %v4273_v46  ;;  %v6217_v42 = vld [vmem:[#allocation35_spill] sm:$0xff] }
 0x19c   : > { %v1109_v48 = vpop.permute.xlu1 %1108  ;;  %v905_v43 = vpop.permute.xlu0 %904  ;;  %v1310_v47 = vrot.slane %v1266_v51, %v6217_v42 }
 0x19d   : > { %1254 = vst.msk [vmem:[#allocation2 + $0xc0] sm:$0xff] %vm1231_vm0, %v1220_v1  ;;  %v1183_v28 = vadd.f32 %v1151_v44, %v987_v63  ;;  %v957_v54 = vmul.f32 %v3975_v6, %v905_v43  ;;  %v1155_v5 = vmul.f32 %v3981_v50, %v1109_v48  ;;  %v4289_v44 = vmul.f32 0.75, %v1464_v16  ;;  %v4291_v1 = vld [vmem:[#allocation2 + $0x78] sm:$0xff] }
 0x19e   : > { %v4295_v43 = vadd.f32 %v4275_v10, %v4281_v4 }
 0x19f   : > { %v1222_v35 = vadd.f32 %v3999_v18, %v1183_v28  ;;  %v989_v12 = vadd.f32 %v957_v54, %v793_v60  ;;  %6218 = vst [vmem:[#allocation6_spill] sm:$0xff] %v4289_v44  ;;  %v4297_v60 = vmul.f32 0.25, %v1460_v0  ;;  %v4301_v54 = vadd.f32 %v4277_v56, %v4287_v11 }
 0x1a0   : > { %v1117_v27 = vpop.permute.xlu1 %1116  ;;  %v913_v49 = vpop.permute.xlu0 %912  ;;  %v4318_v57 = vmul.f32 0.25, %v4295_v43 }
 0x1a1   : > { %1256 = vst.msk [vmem:[#allocation2 + $0xd0] sm:$0xff] %vm1231_vm0, %v1222_v35  ;;  %v1185_v34 = vadd.f32 %v1153_v3, %v989_v12  ;;  %v959_v7 = vmul.f32 %v3975_v6, %v913_v49  ;;  %v1157_v19 = vmul.f32 %v3981_v50, %v1117_v27  ;;  %v6213_v50 = vld [vmem:[#allocation33_spill] sm:$0xff]  ;;  %v4307_v3 = vadd.f32 %v4283_v62, %v4297_v60  ;;  %v6220_v12 = vld [vmem:[#allocation36_spill] sm:$0xff] }
 0x1a2   : > { %v1280_v13 = vrot.slane %v1266_v51, %v6213_v50  ;;  %v4310_v35 = vmul.f32 0.75, %v4291_v1  ;;  %v1328_v27 = vmul.f32 %v1326_v21, %v6220_v12  ;;  %6221 = vst [vmem:[#allocation7_spill] sm:$0xff] %v4318_v57  ;;  %v4323_v41 = vmul.f32 0.25, %v4301_v54 }
 0x1a3   : > { %v1224_v33 = vadd.f32 %v3999_v18, %v1185_v34  ;;  %v991_v58 = vadd.f32 %v959_v7, %v795_v26  ;;  %v4315_v26 = vadd.f32 %v4289_v44, %v4303_v39  ;;  %v4320_v34 = vmul.f32 0.25, %v1464_v16  ;;  %v1463_v44 = vld [vmem:[#allocation2 + $0x60] sm:$0xff] }
 0x1a4   : > { %v921_v45 = vpop.permute.xlu0 %920  ;;  %v1282_v17 = vmul.f32 %v1280_v13, %v6216_v53  ;;  %6219 = vst [vmem:[#allocation21_spill] sm:$0xff] %v4310_v35  ;;  %6223 = vst [vmem:[#allocation8_spill] sm:$0xff] %v4323_v41  ;;  %v6001_v31 = vrot.slane %v4323_v41, 1 }
 0x1a5   : > { %1258 = vst.msk [vmem:[#allocation2 + $0xe0] sm:$0xff] %vm1231_vm0, %v1224_v33  ;;  %v1187_v36 = vadd.f32 %v1155_v5, %v991_v58  ;;  %v961_v14 = vmul.f32 %v3975_v6, %v921_v45  ;;  %v1270_v20 = vpop.permute.xlu1 %1269  ;;  %v6212_v6 = vld [vmem:[#allocation34_spill] sm:$0xff]  ;;  %6222 = vst [vmem:[#allocation22_spill] sm:$0xff] %v4320_v34  ;;  %v4326_v58 = vmul.f32 0.25, %v4307_v3  ;;  %v4330_v45 = vadd.f32 %v4310_v35, %v4320_v34 }
 0x1a6   : > { %v1294_v2 = vrot.slane %v1266_v51, %v6212_v6  ;;  %v1281_v63 = vmul.f32 %v1280_v13, %v1270_v20  ;;  %v1468_v13 = vld [vmem:[#allocation2 + $0x88] sm:$0xff] }
 0x1a7   : > { %v1226_v8 = vadd.f32 %v3999_v18, %v1187_v36  ;;  %v993_v37 = vadd.f32 %v961_v14, %v797_v25  ;;  %6224 = vst [vmem:[#allocation23_spill] sm:$0xff] %v4326_v58  ;;  %v4334_v36 = vmul.f32 0.25, %v4315_v26  ;;  %v1344_v14 = vld [vmem:[%s5979_s3] sm:$0xf]  ;;  %v4350_v0 = vmul.f32 0.25, %v4330_v45 }
 0x1a8   : > { %v1301_v29 = vpop.permute.xlu0 %1300  ;;  %v4356_v40 = vrot.slane %v1344_v14, %v6217_v42  ;;  %v1457_v42 = vld [vmem:[#allocation2 + $0x30] sm:$0xff] }
 0x1a9   : > { %1260 = vst.msk [vmem:[#allocation2 + $0xf0] sm:$0xff] %vm1231_vm0, %v1226_v8  ;;  %v1189_v30 = vadd.f32 %v1157_v19, %v993_v37  ;;  %v1311_v52 = vmul.f32 %v1310_v47, %v1301_v29  ;;  %6225 = vst [vmem:[#allocation9_spill] sm:$0xff] %v4334_v36  ;;  %v1454_v19 = vld [vmem:[#allocation2 + $0x18] sm:$0xff]  ;;  %v6002_v8 = vrot.slane %v4318_v57, 1  ;;  %v1455_v37 = vld [vmem:[#allocation2 + $0x20] sm:$0xff] }
 0x1aa   : > { %v1285_v59 = vpop.permute.xlu1 %1284  ;;  %6227 = vst [vmem:[#allocation10_spill] sm:$0xff] %v4350_v0  ;;  %v1521_v16 = vmul.f32 0.25, %v1454_v19 }
 0x1ab   : > { %v1228_v24 = vadd.f32 %v3999_v18, %v1189_v30  ;;  %v1295_v38 = vmul.f32 %v1294_v2, %v1285_v59  ;;  %v4342_v30 = vmul.f32 0.75, %v4295_v43 }
 0x1ad   : > { %1262 = vst.msk [vmem:[#allocation2 + $0x100] sm:$0xff] %vm1231_vm0, %v1228_v24  ;;  %v1297_v9 = vadd.f32 %v1295_v38, %v1281_v63  ;;  %6226 = vst [vmem:[#allocation24_spill] sm:$0xff] %v4342_v30  ;;  %v1453_v24 = vld [vmem:[#allocation2 + $0x10] sm:$0xff]  ;;  %v4366_v38 = vmul.f32 0.75, %v4301_v54  ;;  %v4379_v63 = vmul.f32 0.75, %v1468_v13 }
 0x1ae   : > { %v1289_v23 = vpop.permute.xlu1 %1288  ;;  %v4371_v53 = vmul.f32 0.75, %v1453_v24  ;;  %v1520_v29 = vmul.f32 0.25, %v1453_v24  ;;  %v4419_v24 = vmul.f32 0.25, %v1455_v37 }
 0x1af   : > { %v1296_v32 = vmul.f32 %v1294_v2, %v1289_v23  ;;  %v1313_v5 = vadd.f32 %v1311_v52, %v1297_v9  ;;  %v6000_v2 = vrot.slane %v4326_v58, 1  ;;  %v4353_v23 = vrot.slane %v1344_v14, %v6212_v6  ;;  %6229 = vst [vmem:[#allocation11_spill] sm:$0xff] %v4366_v38  ;;  %6232 = vst [vmem:[#allocation27_spill] sm:$0xff] %v4379_v63 }
 0x1b0   : > { %v4369_v6 = vmul.f32 0.75, %v4307_v3  ;;  %v5998_v9 = vrot.slane %v4350_v0, 1 }
 0x1b1   : > { %v1298_v55 = vadd.f32 %v1296_v32, %v1282_v17  ;;  %v4360_v32 = vmul.f32 0.75, %v1455_v37  ;;  %v4374_v17 = vmul.f32 0.75, %v4273_v46  ;;  %v1358_v46 = vrot.slane %v1344_v14, %v6213_v50 }
 0x1b2   : > { %6230 = vst [vmem:[#allocation26_spill] sm:$0xff] %v4369_v6  ;;  %v4408_v50 = vmul.f32 0.75, %v4330_v45 }
 0x1b3   : > { %v1305_v48 = vpop.permute.xlu1 %1304  ;;  %6228 = vst [vmem:[#allocation25_spill] sm:$0xff] %v4360_v32  ;;  %v4390_v12 = vadd.f32 %v4374_v17, %v1521_v16  ;;  %v1459_v16 = vld [vmem:[#allocation2 + $0x40] sm:$0xff] }
 0x1b4   : > { %v1312_v28 = vmul.f32 %v1310_v47, %v1305_v48  ;;  %v4377_v47 = vmul.f32 0.75, %v4315_v26  ;;  %6236 = vst [vmem:[#allocation29_spill] sm:$0xff] %v4408_v50  ;;  %v4504_v34 = vmul.f32 0.25, %v1459_v16 }
 0x1b5   : > { %v4434_v37 = vmul.f32 0.25, %v4390_v12 }
 0x1b6   : > { %v1314_v49 = vadd.f32 %v1312_v28, %v1298_v55  ;;  %6231 = vst [vmem:[#allocation12_spill] sm:$0xff] %v4377_v47  ;;  %v2135_v55 = vadd.f32 %v6001_v31, %v4366_v38  ;;  %v2137_v28 = vadd.f32 %v6000_v2, %v4369_v6  ;;  %v4476_v6 = vmul.f32 0.25, %v1457_v42 }
 0x1b7   : > { %6237 = vst [vmem:[#allocation15_spill] sm:$0xff] %v4434_v37 }
 0x1b8   : > { %v1330_v7 = vadd.f32 %v1328_v27, %v1314_v49  ;;  %v1317_v15 = vpop.permute.xlu1 %1316  ;;  %v4396_v49 = vmul.f32 0.25, %v4291_v1 }
 0x1b9   : > { %v1327_v33 = vmul.f32 %v1326_v21, %v1317_v15  ;;  %v2133_v21 = vadd.f32 %v6002_v8, %v4342_v30 }
 0x1ba   : > { %v1339_v25 = vadd.f32 %v3999_v18, %v1330_v7  ;;  %6233 = vst [vmem:[#allocation13_spill] sm:$0xff] %v4396_v49  ;;  %v4399_v7 = vadd.f32 %v4360_v32, %v1520_v29  ;;  %v4417_v1 = vadd.f32 %v4379_v63, %v4396_v49  ;;  %v4488_v63 = vmul.f32 0.75, %v4390_v12 }
 0x1bb   : > { %v1329_v20 = vadd.f32 %v1327_v33, %v1313_v5  ;;  %v4403_v15 = vsel %vm1774_vm1, %v2133_v21, %v4295_v43  ;;  %v4405_v5 = vmul.f32 0.75, %v1457_v42  ;;  %v4423_v43 = vsel %vm1774_vm1, %v2135_v55, %v4301_v54 }
 0x1bc   : > { %1341 = vst.msk [vmem:[#allocation2 + $0x8] sm:$0xff] %vm1231_vm0, %v1339_v25  ;;  %6234 = vst [vmem:[#allocation28_spill] sm:$0xff] %v4399_v7  ;;  %v4410_v25 = vmul.f32 0.75, %v1454_v19  ;;  %v4427_v21 = vsel %vm1774_vm1, %v2137_v28, %v4307_v3  ;;  %v4440_v55 = vmul.f32 0.25, %v1468_v13  ;;  %v4443_v3 = vmul.f32 0.25, %v4399_v7 }
 0x1bd   : > { %v1338_v59 = vadd.f32 %v3999_v18, %v1329_v20  ;;  %v4345_v51 = vpop.permute.xlu1 %1347  ;;  %v5999_v18 = vrot.slane %v4334_v36, 1  ;;  %6235 = vst [vmem:[#allocation14_spill] sm:$0xff] %v4405_v5  ;;  %v4413_v20 = vrot.slane %v1344_v14, %v6214_v61  ;;  %v2141_v61 = vadd.f32 %v5998_v9, %v4408_v50  ;;  %6245 = vst [vmem:[#allocation33_spill] sm:$0xff] %v4488_v63 }
 0x1be   : > { %6238 = vst [vmem:[#allocation30_spill] sm:$0xff] %v4443_v3  ;;  %v4447_v28 = vadd.f32 %v4405_v5, %v4419_v24  ;;  %v4456_v2 = vmul.f32 0.25, %v4417_v1  ;;  %v1373_v13 = vmul.f32 %v4353_v23, %v4137_v22  ;;  %v4470_v8 = vmul.f32 0.75, %v4417_v1 }
 0x1bf   : > { %1340 = vst.msk [vmem:[#allocation2] sm:$0xff] %vm1231_vm0, %v1338_v59  ;;  %v2139_v27 = vadd.f32 %v5999_v18, %v4377_v47  ;;  %v1470_v59 = vld [vmem:[#allocation2 + $0x98] sm:$0xff]  ;;  %v4453_v18 = vmul.f32 0.75, %v1459_v16  ;;  %v4467_v31 = vsel %vm1774_vm1, %v2141_v61, %v4330_v45  ;;  %v1359_v22 = vmul.f32 %v1358_v46, %v4345_v51 }
 0x1c0   : > { %6239 = vst [vmem:[#allocation16_spill] sm:$0xff] %v4447_v28  ;;  %v4449_v9 = vmul.f32 0.75, %v1470_v59  ;;  %6242 = vst [vmem:[#allocation32_spill] sm:$0xff] %v4456_v2  ;;  %v2051_v45 = vrot.slane %v4443_v3, 1  ;;  %v4484_v61 = vmul.f32 0.25, %v4447_v28 }
 0x1c1   : > { %v1353_v48 = vpop.permute.xlu1 %1352  ;;  %v4438_v54 = vsel %vm1774_vm1, %v2139_v27, %v4315_v26  ;;  %6241 = vst [vmem:[#allocation17_spill] sm:$0xff] %v4453_v18  ;;  %v4458_v26 = vmul.f32 0.25, %v1470_v59  ;;  %6243 = vst [vmem:[#allocation18_spill] sm:$0xff] %v4470_v8  ;;  %v2052_v59 = vrot.slane %v4434_v37, 1  ;;  %v4492_v42 = vadd.f32 %v4453_v18, %v4476_v6 }
 0x1c2   : > { %6240 = vst [vmem:[#allocation31_spill] sm:$0xff] %v4449_v9  ;;  %6244 = vst [vmem:[#allocation34_spill] sm:$0xff] %v4484_v61  ;;  %v1360_v51 = vmul.f32 %v1358_v46, %v1353_v48  ;;  %v1375_v18 = vadd.f32 %v1373_v13, %v1359_v22  ;;  %v2054_v46 = vrot.slane %v4484_v61, 1  ;;  %v4518_v13 = vmul.f32 0.75, %v1463_v44 }
 0x1c3   : > { %v1422_v52 = vld [vmem:[#allocation2 + $0x8] sm:$0xff]  ;;  %6246 = vst [vmem:[#allocation37_spill] sm:$0xff] %v4492_v42  ;;  %v2131_v62 = vadd.f32 %v2052_v59, %v4488_v63  ;;  %v2053_v48 = vsel %vm1774_vm1, %v2051_v45, %v2052_v59  ;;  %v1465_v59 = vld [vmem:[#allocation2 + $0x70] sm:$0xff] }
 0x1c4   : > { %v1519_v33 = vmul.f32 0.25, %v1422_v52 }
 0x1c5   : > { %v2161_v45 = vsel %vm1774_vm1, %v2131_v62, %v4390_v12  ;;  %v1472_v12 = vld [vmem:[#allocation2 + $0xa8] sm:$0xff] }
 0x1c6   : > { %v1367_v14 = vpop.permute.xlu1 %1366  ;;  %v1583_v19 = vadd.f32 %v4410_v25, %v1519_v33  ;;  %v1421_v29 = vld [vmem:[#allocation2] sm:$0xff] }
 0x1c7   : > { %v1518_v52 = vmul.f32 0.25, %v1421_v29  ;;  %v1461_v29 = vld [vmem:[#allocation2 + $0x50] sm:$0xff]  ;;  %v1374_v35 = vmul.f32 %v4353_v23, %v1367_v14  ;;  %v1383_v14 = vpop.permute.xlu0 %1382 }
 0x1c8   : > { %v4451_v33 = vmul.f32 0.25, %v1583_v19  ;;  %v4472_v50 = vmul.f32 0.75, %v1583_v19  ;;  %v4494_v37 = vmul.f32 0.75, %v1461_v29  ;;  %v4530_v61 = vmul.f32 0.25, %v1461_v29 }
 0x1c9   : > { %v4463_v27 = vadd.f32 %v4371_v53, %v1518_v52 }
 0x1ca   : > { %v2049_v47 = vrot.slane %v4451_v33, 1  ;;  %v4516_v16 = vadd.f32 %v4494_v37, %v4504_v34 }
 0x1cb   : > { %v1379_v52 = vpop.permute.xlu1 %1378  ;;  %v4480_v38 = vmul.f32 0.25, %v4463_v27  ;;  %v4501_v32 = vmul.f32 0.75, %v4463_v27 }
 0x1cc   : > { %v2129_v30 = vadd.f32 %v2049_v47, %v4472_v50  ;;  %v1389_v5 = vmul.f32 %v4356_v40, %v1379_v52  ;;  %6248 = vst [vmem:[#allocation35_spill] sm:$0xff] %v4516_v16 }
 0x1cd   : > { %v2048_v3 = vrot.slane %v4480_v38, 1 }
 0x1ce   : > { %v2160_v49 = vsel %vm1774_vm1, %v2129_v30, %v1583_v19  ;;  %v4512_v19 = vmul.f32 0.25, %v4492_v42  ;;  %v1391_v22 = vadd.f32 %v1389_v5, %v1375_v18  ;;  %v1390_v18 = vmul.f32 %v4356_v40, %v1383_v14 }
 0x1cf   : > { %2210 = vrot.lane.b32.xlu1 %v2160_v49, %s3462_s14  ;;  %v2050_v23 = vsel %vm1774_vm1, %v2048_v3, %v2049_v47  ;;  %v1376_v49 = vadd.f32 %v1374_v35, %v1360_v51  ;;  %v4522_v3 = vmul.f32 0.75, %v4399_v7  ;;  %v4534_v35 = vadd.f32 %v4449_v9, %v4440_v55 }
 0x1d0   : > { %v1395_v52 = vpop.permute.xlu1 %1394  ;;  %v2128_v30 = vadd.f32 %v2050_v23, %v4501_v32  ;;  %6247 = vst [vmem:[#allocation19_spill] sm:$0xff] %v4512_v19  ;;  %v4528_v23 = vmul.f32 0.75, %v4447_v28  ;;  %v2057_v29 = vrot.slane %v4512_v19, 1  ;;  %v4544_v28 = vmul.f32 0.25, %v4516_v16  ;;  %v1467_v19 = vld [vmem:[#allocation2 + $0x80] sm:$0xff] }
 0x1d1   : > { %v1405_v47 = vmul.f32 %v4413_v20, %v1395_v52  ;;  %6249 = vst [vmem:[#allocation36_spill] sm:$0xff] %v4522_v3  ;;  %v2130_v51 = vadd.f32 %v2053_v48, %v4522_v3  ;;  %v6251_v52 = vrot.slane %v4318_v57, 1  ;;  %v4548_v7 = vadd.f32 %v4518_v13, %v4530_v61  ;;  %v3377_v48 = vld [vmem:[%s5980_s4] ss:$0 sm:$0xff] }
 0x1d2   : > { %2208 = vrot.lane.b32.xlu0 %v2128_v30, %s3462_s14  ;;  %6250 = vst [vmem:[#allocation38_spill] sm:$0xff] %v4528_v23  ;;  %6252 = vst [vmem:[#allocation39_spill] sm:$0xff] %v4544_v28  ;;  %v4550_v40 = vmul.f32 0.75, %v1465_v59  ;;  %v4562_v57 = vmul.f32 0.25, %v4534_v35  ;;  %v4564_v3 = vmul.f32 0.75, %v1472_v12 }
 0x1d3   : > { %v1407_v5 = vadd.f32 %v1405_v47, %v1391_v22  ;;  %2214 = vrot.lane.b32.xlu1 %v2161_v45, %s3462_s14  ;;  %v2056_v62 = vsel %vm1774_vm1, %v2054_v46, %v6251_v52  ;;  %6253 = vst [vmem:[#allocation40_spill] sm:$0xff] %v4548_v7  ;;  %v1775_v46 = vrot.slane %v4501_v32, 1  ;;  %v1392_v22 = vadd.f32 %v1390_v18, %v1376_v49 }
 0x1d4   : > { %v1399_v30 = vpop.permute.xlu1 %1398  ;;  %6254 = vst [vmem:[#allocation41_spill] sm:$0xff] %v4550_v40  ;;  %v4558_v45 = vmul.f32 0.25, %v1463_v44  ;;  %6255 = vst [vmem:[#allocation42_spill] sm:$0xff] %v4562_v57  ;;  %v2132_v32 = vadd.f32 %v2056_v62, %v4528_v23  ;;  %v1776_v44 = vrot.slane %v4472_v50, 1  ;;  %v6258_v49 = vrot.slane %v4323_v41, 1 }
 0x1d5   : > { %v1416_v14 = vadd.f32 %v3377_v48, %v1407_v5  ;;  %v1406_v47 = vmul.f32 %v4413_v20, %v1399_v30  ;;  %6256 = vst [vmem:[#allocation43_spill] sm:$0xff] %v4564_v3  ;;  %v4571_v20 = vmul.f32 0.75, %v4492_v42  ;;  %v4579_v30 = vmul.f32 0.25, %v4548_v7 }
 0x1d6   : > { %2212 = vrot.lane.b32.xlu0 %v2130_v51, %s3462_s14  ;;  %v2059_v18 = vsel %vm1774_vm1, %v2057_v29, %v6258_v49  ;;  %v2060_v51 = vrot.slane %v4544_v28, 1  ;;  %v1777_v50 = vsel %vm1774_vm1, %v1775_v46, %v1776_v44  ;;  %v1856_v52 = vadd.f32 %v1776_v44, %v4451_v33 }
 0x1d7   : > { %1419 = vst.msk [vmem:[#allocation2 + $0x110] sm:$0xff] %vm1231_vm0, %v1416_v14  ;;  %v1408_v5 = vadd.f32 %v1406_v47, %v1392_v22  ;;  %2218 = vrot.lane.b32.xlu1 %v4403_v15, %s3462_s14  ;;  %6257 = vst [vmem:[#allocation44_spill] sm:$0xff] %v4571_v20  ;;  %v4583_v14 = vadd.f32 %v4550_v40, %v4558_v45  ;;  %v1474_v15 = vld [vmem:[#allocation2 + $0xb8] sm:$0xff]  ;;  %v4585_v22 = vmul.f32 0.75, %v1467_v19  ;;  %v1469_v47 = vld [vmem:[#allocation2 + $0x90] sm:$0xff]  ;;  %v6262_v29 = vrot.slane %v4456_v2, 1 }
 0x1d8   : > { %6259 = vst [vmem:[#allocation45_spill] sm:$0xff] %v4579_v30  ;;  %v4594_v28 = vmul.f32 0.25, %v1472_v12  ;;  %v1855_v41 = vadd.f32 %v1777_v50, %v4480_v38  ;;  %v4601_v33 = vmul.f32 0.25, %v1465_v59  ;;  %v4605_v46 = vadd.f32 %v4564_v3, %v4458_v26 }
 0x1d9   : > { %6260 = vst [vmem:[#allocation46_spill] sm:$0xff] %v4583_v14  ;;  %v1417_v62 = vadd.f32 %v3377_v48, %v1408_v5  ;;  %6261 = vst [vmem:[#allocation47_spill] sm:$0xff] %v4585_v22  ;;  %v2143_v49 = vadd.f32 %v6262_v29, %v4470_v8  ;;  %v2134_v48 = vadd.f32 %v2059_v18, %v4571_v20  ;;  %v4607_v5 = vmul.f32 0.75, %v1474_v15  ;;  %v4624_v29 = vld [vmem:[#allocation2 + $0xf8] sm:$0xff] }
 0x1da   : > { %2216 = vrot.lane.b32.xlu0 %v2132_v32, %s3462_s14  ;;  %6263 = vst [vmem:[#allocation48_spill] sm:$0xff] %v4594_v28  ;;  %v4609_v32 = vld [vmem:[#allocation2 + $0x108] sm:$0xff]  ;;  %v6265_v12 = vrot.slane %v4326_v58, 1  ;;  %v4614_v44 = vmul.f32 0.75, %v1469_v47  ;;  %v2063_v18 = vrot.slane %v4579_v30, 1  ;;  %v4618_v59 = vmul.f32 0.25, %v4583_v14 }
 0x1db   : > { %1420 = vst.msk [vmem:[#allocation2 + $0x118] sm:$0xff] %vm1231_vm0, %v1417_v62  ;;  %2222 = vrot.lane.b32.xlu1 %v4423_v43, %s3462_s14  ;;  %6264 = vst [vmem:[#allocation49_spill] sm:$0xff] %v4607_v5  ;;  %v1920_v62 = vrot.slane %v1855_v41, 7  ;;  %v1921_v43 = vrot.slane %v1856_v52, 7  ;;  %v4622_v50 = vadd.f32 %v4585_v22, %v4601_v33  ;;  %v1471_v41 = vld [vmem:[#allocation2 + $0xa0] sm:$0xff]  ;;  %v1643_v42 = vmul.f32 0.25, %v4609_v32 }
 0x1dc   : > { %v2062_v38 = vsel %vm1774_vm1, %v2060_v51, %v6265_v12  ;;  %6266 = vst [vmem:[#allocation50_spill] sm:$0xff] %v4614_v44  ;;  %6267 = vst [vmem:[#allocation51_spill] sm:$0xff] %v4618_v59  ;;  %v4628_v51 = vmul.f32 0.75, %v4516_v16  ;;  %v4630_v12 = vmul.f32 0.25, %v1467_v19  ;;  %v2167_v8 = vsel %vm1774_vm1, %v2143_v49, %v4417_v1 }
 0x1dd   : > { %6268 = vst [vmem:[#allocation52_spill] sm:$0xff] %v4622_v50  ;;  %v4633_v52 = vsel %vm1919_vm2, %v1920_v62, %v1921_v43  ;;  %v4641_v30 = vmul.f32 0.75, %v4534_v35  ;;  %v4648_v19 = vsel %vm1919_vm2, %v4463_v27, %v1920_v62  ;;  %v4655_v58 = vmul.f32 0.25, %v1474_v15  ;;  %v4669_v62 = vld [vmem:[#allocation2 + $0xf0] sm:$0xff] }
 0x1de   : > { %2220 = vrot.lane.b32.xlu0 %v2134_v48, %s3462_s14  ;;  %6269 = vst [vmem:[#allocation53_spill] sm:$0xff] %v4628_v51  ;;  %6270 = vst [vmem:[#allocation54_spill] sm:$0xff] %v4633_v52  ;;  %v4644_v48 = vmul.f32 0.25, %v4605_v46  ;;  %v2136_v43 = vadd.f32 %v2062_v38, %v4628_v51  ;;  %v4653_v16 = vadd.f32 %v4614_v44, %v4630_v12  ;;  %v4658_v1 = vmul.f32 0.75, %v4624_v29 }
 0x1df   : > { %2226 = vrot.lane.b32.xlu1 %v4427_v21, %s3462_s14  ;;  %6271 = vst [vmem:[#allocation55_spill] sm:$0xff] %v4641_v30  ;;  %6273 = vst [vmem:[#allocation57_spill] sm:$0xff] %v4648_v19  ;;  %v1476_v21 = vld [vmem:[#allocation2 + $0xc8] sm:$0xff]  ;;  %v6276_v49 = vrot.slane %v4334_v36, 1  ;;  %v2066_v20 = vrot.slane %v4618_v59, 1  ;;  %v4665_v27 = vmul.f32 0.25, %v4622_v50 }
 0x1e0   : > { %6272 = vst [vmem:[#allocation56_spill] sm:$0xff] %v4644_v48  ;;  %6274 = vst [vmem:[#allocation58_spill] sm:$0xff] %v4653_v16  ;;  %v4667_v38 = vmul.f32 0.75, %v1471_v41  ;;  %v4671_v19 = vld [vmem:[#allocation2 + $0x100] sm:$0xff]  ;;  %v4675_v15 = vmul.f32 0.75, %v4548_v7  ;;  %v6280_v36 = vrot.slane %v4562_v57, 1  ;;  %v4685_v51 = vadd.f32 %v1643_v42, %v4658_v1 }
 0x1e1   : > { %6275 = vst [vmem:[#allocation59_spill] sm:$0xff] %v4655_v58  ;;  %v2065_v52 = vsel %vm1774_vm1, %v2063_v18, %v6276_v49  ;;  %6277 = vst [vmem:[#allocation60_spill] sm:$0xff] %v4665_v27  ;;  %v4682_v49 = vadd.f32 %v4607_v5, %v4594_v28  ;;  %v1473_v59 = vld [vmem:[#allocation2 + $0xb0] sm:$0xff]  ;;  %v4693_v23 = vmul.f32 0.25, %v1469_v47  ;;  %v4695_v63 = vmul.f32 0.75, %v1476_v21  ;;  %v1478_v5 = vld [vmem:[#allocation2 + $0xd8] sm:$0xff] }
 0x1e2   : > { %6278 = vst [vmem:[#allocation61_spill] sm:$0xff] %v4667_v38  ;;  %2224 = vrot.lane.b32.xlu0 %v2136_v43, %s3462_s14  ;;  %6279 = vst [vmem:[#allocation62_spill] sm:$0xff] %v4675_v15  ;;  %v2145_v18 = vadd.f32 %v6280_v36, %v4641_v30  ;;  %v4690_v43 = vmul.f32 0.75, %v4605_v46  ;;  %v2138_v36 = vadd.f32 %v2065_v52, %v4675_v15  ;;  %v4699_v30 = vmul.f32 0.25, %v4653_v16  ;;  %v1475_v15 = vld [vmem:[#allocation2 + $0xc0] sm:$0xff] }
 0x1e3   : > { %6281 = vst [vmem:[#allocation63_spill] sm:$0xff] %v4685_v51  ;;  %2230 = vrot.lane.b32.xlu1 %v4438_v54, %s3462_s14  ;;  %6283 = vst [vmem:[#allocation65_spill] sm:$0xff] %v4693_v23  ;;  %v4702_v42 = vmul.f32 0.75, %v4669_v62  ;;  %v1642_v54 = vmul.f32 0.25, %v4671_v19  ;;  %v6286_v3 = vrot.slane %v4350_v0, 1  ;;  %v2069_v47 = vrot.slane %v4665_v27, 1 }
 0x1e4   : > { %6282 = vst [vmem:[#allocation64_spill] sm:$0xff] %v4690_v43  ;;  %6284 = vst [vmem:[#allocation66_spill] sm:$0xff] %v4695_v63  ;;  %v4711_v7 = vadd.f32 %v4667_v38, %v4693_v23  ;;  %v4713_v52 = vmul.f32 0.75, %v1473_v59  ;;  %v4717_v9 = vmul.f32 0.75, %v4583_v14  ;;  %v4720_v28 = vmul.f32 0.25, %v4682_v49 }
 0x1e5   : > { %6285 = vst [vmem:[#allocation67_spill] sm:$0xff] %v4699_v30  ;;  %v2068_v44 = vsel %vm1774_vm1, %v2066_v20, %v6286_v3  ;;  %v4723_v0 = vmul.f32 0.25, %v4685_v51  ;;  %v4726_v3 = vadd.f32 %v1642_v54, %v4702_v42  ;;  %v4731_v20 = vmul.f32 0.75, %v4682_v49 }
 0x1e6   : > { %6287 = vst [vmem:[#allocation68_spill] sm:$0xff] %v4711_v7  ;;  %6288 = vst [vmem:[#allocation69_spill] sm:$0xff] %v4713_v52  ;;  %2228 = vrot.lane.b32.xlu0 %v2138_v36, %s3462_s14  ;;  %v4733_v27 = vmul.f32 0.25, %v1471_v41  ;;  %v4737_v36 = vadd.f32 %v4695_v63, %v4655_v58  ;;  %v4739_v14 = vmul.f32 0.75, %v1478_v5  ;;  %v2140_v38 = vadd.f32 %v2068_v44, %v4717_v9 }
 0x1e7   : > { %6289 = vst [vmem:[#allocation70_spill] sm:$0xff] %v4717_v9  ;;  %6290 = vst [vmem:[#allocation71_spill] sm:$0xff] %v4720_v28  ;;  %2234 = vrot.lane.b32.xlu1 %v4467_v31, %s3462_s14  ;;  %v2072_v22 = vrot.slane %v4699_v30, 1  ;;  %v4743_v54 = vmul.f32 0.75, %v1475_v15  ;;  %v4746_v23 = vmul.f32 0.25, %v4726_v3  ;;  %v6295_v31 = vrot.slane %v4456_v2, 1 }
 0x1e8   : > { %6291 = vst [vmem:[#allocation72_spill] sm:$0xff] %v4726_v3  ;;  %6292 = vst [vmem:[#allocation73_spill] sm:$0xff] %v4731_v20  ;;  %v4752_v51 = vmul.f32 0.25, %v4711_v7  ;;  %v4756_v63 = vadd.f32 %v4713_v52, %v4733_v27  ;;  %v4758_v58 = vmul.f32 0.25, %v1476_v21  ;;  %v4762_v44 = vmul.f32 0.75, %v4622_v50  ;;  %v1477_v9 = vld [vmem:[#allocation2 + $0xd0] sm:$0xff] }
 0x1e9   : > { %6293 = vst [vmem:[#allocation74_spill] sm:$0xff] %v4733_v27  ;;  %6294 = vst [vmem:[#allocation75_spill] sm:$0xff] %v4746_v23  ;;  %v2071_v41 = vsel %vm1774_vm1, %v2069_v47, %v6295_v31  ;;  %v4764_v30 = vmul.f32 0.25, %v1473_v59  ;;  %v2811_v47 = vrot.slane %v4746_v23, 1  ;;  %v2079_v31 = vrot.slane %v4720_v28, 1 }
 0x1ea   : > { %6296 = vst [vmem:[#allocation76_spill] sm:$0xff] %v4752_v51  ;;  %6297 = vst [vmem:[#allocation77_spill] sm:$0xff] %v4756_v63  ;;  %2232 = vrot.lane.b32.xlu0 %v2140_v38, %s3462_s14  ;;  %v4771_v52 = vmul.f32 0.25, %v4737_v36  ;;  %v4775_v21 = vadd.f32 %v4739_v14, %v4758_v58  ;;  %v1480_v38 = vld [vmem:[#allocation2 + $0xe8] sm:$0xff]  ;;  %v4778_v59 = vmul.f32 0.75, %v4726_v3  ;;  %v2142_v50 = vadd.f32 %v2071_v41, %v4762_v44 }
 0x1eb   : > { %6298 = vst [vmem:[#allocation78_spill] sm:$0xff] %v4758_v58  ;;  %6299 = vst [vmem:[#allocation79_spill] sm:$0xff] %v4762_v44  ;;  %2238 = vrot.lane.b32.xlu1 %v2167_v8, %s3462_s14  ;;  %v6301_v2 = vrot.slane %v4562_v57, 1  ;;  %v4786_v8 = vadd.f32 %v4743_v54, %v4764_v30  ;;  %v6303_v28 = vrot.slane %v4723_v0, 1  ;;  %v2075_v58 = vrot.slane %v4752_v51, 1  ;;  %v1479_v57 = vld [vmem:[#allocation2 + $0xe0] sm:$0xff] }
 0x1ec   : > { %6300 = vst [vmem:[#allocation80_spill] sm:$0xff] %v4771_v52  ;;  %v4793_v40 = vmul.f32 0.25, %v4756_v63  ;;  %v4795_v3 = vmul.f32 0.75, %v1477_v9  ;;  %v4809_v51 = vmul.f32 0.75, %v1480_v38  ;;  %v4813_v44 = vmul.f32 0.25, %v1475_v15 }
 0x1ed   : > { %v2074_v23 = vsel %vm1774_vm1, %v2072_v22, %v6301_v2  ;;  %6302 = vst [vmem:[#allocation81_spill] sm:$0xff] %v4786_v8  ;;  %v2813_v27 = vsel %vm1774_vm1, %v2811_v47, %v6303_v28  ;;  %v2168_v2 = vsel %vm1774_vm1, %v2145_v18, %v4534_v35  ;;  %v4804_v22 = vmul.f32 0.75, %v4653_v16 }
 0x1ee   : > { %6304 = vst [vmem:[#allocation82_spill] sm:$0xff] %v4793_v40  ;;  %v4798_v41 = vadd.f32 %v2813_v27, %v4778_v59  ;;  %2236 = vrot.lane.b32.xlu0 %v2142_v50, %s3462_s14  ;;  %v6306_v28 = vrot.slane %v4644_v48, 1  ;;  %v2149_v27 = vadd.f32 %v2079_v31, %v4731_v20  ;;  %v4815_v50 = vmul.f32 0.25, %v1478_v5 }
 0x1ef   : > { %6305 = vst [vmem:[#allocation83_spill] sm:$0xff] %v4804_v22  ;;  %2242 = vrot.lane.b32.xlu1 %v2168_v2, %s3462_s14  ;;  %v4819_v35 = vadd.f32 %v4374_v17, %v4287_v11  ;;  %v2144_v18 = vadd.f32 %v2074_v23, %v4804_v22  ;;  %v2082_v16 = vrot.slane %v4771_v52, 1  ;;  %v6309_v2 = vrot.slane %v4644_v48, 1 }
 0x1f0   : > { %v2147_v47 = vadd.f32 %v6306_v28, %v4690_v43  ;;  %v4824_v28 = vmul.f32 0.25, %v4786_v8  ;;  %v4827_v43 = vmul.f32 0.25, %v4775_v21  ;;  %v2078_v5 = vrot.slane %v4793_v40, 1 }
 0x1f1   : > { %v2077_v15 = vsel %vm1774_vm1, %v2075_v58, %v6309_v2  ;;  %v4835_v11 = vadd.f32 %v4795_v3, %v4813_v44  ;;  %v4837_v17 = vmul.f32 0.75, %v1479_v57  ;;  %v4843_v52 = vmul.f32 0.75, %v4711_v7 }
 0x1f2   : > { %6307 = vst [vmem:[#allocation84_spill] sm:$0xff] %v4824_v28  ;;  %6308 = vst [vmem:[#allocation85_spill] sm:$0xff] %v4827_v43  ;;  %2240 = vrot.lane.b32.xlu0 %v2144_v18, %s3462_s14  ;;  %v2169_v23 = vsel %vm1774_vm1, %v2147_v47, %v4605_v46  ;;  %v4846_v48 = vmul.f32 0.75, %v4737_v36  ;;  %v4850_v58 = vadd.f32 %v4809_v51, %v4815_v50  ;;  %v4856_v18 = vmul.f32 0.75, %v4775_v21 }
 0x1f3   : > { %6310 = vst [vmem:[#allocation86_spill] sm:$0xff] %v4835_v11  ;;  %2246 = vrot.lane.b32.xlu1 %v2169_v23, %s3462_s14  ;;  %v2170_v2 = vsel %vm1774_vm1, %v2149_v27, %v4682_v49  ;;  %v4858_v40 = vmul.f32 0.25, %v1477_v9  ;;  %v4860_v46 = vmul.f32 0.25, %v1480_v38  ;;  %v2146_v47 = vadd.f32 %v2077_v15, %v4843_v52 }
 0x1f4   : > { %6311 = vst [vmem:[#allocation87_spill] sm:$0xff] %v4846_v48  ;;  %6312 = vst [vmem:[#allocation88_spill] sm:$0xff] %v4856_v18  ;;  %v2081_v7 = vrot.slane %v4824_v28, 1  ;;  %v2085_v20 = vrot.slane %v4827_v43, 1  ;;  %v4866_v22 = vmul.f32 0.75, %v4609_v32  ;;  %v2080_v23 = vsel %vm1774_vm1, %v2078_v5, %v2079_v31 }
 0x1f5   : > { %v2151_v49 = vadd.f32 %v2082_v16, %v4846_v48  ;;  %v4871_v27 = vmul.f32 0.25, %v4835_v11  ;;  %v4875_v9 = vadd.f32 %v4837_v17, %v4858_v40  ;;  %v4879_v38 = vmul.f32 0.75, %v4756_v63 }
 0x1f6   : > { %2244 = vrot.lane.b32.xlu0 %v2146_v47, %s3462_s14  ;;  %v4882_v15 = vmul.f32 0.25, %v4850_v58  ;;  %v4886_v32 = vadd.f32 %v4658_v1, %v4860_v46  ;;  %v4889_v31 = vmul.f32 0.25, %v4624_v29  ;;  %v4892_v5 = vmul.f32 0.25, %v1479_v57 }
 0x1f7   : > { %6313 = vst [vmem:[#allocation89_spill] sm:$0xff] %v4871_v27  ;;  %6314 = vst [vmem:[#allocation90_spill] sm:$0xff] %v4875_v9  ;;  %2250 = vrot.lane.b32.xlu1 %v2170_v2, %s3462_s14  ;;  %v4895_v43 = vmul.f32 0.25, %v4819_v35  ;;  %v2148_v47 = vadd.f32 %v2080_v23, %v4879_v38  ;;  %v2083_v63 = vsel %vm1774_vm1, %v2081_v7, %v2082_v16  ;;  %v2084_v29 = vrot.slane %v4871_v27, 1 }
 0x1f8   : > { %6315 = vst [vmem:[#allocation91_spill] sm:$0xff] %v4882_v15  ;;  %v2153_v28 = vadd.f32 %v2085_v20, %v4856_v18  ;;  %v4902_v1 = vadd.f32 %v4866_v22, %v4889_v31  ;;  %v4906_v48 = vmul.f32 0.25, %v4875_v9  ;;  %v4910_v57 = vadd.f32 %v4702_v42, %v4892_v5 }
 0x1f9   : > { %v4913_v2 = vmul.f32 0.75, %v4671_v19  ;;  %v2171_v7 = vsel %vm1774_vm1, %v2151_v49, %v4737_v36  ;;  %v4919_v16 = vmul.f32 0.75, %v4786_v8  ;;  %v2088_v23 = vrot.slane %v4882_v15, 1 }
 0x1fa   : > { %6316 = vst [vmem:[#allocation92_spill] sm:$0xff] %v4906_v48  ;;  %6317 = vst [vmem:[#allocation93_spill] sm:$0xff] %v4910_v57  ;;  %2248 = vrot.lane.b32.xlu0 %v2148_v47, %s3462_s14  ;;  %v4923_v27 = vmul.f32 0.25, %v4886_v32  ;;  %v4927_v42 = vmul.f32 0.25, %v4669_v62  ;;  %v4930_v19 = vmul.f32 0.75, %v4819_v35  ;;  %v4935_v36 = vadd.f32 %v4275_v10, %v4297_v60 }
 0x1fb   : > { %6318 = vst [vmem:[#allocation94_spill] sm:$0xff] %v4919_v16  ;;  %2254 = vrot.lane.b32.xlu1 %v2171_v7, %s3462_s14  ;;  %v2150_v49 = vadd.f32 %v2083_v63, %v4919_v16  ;;  %v2172_v8 = vsel %vm1774_vm1, %v2153_v28, %v4775_v21  ;;  %v4941_v15 = vmul.f32 0.75, %v4850_v58  ;;  %v4944_v62 = vmul.f32 0.25, %v4902_v1 }
 0x1fc   : > { %6319 = vst [vmem:[#allocation95_spill] sm:$0xff] %v4923_v27  ;;  %6320 = vst [vmem:[#allocation96_spill] sm:$0xff] %v4930_v19  ;;  %v2086_v7 = vsel %vm1774_vm1, %v2084_v29, %v2085_v20  ;;  %v2087_v18 = vrot.slane %v4906_v48, 1  ;;  %v4949_v47 = vmul.f32 0.25, %v4910_v57  ;;  %v4953_v10 = vadd.f32 %v4913_v2, %v4927_v42 }
 0x1fd   : > { %6321 = vst [vmem:[#allocation97_spill] sm:$0xff] %v4941_v15  ;;  %6322 = vst [vmem:[#allocation98_spill] sm:$0xff] %v4944_v62  ;;  %v4957_v60 = vmul.f32 0.75, %v4835_v11  ;;  %v2155_v63 = vadd.f32 %v2088_v23, %v4941_v15  ;;  %v2091_v21 = vrot.slane %v4923_v27, 1  ;;  %v4963_v20 = vadd.f32 %v4410_v25, %v4281_v4  ;;  %v6330_v25 = vld [vmem:[#allocation22_spill] sm:$0xff] }
 0x1fe   : > { %6323 = vst [vmem:[#allocation99_spill] sm:$0xff] %v4949_v47  ;;  %6324 = vst [vmem:[#allocation100_spill] sm:$0xff] %v4953_v10  ;;  %2252 = vrot.lane.b32.xlu0 %v2150_v49, %s3462_s14  ;;  %v6326_v28 = vrot.slane %v4895_v43, 1  ;;  %v4972_v49 = vmul.f32 0.25, %v4935_v36  ;;  %v4976_v11 = vadd.f32 %v4277_v56, %v4303_v39  ;;  %v4980_v48 = vmul.f32 0.75, %v4886_v32 }
 0x1ff   : > { %6325 = vst [vmem:[#allocation101_spill] sm:$0xff] %v4957_v60  ;;  %2258 = vrot.lane.b32.xlu1 %v2172_v8, %s3462_s14  ;;  %v2152_v27 = vadd.f32 %v2086_v7, %v4957_v60  ;;  %v4984_v4 = vadd.f32 %v4371_v53, %v4419_v24  ;;  %v6331_v8 = vld [vmem:[#allocation20_spill] sm:$0xff]  ;;  %v2090_v15 = vrot.slane %v4949_v47, 1  ;;  %v2094_v56 = vrot.slane %v4944_v62, 1 }
 0x200   : > { %v4969_v29 = vadd.f32 %v6326_v28, %v4930_v19  ;;  %6327 = vst [vmem:[#allocation102_spill] sm:$0xff] %v4972_v49  ;;  %6328 = vst [vmem:[#allocation103_spill] sm:$0xff] %v4980_v48  ;;  %v4988_v28 = vadd.f32 %v6331_v8, %v6330_v25  ;;  %v2089_v19 = vsel %vm1774_vm1, %v2087_v18, %v2088_v23  ;;  %v4994_v39 = vmul.f32 0.25, %v4953_v10  ;;  %v6335_v23 = vld [vmem:[#allocation25_spill] sm:$0xff] }
 0x201   : > { %6329 = vst [vmem:[#allocation104_spill] sm:$0xff] %v4984_v4  ;;  %v2173_v7 = vsel %vm1774_vm1, %v2155_v63, %v4850_v58  ;;  %v5000_v53 = vmul.f32 0.75, %v4875_v9  ;;  %v2157_v24 = vadd.f32 %v2091_v21, %v4980_v48  ;;  %v5004_v25 = vmul.f32 0.25, %v4963_v20  ;;  %v6338_v58 = vld [vmem:[#allocation13_spill] sm:$0xff]  ;;  %v6339_v63 = vld [vmem:[#allocation6_spill] sm:$0xff] }
 0x202   : > { %6332 = vst [vmem:[#allocation22_spill] sm:$0xff] %v4994_v39  ;;  %2256 = vrot.lane.b32.xlu0 %v2152_v27, %s3462_s14  ;;  %v5008_v18 = vmul.f32 0.75, %v4902_v1  ;;  %v5012_v8 = vadd.f32 %v6335_v23, %v4476_v6  ;;  %v5015_v27 = vmul.f32 0.25, %v4976_v11  ;;  %v5019_v9 = vadd.f32 %v6339_v63, %v6338_v58 }
 0x203   : > { %6333 = vst [vmem:[#allocation20_spill] sm:$0xff] %v5004_v25  ;;  %2262 = vrot.lane.b32.xlu1 %v2173_v7, %s3462_s14  ;;  %v2154_v62 = vadd.f32 %v2089_v19, %v5000_v53  ;;  %v5023_v47 = vmul.f32 0.75, %v4935_v36  ;;  %v2776_v7 = vrot.slane %v4972_v49, 1  ;;  %v5027_v48 = vmul.f32 0.25, %v4988_v28  ;;  %v6342_v49 = vld [vmem:[#allocation14_spill] sm:$0xff] }
 0x204   : > { %6334 = vst [vmem:[#allocation105_spill] sm:$0xff] %v5008_v18  ;;  %6336 = vst [vmem:[#allocation25_spill] sm:$0xff] %v5012_v8  ;;  %v2092_v6 = vsel %vm1774_vm1, %v2090_v15, %v2091_v21  ;;  %v2159_v23 = vadd.f32 %v2094_v56, %v5008_v18  ;;  %v2093_v60 = vrot.slane %v4994_v39, 1  ;;  %v5033_v16 = vmul.f32 0.25, %v4984_v4 }
 0x205   : > { %6337 = vst [vmem:[#allocation106_spill] sm:$0xff] %v5015_v27  ;;  %6340 = vst [vmem:[#allocation13_spill] sm:$0xff] %v5027_v48  ;;  %v2174_v19 = vsel %vm1774_vm1, %v2157_v24, %v4886_v32  ;;  %v5039_v58 = vmul.f32 0.75, %v4910_v57  ;;  %v2770_v63 = vrot.slane %v5004_v25, 1  ;;  %v5044_v15 = vadd.f32 %v6342_v49, %v4504_v34  ;;  %v6347_v34 = vld [vmem:[#allocation17_spill] sm:$0xff] }
 0x206   : > { %2260 = vrot.lane.b32.xlu0 %v2154_v62, %s3462_s14  ;;  %v5048_v21 = vmul.f32 0.25, %v5012_v8  ;;  %v5051_v39 = vmul.f32 0.75, %v4976_v11  ;;  %v2779_v62 = vrot.slane %v5015_v27, 1  ;;  %v5055_v32 = vmul.f32 0.25, %v5019_v9 }
 0x207   : > { %6341 = vst [vmem:[#allocation6_spill] sm:$0xff] %v5039_v58  ;;  %6343 = vst [vmem:[#allocation14_spill] sm:$0xff] %v5044_v15  ;;  %2266 = vrot.lane.b32.xlu1 %v2174_v19, %s3462_s14  ;;  %v2156_v24 = vadd.f32 %v2092_v6, %v5039_v58  ;;  %v5059_v57 = vmul.f32 0.75, %v4963_v20  ;;  %v5063_v49 = vadd.f32 %v6347_v34, %v4530_v61  ;;  %v2769_v18 = vrot.slane %v5033_v16, 1 }
 0x208   : > { %6344 = vst [vmem:[#allocation107_spill] sm:$0xff] %v5048_v21  ;;  %6345 = vst [vmem:[#allocation108_spill] sm:$0xff] %v5051_v39  ;;  %v5067_v19 = vadd.f32 %v4494_v37, %v4558_v45  ;;  %v2175_v25 = vsel %vm1774_vm1, %v2159_v23, %v4902_v1  ;;  %v2095_v27 = vsel %vm1774_vm1, %v2093_v60, %v2094_v56  ;;  %v2782_v6 = vrot.slane %v5027_v48, 1  ;;  %v6353_v56 = vld [vmem:[#allocation21_spill] sm:$0xff] }
 0x209   : > { %6346 = vst [vmem:[#allocation109_spill] sm:$0xff] %v5055_v32  ;;  %6348 = vst [vmem:[#allocation17_spill] sm:$0xff] %v5063_v49  ;;  %v5076_v58 = vmul.f32 0.75, %v4953_v10  ;;  %v2850_v61 = vadd.f32 %v2770_v63, %v5059_v57  ;;  %v5080_v34 = vmul.f32 0.25, %v5044_v15  ;;  %v5084_v37 = vadd.f32 %v4518_v13, %v4601_v33 }
 0x20a   : > { %6349 = vst [vmem:[#allocation110_spill] sm:$0xff] %v5067_v19  ;;  %2264 = vrot.lane.b32.xlu0 %v2156_v24, %s3462_s14  ;;  %v2772_v45 = vrot.slane %v5048_v21, 1  ;;  %v5089_v1 = vmul.f32 0.75, %v4988_v28  ;;  %v2785_v60 = vrot.slane %v5055_v32, 1  ;;  %v5094_v23 = vadd.f32 %v6353_v56, %v4440_v55 }
 0x20b   : > { %6350 = vst [vmem:[#allocation111_spill] sm:$0xff] %v5080_v34  ;;  %6351 = vst [vmem:[#allocation112_spill] sm:$0xff] %v5084_v37  ;;  %2270 = vrot.lane.b32.xlu1 %v2175_v25, %s3462_s14  ;;  %v2158_v24 = vadd.f32 %v2095_v27, %v5076_v58  ;;  %v2771_v48 = vsel %vm1774_vm1, %v2769_v18, %v2770_v63  ;;  %v5099_v13 = vmul.f32 0.25, %v5063_v49  ;;  %v5102_v33 = vmul.f32 0.25, %v5067_v19 }
 0x20c   : > { %6352 = vst [vmem:[#allocation113_spill] sm:$0xff] %v5089_v1  ;;  %v5105_v25 = vmul.f32 0.75, %v4984_v4  ;;  %v2854_v10 = vadd.f32 %v2776_v7, %v5023_v47  ;;  %v2856_v32 = vadd.f32 %v2779_v62, %v5051_v39  ;;  %v5110_v55 = vmul.f32 0.75, %v5019_v9 }
 0x20d   : > { %6354 = vst [vmem:[#allocation21_spill] sm:$0xff] %v5099_v13  ;;  %6355 = vst [vmem:[#allocation114_spill] sm:$0xff] %v5102_v33  ;;  %v2881_v18 = vsel %vm1774_vm1, %v2850_v61, %v4963_v20  ;;  %v2775_v27 = vrot.slane %v5080_v34, 1  ;;  %v2858_v63 = vadd.f32 %v2782_v6, %v5089_v1  ;;  %v5118_v56 = vmul.f32 0.25, %v5084_v37 }
 0x20e   : > { %6356 = vst [vmem:[#allocation115_spill] sm:$0xff] %v5110_v55  ;;  %2268 = vrot.lane.b32.xlu0 %v2158_v24, %s3462_s14  ;;  %v2849_v4 = vadd.f32 %v2771_v48, %v5105_v25  ;;  %v2882_v39 = vsel %vm1774_vm1, %v4969_v29, %v4819_v35  ;;  %v6358_v24 = vrot.slane %v4895_v43, 1  ;;  %v2860_v20 = vadd.f32 %v2785_v60, %v5110_v55 }
 0x20f   : > { %6357 = vst [vmem:[#allocation116_spill] sm:$0xff] %v5118_v56  ;;  %2931 = vrot.lane.b32.xlu1 %v2881_v18, %s3462_s14  ;;  %v2778_v61 = vrot.slane %v5099_v13, 1  ;;  %v2781_v1 = vrot.slane %v5102_v33, 1  ;;  %v5132_v34 = vmul.f32 0.25, %v5094_v23  ;;  %v5136_v48 = vadd.f32 %v4795_v3, %v4892_v5 }
 0x210   : > { %v2774_v21 = vsel %vm1774_vm1, %v2772_v45, %v6358_v24  ;;  %v5139_v18 = vmul.f32 0.75, %v5012_v8  ;;  %v2883_v35 = vsel %vm1774_vm1, %v2854_v10, %v4935_v36  ;;  %v2884_v29 = vsel %vm1774_vm1, %v2856_v32, %v4976_v11  ;;  %v6361_v45 = vld [vmem:[#allocation27_spill] sm:$0xff]  ;;  %v6381_v8 = vld [vmem:[#allocation50_spill] sm:$0xff] }
 0x211   : > { %6359 = vst [vmem:[#allocation117_spill] sm:$0xff] %v5132_v34  ;;  %6360 = vst [vmem:[#allocation118_spill] sm:$0xff] %v5136_v48  ;;  %v5147_v24 = vadd.f32 %v6361_v45, %v4458_v26  ;;  %v2777_v33 = vsel %vm1774_vm1, %v2775_v27, %v2776_v7  ;;  %v2885_v3 = vsel %vm1774_vm1, %v2858_v63, %v4988_v28  ;;  %v2784_v5 = vrot.slane %v5118_v56, 1 }
 0x212   : > { %2929 = vrot.lane.b32.xlu0 %v2849_v4, %s3462_s14  ;;  %v5156_v55 = vadd.f32 %v4739_v14, %v4860_v46  ;;  %v2851_v11 = vadd.f32 %v2774_v21, %v5139_v18  ;;  %v5161_v26 = vmul.f32 0.75, %v5044_v15  ;;  %v5165_v36 = vsel %vm1774_vm1, %v2860_v20, %v5019_v9 }
 0x213   : > { %2935 = vrot.lane.b32.xlu1 %v2882_v39, %s3462_s14  ;;  %v5169_v10 = vadd.f32 %v4837_v17, %v4927_v42  ;;  %v2780_v4 = vsel %vm1774_vm1, %v2778_v61, %v2779_v62  ;;  %v2783_v14 = vsel %vm1774_vm1, %v2781_v1, %v2782_v6  ;;  %v6114_v46 = vrot.slane %v5132_v34, 1  ;;  %v6365_v62 = vld [vmem:[#allocation41_spill] sm:$0xff] }
 0x214   : > { %v5175_v28 = vmul.f32 0.75, %v5136_v48  ;;  %v2853_v39 = vadd.f32 %v2777_v33, %v5161_v26  ;;  %v5179_v7 = vmul.f32 0.75, %v5063_v49  ;;  %v5182_v9 = vmul.f32 0.75, %v5067_v19  ;;  %v1517_v1 = vld [vmem:[#allocation2 + $0x118] sm:$0xff]  ;;  %v1516_v33 = vld [vmem:[#allocation2 + $0x110] sm:$0xff]  ;;  %v6374_v19 = vld [vmem:[#allocation47_spill] sm:$0xff] }
 0x215   : > { %6362 = vst [vmem:[#allocation27_spill] sm:$0xff] %v5169_v10  ;;  %v5186_v17 = vadd.f32 %v4809_v51, %v4889_v31  ;;  %v2786_v42 = vsel %vm1774_vm1, %v2784_v5, %v2785_v60  ;;  %v5191_v21 = vmul.f32 0.75, %v5094_v23  ;;  %v5195_v32 = vadd.f32 %v6365_v62, %v4630_v12  ;;  %v6372_v62 = vld [vmem:[#allocation63_spill] sm:$0xff] }
 0x216   : > { %6363 = vst [vmem:[#allocation119_spill] sm:$0xff] %v5182_v9  ;;  %2933 = vrot.lane.b32.xlu0 %v2851_v11, %s3462_s14  ;;  %v5198_v6 = vmul.f32 0.75, %v5156_v55  ;;  %v2855_v51 = vadd.f32 %v2780_v4, %v5179_v7  ;;  %v2857_v31 = vadd.f32 %v2783_v14, %v5182_v9  ;;  %v5204_v60 = vmul.f32 0.75, %v5084_v37 }
 0x217   : > { %6364 = vst [vmem:[#allocation120_spill] sm:$0xff] %v5191_v21  ;;  %6366 = vst [vmem:[#allocation41_spill] sm:$0xff] %v5195_v32  ;;  %2939 = vrot.lane.b32.xlu1 %v2883_v35, %s3462_s14  ;;  %v5207_v27 = vmul.f32 0.75, %v5169_v10  ;;  %v2862_v12 = vadd.f32 %v6114_v46, %v5191_v21  ;;  %v5213_v63 = vmul.f32 0.25, %v5147_v24  ;;  %v5216_v20 = vmul.f32 0.75, %v5147_v24 }
 0x218   : > { %6367 = vst [vmem:[#allocation121_spill] sm:$0xff] %v5198_v6  ;;  %6368 = vst [vmem:[#allocation122_spill] sm:$0xff] %v5204_v60  ;;  %v2533_v61 = vrot.slane %v5175_v28, 1  ;;  %v2859_v35 = vadd.f32 %v2786_v42, %v5204_v60  ;;  %v5221_v45 = vmul.f32 0.75, %v5186_v17  ;;  %v1645_v5 = vmul.f32 0.25, %v1517_v1  ;;  %v6373_v42 = vld [vmem:[#allocation65_spill] sm:$0xff] }
 0x219   : > { %6369 = vst [vmem:[#allocation123_spill] sm:$0xff] %v5213_v63  ;;  %6370 = vst [vmem:[#allocation124_spill] sm:$0xff] %v5216_v20  ;;  %v1644_v11 = vmul.f32 0.25, %v1516_v33  ;;  %v5225_v4 = vmul.f32 0.25, %v5195_v32  ;;  %v5228_v14 = vmul.f32 0.75, %v5195_v32  ;;  %v5231_v46 = vmul.f32 0.75, %v6372_v62 }
 0x21a   : > { %2937 = vrot.lane.b32.xlu0 %v2853_v39, %s3462_s14  ;;  %v6126_v37 = vrot.slane %v5198_v6, 1  ;;  %v5237_v49 = vadd.f32 %v6374_v19, %v6373_v42  ;;  %v6376_v1 = vld [vmem:[#allocation48_spill] sm:$0xff]  ;;  %v6377_v33 = vld [vmem:[#allocation31_spill] sm:$0xff]  ;;  %v5244_v56 = vmul.f32 0.25, %v5136_v48  ;;  %v2536_v32 = vrot.slane %v5207_v27, 1 }
 0x21b   : > { %6371 = vst [vmem:[#allocation125_spill] sm:$0xff] %v5225_v4  ;;  %2943 = vrot.lane.b32.xlu1 %v2884_v29, %s3462_s14  ;;  %v5241_v39 = vadd.f32 %v6377_v33, %v6376_v1  ;;  %v2791_v21 = vrot.slane %v5213_v63, 1  ;;  %v5249_v15 = vmul.f32 0.25, %v5186_v17  ;;  %v2539_v29 = vrot.slane %v4778_v59, 1  ;;  %v6380_v59 = vld [vmem:[#allocation74_spill] sm:$0xff] }
 0x21c   : > { %6375 = vst [vmem:[#allocation63_spill] sm:$0xff] %v5237_v49  ;;  %v2535_v19 = vsel %vm1774_vm1, %v2533_v61, %v6126_v37  ;;  %v5256_v42 = vadd.f32 %v1645_v5, %v4866_v22  ;;  %v5259_v1 = vadd.f32 %v1644_v11, %v4913_v2  ;;  %v2537_v48 = vrot.slane %v5221_v45, 1 }
 0x21d   : > { %v5262_v33 = vadd.f32 %v2535_v19, %v5244_v56  ;;  %v2787_v63 = vrot.slane %v5225_v4, 1  ;;  %v5269_v60 = vadd.f32 %v6381_v8, %v6380_v59  ;;  %v5272_v61 = vmul.f32 0.25, %v5169_v10 }
 0x21e   : > { %6378 = vst [vmem:[#allocation65_spill] sm:$0xff] %v5259_v1  ;;  %2941 = vrot.lane.b32.xlu0 %v2855_v51, %s3462_s14  ;;  %v2540_v22 = vrot.slane %v5231_v46, 1  ;;  %v5277_v2 = vmul.f32 0.25, %v5237_v49  ;;  %v5280_v5 = vmul.f32 0.25, %v5241_v39  ;;  %v2604_v51 = vadd.f32 %v2537_v48, %v5249_v15 }
 0x21f   : > { %6379 = vst [vmem:[#allocation47_spill] sm:$0xff] %v5262_v33  ;;  %6382 = vst [vmem:[#allocation48_spill] sm:$0xff] %v5269_v60  ;;  %2947 = vrot.lane.b32.xlu1 %v2885_v3, %s3462_s14  ;;  %v2538_v11 = vsel %vm1774_vm1, %v2536_v32, %v2537_v48  ;;  %v2887_v8 = vsel %vm1774_vm1, %v2862_v12, %v5094_v23  ;;  %v2864_v37 = vadd.f32 %v2791_v21, %v5216_v20  ;;  %v6386_v23 = vld [vmem:[#allocation59_spill] sm:$0xff] }
 0x220   : > { %6383 = vst [vmem:[#allocation31_spill] sm:$0xff] %v5277_v2  ;;  %6384 = vst [vmem:[#allocation74_spill] sm:$0xff] %v5280_v5  ;;  %v5287_v19 = vadd.f32 %v2538_v11, %v5272_v61  ;;  %v2606_v59 = vadd.f32 %v2540_v22, %v4723_v0  ;;  %v2541_v3 = vsel %vm1774_vm1, %v2539_v29, %v2540_v22  ;;  %v5293_v10 = vmul.f32 0.75, %v5237_v49  ;;  %v6387_v32 = vld [vmem:[#allocation43_spill] sm:$0xff] }
 0x221   : > { %v5296_v33 = vmul.f32 0.75, %v5256_v42  ;;  %v5299_v48 = vmul.f32 0.75, %v5259_v1  ;;  %v5304_v12 = vadd.f32 %v6387_v32, %v6386_v23  ;;  %v2681_v11 = vrot.slane %v2604_v51, 7  ;;  %v6388_v22 = vld [vmem:[#allocation75_spill] sm:$0xff]  ;;  %v6390_v51 = vld [vmem:[#allocation61_spill] sm:$0xff] }
 0x222   : > { %6385 = vst [vmem:[#allocation50_spill] sm:$0xff] %v5287_v19  ;;  %2945 = vrot.lane.b32.xlu0 %v2857_v31, %s3462_s14  ;;  %v6136_v29 = vrot.slane %v5287_v19, 7  ;;  %v2605_v4 = vadd.f32 %v2541_v3, %v6388_v22  ;;  %v6389_v49 = vrot.slane %v5132_v34, 1  ;;  %v2790_v13 = vrot.slane %v5277_v2, 1  ;;  %v6393_v22 = vld [vmem:[#allocation78_spill] sm:$0xff] }
 0x223   : > { %2951 = vrot.lane.b32.xlu1 %v5165_v36, %s3462_s14  ;;  %v2794_v31 = vrot.slane %v5280_v5, 1  ;;  %v5316_v9 = vmul.f32 0.25, %v5269_v60  ;;  %v5320_v23 = vadd.f32 %v6390_v51, %v4764_v30  ;;  %v2684_v36 = vrot.slane %v2606_v59, 7  ;;  %v6396_v59 = vld [vmem:[#allocation72_spill] sm:$0xff] }
 0x224   : > { %v2789_v20 = vsel %vm1774_vm1, %v2787_v63, %v6389_v49  ;;  %v5325_v3 = vsel %vm1919_vm2, %v6136_v29, %v2681_v11  ;;  %v2683_v32 = vrot.slane %v2605_v4, 7  ;;  %v6394_v49 = vld [vmem:[#allocation49_spill] sm:$0xff]  ;;  %v5330_v2 = vmul.f32 0.25, %v5256_v42 }
 0x225   : > { %6391 = vst [vmem:[#allocation59_spill] sm:$0xff] %v5320_v23  ;;  %6392 = vst [vmem:[#allocation43_spill] sm:$0xff] %v5325_v3  ;;  %v1667_v63 = vadd.f32 %v6394_v49, %v6393_v22  ;;  %v2542_v5 = vrot.slane %v5299_v48, 1  ;;  %v2543_v34 = vrot.slane %v5296_v33, 1  ;;  %v5336_v30 = vmul.f32 0.25, %v5304_v12  ;;  %v6406_v3 = vld [vmem:[#allocation33_spill] sm:$0xff] }
 0x226   : > { %2949 = vrot.lane.b32.xlu0 %v2859_v35, %s3462_s14  ;;  %v5339_v11 = vmul.f32 0.25, %v5259_v1  ;;  %v5342_v4 = vsel %vm1919_vm2, %v2683_v32, %v2684_v36  ;;  %v5346_v51 = vsel %vm1919_vm2, %v6396_v59, %v2683_v32  ;;  %v2888_v22 = vsel %vm1774_vm1, %v2864_v37, %v5147_v24  ;;  %v6399_v24 = vld [vmem:[#allocation69_spill] sm:$0xff] }
 0x227   : > { %6395 = vst [vmem:[#allocation75_spill] sm:$0xff] %v5342_v4  ;;  %6397 = vst [vmem:[#allocation61_spill] sm:$0xff] %v5346_v51  ;;  %2955 = vrot.lane.b32.xlu1 %v2887_v8, %s3462_s14  ;;  %v5352_v35 = vmul.f32 0.75, %v5241_v39  ;;  %v2544_v49 = vsel %vm1774_vm1, %v2542_v5, %v2543_v34  ;;  %v2608_v29 = vadd.f32 %v2543_v34, %v5330_v2  ;;  %v2793_v4 = vrot.slane %v5316_v9, 1 }
 0x228   : > { %v2861_v1 = vadd.f32 %v2789_v20, %v5228_v14  ;;  %v2792_v36 = vsel %vm1774_vm1, %v2790_v13, %v2791_v21  ;;  %v5360_v32 = vadd.f32 %v2544_v49, %v5339_v11  ;;  %v5364_v37 = vmul.f32 0.25, %v5320_v23  ;;  %v6401_v21 = vld [vmem:[#allocation66_spill] sm:$0xff] }
 0x229   : > { %v2866_v8 = vadd.f32 %v2794_v31, %v5352_v35  ;;  %v5368_v59 = vadd.f32 %v6399_v24, %v4813_v44  ;;  %v2687_v5 = vrot.slane %v2608_v29, 7  ;;  %v2797_v34 = vrot.slane %v5336_v30, 1 }
 0x22a   : > { %6398 = vst [vmem:[#allocation78_spill] sm:$0xff] %v5360_v32  ;;  %2953 = vrot.lane.b32.xlu0 %v2861_v1, %s3462_s14  ;;  %v5372_v13 = vmul.f32 0.25, %v1667_v63  ;;  %v1669_v20 = vadd.f32 %v6401_v21, %v4815_v50  ;;  %v6139_v49 = vrot.slane %v5360_v32, 7  ;;  %v2863_v51 = vadd.f32 %v2792_v36, %v5293_v10 }
 0x22b   : > { %6400 = vst [vmem:[#allocation49_spill] sm:$0xff] %v5368_v59  ;;  %2959 = vrot.lane.b32.xlu1 %v2888_v22, %s3462_s14  ;;  %v5380_v19 = vmul.f32 0.75, %v5269_v60  ;;  %v5383_v44 = vmul.f32 0.75, %v5304_v12  ;;  %v2795_v29 = vsel %vm1774_vm1, %v2793_v4, %v2794_v31  ;;  %v2796_v50 = vrot.slane %v5364_v37, 1 }
 0x22c   : > { %v5388_v1 = vsel %vm1919_vm2, %v6139_v49, %v2687_v5  ;;  %v5393_v24 = vmul.f32 0.25, %v5368_v59  ;;  %v5397_v22 = vadd.f32 %v4743_v54, %v4858_v40  ;;  %v2889_v36 = vsel %vm1774_vm1, %v2866_v8, %v5241_v39 }
 0x22d   : > { %6402 = vst [vmem:[#allocation72_spill] sm:$0xff] %v5388_v1  ;;  %v2868_v21 = vadd.f32 %v2797_v34, %v5383_v44  ;;  %v2800_v5 = vrot.slane %v5372_v13, 1  ;;  %v5404_v49 = vmul.f32 0.25, %v1669_v20  ;;  %v2865_v31 = vadd.f32 %v2795_v29, %v5380_v19 }
 0x22e   : > { %6403 = vst [vmem:[#allocation69_spill] sm:$0xff] %v5397_v22  ;;  %2957 = vrot.lane.b32.xlu0 %v2863_v51, %s3462_s14  ;;  %v5408_v4 = vmul.f32 0.75, %v1667_v63  ;;  %v5411_v40 = vmul.f32 0.75, %v5320_v23  ;;  %v2798_v54 = vsel %vm1774_vm1, %v2796_v50, %v2797_v34  ;;  %v2799_v51 = vrot.slane %v5393_v24, 1 }
 0x22f   : > { %6404 = vst [vmem:[#allocation66_spill] sm:$0xff] %v5404_v49  ;;  %2963 = vrot.lane.b32.xlu1 %v2889_v36, %s3462_s14  ;;  %v5416_v39 = vmul.f32 0.25, %v5397_v22  ;;  %v2890_v8 = vsel %vm1774_vm1, %v2868_v21, %v5304_v12  ;;  %v2803_v29 = vrot.slane %v5404_v49, 1  ;;  %v5424_v32 = vmul.f32 0.25, %v5156_v55 }
 0x230   : > { %v2870_v36 = vadd.f32 %v2800_v5, %v5408_v4  ;;  %v2867_v34 = vadd.f32 %v2798_v54, %v5411_v40  ;;  %v5428_v50 = vmul.f32 0.75, %v1669_v20  ;;  %v2801_v1 = vsel %vm1774_vm1, %v2799_v51, %v2800_v5  ;;  %v6407_v54 = vld [vmem:[#allocation36_spill] sm:$0xff]  ;;  %v6408_v51 = vld [vmem:[#allocation38_spill] sm:$0xff] }
 0x231   : > { %6405 = vst [vmem:[#allocation126_spill] sm:$0xff] %v5424_v32  ;;  %v1779_v23 = vrot.slane %v6406_v3, 1  ;;  %v5436_v21 = vmul.f32 0.75, %v5368_v59  ;;  %v1778_v60 = vrot.slane %v6407_v54, 1  ;;  %v1781_v3 = vrot.slane %v6408_v51, 1 }
 0x232   : > { %2961 = vrot.lane.b32.xlu0 %v2865_v31, %s3462_s14  ;;  %v2802_v31 = vrot.slane %v5416_v39, 1  ;;  %v2891_v12 = vsel %vm1774_vm1, %v2870_v36, %v1667_v63  ;;  %v2872_v49 = vadd.f32 %v2803_v29, %v5428_v50  ;;  %v2805_v63 = vrot.slane %v5244_v56, 1 }
 0x233   : > { %2967 = vrot.lane.b32.xlu1 %v2890_v8, %s3462_s14  ;;  %v2806_v8 = vrot.slane %v5424_v32, 1  ;;  %v2869_v5 = vadd.f32 %v2801_v1, %v5436_v21  ;;  %v1780_v36 = vsel %vm1774_vm1, %v1778_v60, %v1779_v23  ;;  %v5450_v32 = vmul.f32 0.75, %v5397_v22  ;;  %v6409_v1 = vld [vmem:[#allocation15_spill] sm:$0xff] }
 0x234   : > { %v2892_v59 = vsel %vm1774_vm1, %v2872_v49, %v1669_v20  ;;  %v2808_v49 = vrot.slane %v5272_v61, 1 }
 0x235   : > { %v2874_v54 = vadd.f32 %v2806_v8, %v5198_v6  ;;  %v2807_v20 = vsel %vm1774_vm1, %v2805_v63, %v2806_v8  ;;  %v6412_v6 = vld [vmem:[#allocation44_spill] sm:$0xff] }
 0x236   : > { %2965 = vrot.lane.b32.xlu0 %v2867_v34, %s3462_s14  ;;  %v2804_v34 = vsel %vm1774_vm1, %v2802_v31, %v2803_v29  ;;  %v1858_v29 = vadd.f32 %v1779_v23, %v6409_v1  ;;  %v6410_v31 = vld [vmem:[#allocation24_spill] sm:$0xff]  ;;  %v6413_v1 = vld [vmem:[#allocation53_spill] sm:$0xff]  ;;  %v2873_v61 = vadd.f32 %v2807_v20, %v5175_v28  ;;  %v6419_v20 = vld [vmem:[#allocation62_spill] sm:$0xff] }
 0x237   : > { %2971 = vrot.lane.b32.xlu1 %v2891_v12, %s3462_s14  ;;  %v2809_v12 = vrot.slane %v5249_v15, 1  ;;  %v1782_v56 = vrot.slane %v6410_v31, 1  ;;  %v2871_v60 = vadd.f32 %v2804_v34, %v5450_v32  ;;  %v1784_v15 = vrot.slane %v6412_v6, 1  ;;  %v6415_v6 = vld [vmem:[#allocation11_spill] sm:$0xff] }
 0x238   : > { %v2893_v23 = vsel %vm1774_vm1, %v2874_v54, %v5156_v55  ;;  %v1787_v34 = vrot.slane %v6413_v1, 1  ;;  %v1924_v8 = vrot.slane %v1858_v29, 7  ;;  %v1785_v31 = vrot.slane %v6415_v6, 1  ;;  %v6418_v1 = vld [vmem:[#allocation54_spill] sm:$0xff] }
 0x239   : > { %v1783_v22 = vsel %vm1774_vm1, %v1781_v3, %v1782_v56  ;;  %v6414_v3 = vld [vmem:[#allocation34_spill] sm:$0xff]  ;;  %v2810_v55 = vsel %vm1774_vm1, %v2808_v49, %v2809_v12 }
 0x23a   : > { %2969 = vrot.lane.b32.xlu0 %v2869_v5, %s3462_s14  ;;  %v6411_v5 = vld [vmem:[#allocation30_spill] sm:$0xff] }
 0x23b   : > { %2975 = vrot.lane.b32.xlu1 %v2892_v59, %s3462_s14  ;;  %v1857_v51 = vadd.f32 %v1780_v36, %v6411_v5  ;;  %v2876_v59 = vadd.f32 %v2809_v12, %v5221_v45  ;;  %v1859_v36 = vadd.f32 %v1783_v22, %v6414_v3  ;;  %v6416_v45 = vrot.slane %v4723_v0, 1  ;;  %v6417_v5 = vld [vmem:[#allocation7_spill] sm:$0xff]  ;;  %v6420_v6 = vld [vmem:[#allocation26_spill] sm:$0xff] }
 0x23c   : > { %v2815_v22 = vrot.slane %v5330_v2, 1  ;;  %v1790_v12 = vrot.slane %v6419_v20, 1 }
 0x23d   : > { %v1923_v63 = vrot.slane %v1857_v51, 7  ;;  %v2878_v54 = vadd.f32 %v6416_v45, %v5231_v46  ;;  %v2894_v28 = vsel %vm1774_vm1, %v2876_v59, %v5186_v17  ;;  %v1786_v51 = vsel %vm1774_vm1, %v1784_v15, %v1785_v31  ;;  %v6421_v17 = vld [vmem:[#allocation57_spill] sm:$0xff] }
 0x23e   : > { %2973 = vrot.lane.b32.xlu0 %v2871_v60, %s3462_s14  ;;  %v1926_v3 = vrot.slane %v1859_v36, 7 }
 0x23f   : > { %2979 = vrot.lane.b32.xlu1 %v2893_v23, %s3462_s14  ;;  %v1860_v23 = vadd.f32 %v1782_v56, %v6417_v5  ;;  %v1925_v46 = vsel %vm1919_vm2, %v1923_v63, %v1924_v8  ;;  %v2875_v56 = vadd.f32 %v2810_v55, %v5207_v27  ;;  %v2895_v59 = vsel %vm1774_vm1, %v2878_v54, %v6372_v62  ;;  %v6422_v8 = vld [vmem:[#allocation19_spill] sm:$0xff]  ;;  %v6424_v54 = vld [vmem:[#allocation70_spill] sm:$0xff] }
 0x240   : > { %v1861_v45 = vadd.f32 %v1786_v51, %v6422_v8  ;;  %v2880_v55 = vadd.f32 %v2815_v22, %v5296_v33  ;;  %v2814_v62 = vrot.slane %v5339_v11, 1  ;;  %v6425_v51 = vld [vmem:[#allocation28_spill] sm:$0xff] }
 0x241   : > { %v2211_v60 = vpop.permute.xlu1 %2210  ;;  %v2001_v20 = vsel %vm1919_vm2, %v6425_v51, %v1923_v63  ;;  %v6426_v33 = vld [vmem:[#allocation12_spill] sm:$0xff] }
 0x242   : > { %v2305_v29 = vsel %vm1231_vm0, %v6418_v1, %v2211_v60  ;;  %2977 = vrot.lane.b32.xlu0 %v2873_v61, %s3462_s14  ;;  %v1788_v61 = vrot.slane %v6420_v6, 1  ;;  %v1927_v60 = vrot.slane %v1860_v23, 7  ;;  %v1793_v23 = vrot.slane %v6424_v54, 1  ;;  %v6427_v6 = vld [vmem:[#allocation39_spill] sm:$0xff] }
 0x243   : > { %v2337_v49 = vmax.f32 %v2305_v29, 0.0  ;;  %2983 = vrot.lane.b32.xlu1 %v2894_v28, %s3462_s14  ;;  %v6423_v29 = vld [vmem:[#allocation8_spill] sm:$0xff]  ;;  %v2816_v11 = vsel %vm1774_vm1, %v2814_v62, %v2815_v22  ;;  %v6432_v54 = vld [vmem:[#allocation79_spill] sm:$0xff] }
 0x244   : > { %v2209_v0 = vpop.permute.xlu0 %2208  ;;  %v1789_v5 = vsel %vm1774_vm1, %v1787_v34, %v1788_v61  ;;  %v1862_v28 = vadd.f32 %v1785_v31, %v6423_v29  ;;  %v1796_v51 = vrot.slane %v6432_v54, 1 }
 0x245   : > { %2370 = vst.msk [vmem:[%s5492_s25 + $0x8] sm:$0xff] %vm2368_vm3, %v2337_v49  ;;  %v2304_v2 = vsel %vm1231_vm0, %v6421_v17, %v2209_v0  ;;  %v2215_v15 = vpop.permute.xlu1 %2214  ;;  %v1928_v0 = vsel %vm1919_vm2, %v1926_v3, %v1927_v60  ;;  %v1863_v17 = vadd.f32 %v1789_v5, %v6427_v6 }
 0x246   : > { %v2336_v27 = vmax.f32 %v2304_v2, 0.0  ;;  %v2307_v36 = vsel %vm1231_vm0, %v1925_v46, %v2215_v15  ;;  %2981 = vrot.lane.b32.xlu0 %v2875_v56, %s3462_s14  ;;  %v1791_v46 = vrot.slane %v6426_v33, 1  ;;  %v1929_v56 = vrot.slane %v1861_v45, 7  ;;  %v6428_v45 = vld [vmem:[#allocation23_spill] sm:$0xff]  ;;  %v6433_v33 = vld [vmem:[#allocation9_spill] sm:$0xff] }
 0x247   : > { %v2339_v1 = vmax.f32 %v2307_v36, 0.0  ;;  %2987 = vrot.lane.b32.xlu1 %v2895_v59, %s3462_s14  ;;  %v2896_v15 = vsel %vm1774_vm1, %v2880_v55, %v5256_v42  ;;  %v1930_v8 = vrot.slane %v1862_v28, 7  ;;  %v1864_v22 = vadd.f32 %v1788_v61, %v6428_v45  ;;  %v6431_v28 = vld [vmem:[#allocation45_spill] sm:$0xff] }
 0x248   : > { %2369 = vst.msk [vmem:[%s5492_s25] sm:$0xff] %vm2368_vm3, %v2336_v27  ;;  %v2213_v49 = vpop.permute.xlu0 %2212  ;;  %v1792_v59 = vsel %vm1774_vm1, %v1790_v12, %v1791_v46  ;;  %v6429_v27 = vld [vmem:[#allocation16_spill] sm:$0xff]  ;;  %v1932_v61 = vrot.slane %v1863_v17, 7  ;;  %v6435_v17 = vld [vmem:[#allocation18_spill] sm:$0xff] }
 0x249   : > { %2372 = vst.msk [vmem:[%s5492_s25 + $0x28] sm:$0xff] %vm2368_vm3, %v2339_v1  ;;  %v2306_v34 = vsel %vm1231_vm0, %v2001_v20, %v2213_v49  ;;  %v2219_v31 = vpop.permute.xlu1 %2218  ;;  %v2002_v36 = vsel %vm1919_vm2, %v6429_v27, %v1926_v3  ;;  %v2879_v1 = vadd.f32 %v2816_v11, %v5299_v48  ;;  %v1931_v55 = vsel %vm1919_vm2, %v1929_v56, %v1930_v8  ;;  %v6437_v8 = vld [vmem:[#allocation83_spill] sm:$0xff] }
 0x24a   : > { %v2338_v2 = vmax.f32 %v2306_v34, 0.0  ;;  %v2309_v63 = vsel %vm1231_vm0, %v1928_v0, %v2219_v31  ;;  %2985 = vrot.lane.b32.xlu0 %v4798_v41, %s3462_s14  ;;  %v6430_v41 = vld [vmem:[#allocation29_spill] sm:$0xff]  ;;  %v1865_v62 = vadd.f32 %v1792_v59, %v6431_v28  ;;  %v1933_v0 = vrot.slane %v1864_v22, 7  ;;  %v6440_v28 = vld [vmem:[#allocation55_spill] sm:$0xff] }
 0x24b   : > { %v2341_v60 = vmax.f32 %v2309_v63, 0.0  ;;  %2991 = vrot.lane.b32.xlu1 %v2896_v15, %s3462_s14  ;;  %v1794_v29 = vrot.slane %v6430_v41, 1  ;;  %v1866_v34 = vadd.f32 %v1791_v46, %v6433_v33  ;;  %v6434_v31 = vld [vmem:[#allocation37_spill] sm:$0xff]  ;;  %v1799_v45 = vrot.slane %v6437_v8, 1 }
 0x24c   : > { %2371 = vst.msk [vmem:[%s5492_s25 + $0x20] sm:$0xff] %vm2368_vm3, %v2338_v2  ;;  %v2217_v5 = vpop.permute.xlu0 %2216  ;;  %v2003_v11 = vsel %vm1919_vm2, %v6434_v31, %v1929_v56  ;;  %v1797_v2 = vrot.slane %v6435_v17, 1  ;;  %v1935_v59 = vrot.slane %v1865_v62, 7  ;;  %v1800_v62 = vrot.slane %v6440_v28, 1  ;;  %v6443_v17 = vld [vmem:[#allocation40_spill] sm:$0xff] }
 0x24d   : > { %2374 = vst.msk [vmem:[%s5492_s25 + $0x48] sm:$0xff] %vm2368_vm3, %v2341_v60  ;;  %v2308_v42 = vsel %vm1231_vm0, %v2002_v36, %v2217_v5  ;;  %v2223_v12 = vpop.permute.xlu1 %2222  ;;  %v1795_v48 = vsel %vm1774_vm1, %v1793_v23, %v1794_v29  ;;  %v1934_v23 = vsel %vm1919_vm2, %v1932_v61, %v1933_v0  ;;  %v6436_v60 = vld [vmem:[#allocation51_spill] sm:$0xff]  ;;  %v1936_v5 = vrot.slane %v1866_v34, 7 }
 0x24e   : > { %v2340_v3 = vmax.f32 %v2308_v42, 0.0  ;;  %v2311_v20 = vsel %vm1231_vm0, %v1931_v55, %v2223_v12  ;;  %2989 = vrot.lane.b32.xlu0 %v2879_v1, %s3462_s14  ;;  %v1867_v46 = vadd.f32 %v1795_v48, %v6436_v60  ;;  %v1798_v27 = vsel %vm1774_vm1, %v1796_v51, %v1797_v2  ;;  %v6438_v1 = vld [vmem:[#allocation10_spill] sm:$0xff]  ;;  %v6439_v42 = vld [vmem:[#allocation35_spill] sm:$0xff]  ;;  %v6441_v48 = vld [vmem:[#allocation60_spill] sm:$0xff] }
 0x24f   : > { %v2343_v49 = vmax.f32 %v2311_v20, 0.0  ;;  %v1868_v41 = vadd.f32 %v1794_v29, %v6438_v1  ;;  %v2004_v12 = vsel %vm1919_vm2, %v6439_v42, %v1932_v61  ;;  %v1937_v51 = vsel %vm1919_vm2, %v1935_v59, %v1936_v5 }
 0x250   : > { %2373 = vst.msk [vmem:[%s5492_s25 + $0x40] sm:$0xff] %vm2368_vm3, %v2340_v3  ;;  %v2221_v6 = vpop.permute.xlu0 %2220  ;;  %v1938_v20 = vrot.slane %v1867_v46, 7  ;;  %v1869_v29 = vadd.f32 %v1798_v27, %v6441_v48  ;;  %v1801_v33 = vsel %vm1774_vm1, %v1799_v45, %v1800_v62 }
 0x251   : > { %2376 = vst.msk [vmem:[%s5492_s25 + $0x68] sm:$0xff] %vm2368_vm3, %v2343_v49  ;;  %v2310_v63 = vsel %vm1231_vm0, %v2003_v11, %v2221_v6  ;;  %v2227_v15 = vpop.permute.xlu1 %2226  ;;  %v1802_v49 = vrot.slane %v4843_v52, 1  ;;  %v1939_v31 = vrot.slane %v1868_v41, 7  ;;  %v6442_v11 = vld [vmem:[#allocation32_spill] sm:$0xff]  ;;  %v6446_v41 = vld [vmem:[#allocation42_spill] sm:$0xff] }
 0x252   : > { %v2342_v22 = vmax.f32 %v2310_v63, 0.0  ;;  %v2313_v56 = vsel %vm1231_vm0, %v1934_v23, %v2227_v15  ;;  %v1870_v6 = vadd.f32 %v1797_v2, %v6442_v11  ;;  %v2005_v63 = vsel %vm1919_vm2, %v6443_v17, %v1935_v59  ;;  %v6444_v23 = vld [vmem:[#allocation64_spill] sm:$0xff] }
 0x253   : > { %v2345_v36 = vmax.f32 %v2313_v56, 0.0  ;;  %v1803_v60 = vrot.slane %v6444_v23, 1  ;;  %v1940_v8 = vsel %vm1919_vm2, %v1938_v20, %v1939_v31  ;;  %v1941_v45 = vrot.slane %v1869_v29, 7 }
 0x254   : > { %2375 = vst.msk [vmem:[%s5492_s25 + $0x60] sm:$0xff] %vm2368_vm3, %v2342_v22  ;;  %v2225_v55 = vpop.permute.xlu0 %2224  ;;  %v6445_v22 = vld [vmem:[#allocation67_spill] sm:$0xff]  ;;  %v1805_v56 = vrot.slane %v4879_v38, 1  ;;  %v1942_v1 = vrot.slane %v1870_v6, 7  ;;  %v1872_v42 = vadd.f32 %v1800_v62, %v6446_v41  ;;  %v6451_v6 = vld [vmem:[#allocation56_spill] sm:$0xff] }
 0x255   : > { %2378 = vst.msk [vmem:[%s5492_s25 + $0x88] sm:$0xff] %vm2368_vm3, %v2345_v36  ;;  %v2312_v54 = vsel %vm1231_vm0, %v2004_v12, %v2225_v55  ;;  %v2231_v3 = vpop.permute.xlu1 %2230  ;;  %v1871_v2 = vadd.f32 %v1801_v33, %v6445_v22  ;;  %v1804_v36 = vsel %vm1774_vm1, %v1802_v49, %v1803_v60  ;;  %v6447_v12 = vld [vmem:[#allocation46_spill] sm:$0xff]  ;;  %v6449_v49 = vld [vmem:[#allocation76_spill] sm:$0xff]  ;;  %v1874_v17 = vadd.f32 %v1803_v60, %v6451_v6 }
 0x256   : > { %v2344_v0 = vmax.f32 %v2312_v54, 0.0  ;;  %v2315_v61 = vsel %vm1231_vm0, %v1937_v51, %v2231_v3  ;;  %v2006_v55 = vsel %vm1919_vm2, %v6447_v12, %v1938_v20  ;;  %v6448_v54 = vld [vmem:[#allocation73_spill] sm:$0xff]  ;;  %v1943_v48 = vsel %vm1919_vm2, %v1941_v45, %v1942_v1  ;;  %v6456_v12 = vld [vmem:[#allocation71_spill] sm:$0xff] }
 0x257   : > { %v2347_v34 = vmax.f32 %v2315_v61, 0.0  ;;  %v1806_v3 = vrot.slane %v6448_v54, 1  ;;  %v1944_v29 = vrot.slane %v1871_v2, 7  ;;  %v1873_v62 = vadd.f32 %v1804_v36, %v6449_v49 }
 0x258   : > { %2377 = vst.msk [vmem:[%s5492_s25 + $0x80] sm:$0xff] %vm2368_vm3, %v2344_v0  ;;  %v2229_v15 = vpop.permute.xlu0 %2228  ;;  %v6450_v0 = vld [vmem:[#allocation94_spill] sm:$0xff]  ;;  %v1945_v11 = vrot.slane %v1872_v42, 7  ;;  %v1948_v42 = vrot.slane %v1874_v17, 7  ;;  %v6460_v17 = vld [vmem:[#allocation80_spill] sm:$0xff] }
 0x259   : > { %2380 = vst.msk [vmem:[%s5492_s25 + $0xa8] sm:$0xff] %vm2368_vm3, %v2347_v34  ;;  %v2314_v52 = vsel %vm1231_vm0, %v2005_v63, %v2229_v15  ;;  %v2235_v46 = vpop.permute.xlu1 %2234  ;;  %v1808_v61 = vrot.slane %v6450_v0, 1  ;;  %v1807_v34 = vsel %vm1774_vm1, %v1805_v56, %v1806_v3  ;;  %v6452_v63 = vld [vmem:[#allocation52_spill] sm:$0xff]  ;;  %v1947_v56 = vrot.slane %v1873_v62, 7 }
 0x25a   : > { %v2346_v27 = vmax.f32 %v2314_v52, 0.0  ;;  %v2317_v59 = vsel %vm1231_vm0, %v1940_v8, %v2235_v46  ;;  %v2007_v15 = vsel %vm1919_vm2, %v6452_v63, %v1941_v45  ;;  %v6453_v52 = vld [vmem:[#allocation87_spill] sm:$0xff]  ;;  %v1946_v2 = vsel %vm1919_vm2, %v1944_v29, %v1945_v11 }
 0x25b   : > { %v2349_v5 = vmax.f32 %v2317_v59, 0.0  ;;  %v1809_v46 = vrot.slane %v6453_v52, 1  ;;  %v6455_v59 = vld [vmem:[#allocation101_spill] sm:$0xff]  ;;  %v1949_v0 = vsel %vm1919_vm2, %v1947_v56, %v1948_v42 }
 0x25c   : > { %2379 = vst.msk [vmem:[%s5492_s25 + $0xa0] sm:$0xff] %vm2368_vm3, %v2346_v27  ;;  %v2233_v28 = vpop.permute.xlu0 %2232  ;;  %v6454_v27 = vld [vmem:[#allocation82_spill] sm:$0xff]  ;;  %v1811_v36 = vrot.slane %v6455_v59, 1  ;;  %v6463_v59 = vld [vmem:[#allocation89_spill] sm:$0xff] }
 0x25d   : > { %2382 = vst.msk [vmem:[%s5492_s25 + $0xc8] sm:$0xff] %vm2368_vm3, %v2349_v5  ;;  %v2316_v38 = vsel %vm1231_vm0, %v2006_v55, %v2233_v28  ;;  %v2239_v51 = vpop.permute.xlu1 %2238  ;;  %v1875_v60 = vadd.f32 %v1807_v34, %v6454_v27  ;;  %v1810_v1 = vsel %vm1774_vm1, %v1808_v61, %v1809_v46  ;;  %v1876_v55 = vadd.f32 %v1806_v3, %v6456_v12  ;;  %v6457_v28 = vld [vmem:[#allocation58_spill] sm:$0xff]  ;;  %v6465_v12 = vld [vmem:[#allocation85_spill] sm:$0xff] }
 0x25e   : > { %v2348_v33 = vmax.f32 %v2316_v38, 0.0  ;;  %v2319_v20 = vsel %vm1231_vm0, %v1943_v48, %v2239_v51  ;;  %v2008_v54 = vsel %vm1919_vm2, %v6457_v28, %v1944_v29  ;;  %v6458_v51 = vld [vmem:[#allocation88_spill] sm:$0xff]  ;;  %v1878_v63 = vadd.f32 %v1809_v46, %v6460_v17  ;;  %v6466_v28 = vld [vmem:[#allocation77_spill] sm:$0xff]  ;;  %v6469_v17 = vld [vmem:[#allocation91_spill] sm:$0xff] }
 0x25f   : > { %v2351_v31 = vmax.f32 %v2319_v20, 0.0  ;;  %v1812_v48 = vrot.slane %v6458_v51, 1  ;;  %v1950_v61 = vrot.slane %v1875_v60, 7  ;;  %v1814_v20 = vrot.slane %v5000_v53, 1  ;;  %v6467_v51 = vld [vmem:[#allocation103_spill] sm:$0xff] }
 0x260   : > { %2381 = vst.msk [vmem:[%s5492_s25 + $0xc0] sm:$0xff] %vm2368_vm3, %v2348_v33  ;;  %v2237_v23 = vpop.permute.xlu0 %2236  ;;  %v6459_v33 = vld [vmem:[#allocation84_spill] sm:$0xff]  ;;  %v1951_v6 = vrot.slane %v1876_v55, 7  ;;  %v1954_v42 = vrot.slane %v1878_v63, 7 }
 0x261   : > { %2384 = vst.msk [vmem:[%s5492_s25 + $0xe8] sm:$0xff] %vm2368_vm3, %v2351_v31  ;;  %v2318_v8 = vsel %vm1231_vm0, %v2007_v15, %v2237_v23  ;;  %v2243_v22 = vpop.permute.xlu1 %2242  ;;  %v1877_v3 = vadd.f32 %v1810_v1, %v6459_v33  ;;  %v1813_v31 = vsel %vm1774_vm1, %v1811_v36, %v1812_v48  ;;  %v6461_v15 = vld [vmem:[#allocation68_spill] sm:$0xff]  ;;  %v6464_v36 = vld [vmem:[#allocation6_spill] sm:$0xff]  ;;  %v1880_v55 = vadd.f32 %v1812_v48, %v6465_v12 }
 0x262   : > { %v2350_v5 = vmax.f32 %v2318_v8, 0.0  ;;  %v2321_v45 = vsel %vm1231_vm0, %v1946_v2, %v2243_v22  ;;  %v2009_v23 = vsel %vm1919_vm2, %v6461_v15, %v1947_v56  ;;  %v6462_v8 = vld [vmem:[#allocation97_spill] sm:$0xff]  ;;  %v1952_v27 = vsel %vm1919_vm2, %v1950_v61, %v1951_v6  ;;  %v6474_v12 = vld [vmem:[#allocation86_spill] sm:$0xff] }
 0x263   : > { %v2353_v41 = vmax.f32 %v2321_v45, 0.0  ;;  %v1815_v22 = vrot.slane %v6462_v8, 1  ;;  %v1953_v60 = vrot.slane %v1877_v3, 7  ;;  %v1879_v46 = vadd.f32 %v1813_v31, %v6463_v59  ;;  %v6470_v15 = vld [vmem:[#allocation81_spill] sm:$0xff] }
 0x264   : > { %2383 = vst.msk [vmem:[%s5492_s25 + $0xe0] sm:$0xff] %vm2368_vm3, %v2350_v5  ;;  %v2241_v38 = vpop.permute.xlu0 %2240  ;;  %v1817_v5 = vrot.slane %v6464_v36, 1  ;;  %v1957_v6 = vrot.slane %v1880_v55, 7  ;;  %v6471_v8 = vld [vmem:[#allocation105_spill] sm:$0xff] }
 0x265   : > { %2386 = vst.msk [vmem:[%s5492_s25 + $0x108] sm:$0xff] %vm2368_vm3, %v2353_v41  ;;  %v2320_v49 = vsel %vm1231_vm0, %v2008_v54, %v2241_v38  ;;  %v2247_v62 = vpop.permute.xlu1 %2246  ;;  %v1816_v1 = vsel %vm1774_vm1, %v1814_v20, %v1815_v22  ;;  %v2010_v54 = vsel %vm1919_vm2, %v6466_v28, %v1950_v61  ;;  %v1955_v33 = vsel %vm1919_vm2, %v1953_v60, %v1954_v42  ;;  %v6468_v20 = vld [vmem:[#allocation92_spill] sm:$0xff] }
 0x266   : > { %v2352_v34 = vmax.f32 %v2320_v49, 0.0  ;;  %v2323_v29 = vsel %vm1231_vm0, %v1949_v0, %v2247_v62  ;;  %v1818_v49 = vrot.slane %v6467_v51, 1  ;;  %v1956_v3 = vrot.slane %v1879_v46, 7  ;;  %v6472_v46 = vld [vmem:[#allocation99_spill] sm:$0xff] }
 0x267   : > { %v2355_v11 = vmax.f32 %v2323_v29, 0.0  ;;  %v1881_v48 = vadd.f32 %v1816_v1, %v6468_v20  ;;  %v1882_v63 = vadd.f32 %v1815_v22, %v6469_v17 }
 0x268   : > { %2385 = vst.msk [vmem:[%s5492_s25 + $0x100] sm:$0xff] %vm2368_vm3, %v2352_v34  ;;  %v2245_v52 = vpop.permute.xlu0 %2244  ;;  %v1820_v34 = vrot.slane %v5076_v58, 1  ;;  %v1819_v31 = vsel %vm1774_vm1, %v1817_v5, %v1818_v49  ;;  %v2498_v58 = vrot.slane %v5059_v57, 1  ;;  %v1958_v59 = vsel %vm1919_vm2, %v1956_v3, %v1957_v6 }
 0x269   : > { %2388 = vst.msk [vmem:[%s5492_s25 + $0x128] sm:$0xff] %vm2368_vm3, %v2355_v11  ;;  %v2322_v53 = vsel %vm1231_vm0, %v2009_v23, %v2245_v52  ;;  %v2251_v2 = vpop.permute.xlu1 %2250  ;;  %v2011_v23 = vsel %vm1919_vm2, %v6470_v15, %v1953_v60  ;;  %v1959_v22 = vrot.slane %v1881_v48, 7  ;;  %v1883_v36 = vadd.f32 %v1819_v31, %v6472_v46  ;;  %v6477_v31 = vld [vmem:[#allocation90_spill] sm:$0xff] }
 0x26a   : > { %v2354_v45 = vmax.f32 %v2322_v53, 0.0  ;;  %v2325_v56 = vsel %vm1231_vm0, %v1952_v27, %v2251_v2  ;;  %v1821_v53 = vrot.slane %v6471_v8, 1  ;;  %v2497_v5 = vrot.slane %v5105_v25, 1 }
 0x26b   : > { %v2357_v41 = vmax.f32 %v2325_v56, 0.0  ;;  %v1960_v57 = vrot.slane %v1882_v63, 7  ;;  %v2012_v55 = vsel %vm1919_vm2, %v6474_v12, %v1956_v3  ;;  %v6478_v63 = vld [vmem:[#allocation96_spill] sm:$0xff] }
 0x26c   : > { %2387 = vst.msk [vmem:[%s5492_s25 + $0x120] sm:$0xff] %vm2368_vm3, %v2354_v45  ;;  %v2249_v38 = vpop.permute.xlu0 %2248  ;;  %v1822_v56 = vsel %vm1774_vm1, %v1820_v34, %v1821_v53  ;;  %v2501_v15 = vrot.slane %v6478_v63, 1 }
 0x26d   : > { %2390 = vst.msk [vmem:[%s5492_s25 + $0x148] sm:$0xff] %vm2368_vm3, %v2357_v41  ;;  %v2324_v62 = vsel %vm1231_vm0, %v2010_v54, %v2249_v38  ;;  %v2255_v0 = vpop.permute.xlu1 %2254  ;;  %v6473_v41 = vld [vmem:[#allocation95_spill] sm:$0xff]  ;;  %v2499_v54 = vsel %vm1774_vm1, %v2497_v5, %v2498_v58  ;;  %v1961_v51 = vsel %vm1919_vm2, %v1959_v22, %v1960_v57  ;;  %v6480_v5 = vld [vmem:[#allocation93_spill] sm:$0xff] }
 0x26e   : > { %v2356_v29 = vmax.f32 %v2324_v62, 0.0  ;;  %v2327_v61 = vsel %vm1231_vm0, %v1955_v33, %v2255_v0  ;;  %v1884_v42 = vadd.f32 %v1818_v49, %v6473_v41  ;;  %v1962_v62 = vrot.slane %v1883_v36, 7  ;;  %v6475_v0 = vld [vmem:[#allocation22_spill] sm:$0xff] }
 0x26f   : > { %v2359_v11 = vmax.f32 %v2327_v61, 0.0  ;;  %v1885_v49 = vadd.f32 %v1822_v56, %v6475_v0  ;;  %v2500_v33 = vrot.slane %v5139_v18, 1  ;;  %v2577_v17 = vadd.f32 %v2499_v54, %v5033_v16 }
 0x270   : > { %2389 = vst.msk [vmem:[%s5492_s25 + $0x140] sm:$0xff] %vm2368_vm3, %v2356_v29  ;;  %v2253_v52 = vpop.permute.xlu0 %2252  ;;  %v1963_v34 = vrot.slane %v1884_v42, 7  ;;  %v6476_v29 = vld [vmem:[#allocation98_spill] sm:$0xff]  ;;  %v6481_v42 = vld [vmem:[#allocation107_spill] sm:$0xff] }
 0x271   : > { %2392 = vst.msk [vmem:[%s5492_s25 + $0x168] sm:$0xff] %vm2368_vm3, %v2359_v11  ;;  %v2326_v2 = vsel %vm1231_vm0, %v2011_v23, %v2253_v52  ;;  %v2259_v27 = vpop.permute.xlu1 %2258  ;;  %v1886_v61 = vadd.f32 %v1821_v53, %v6476_v29  ;;  %v2013_v11 = vsel %vm1919_vm2, %v6477_v31, %v1959_v22  ;;  %v1965_v8 = vrot.slane %v1885_v49, 7  ;;  %v6479_v53 = vld [vmem:[#allocation20_spill] sm:$0xff]  ;;  %v6485_v29 = vld [vmem:[#allocation119_spill] sm:$0xff] }
 0x272   : > { %v2358_v60 = vmax.f32 %v2326_v2, 0.0  ;;  %v2329_v45 = vsel %vm1231_vm0, %v1958_v59, %v2259_v27  ;;  %v1964_v52 = vsel %vm1919_vm2, %v1962_v62, %v1963_v34  ;;  %v2578_v2 = vadd.f32 %v2498_v58, %v6479_v53  ;;  %v6483_v49 = vld [vmem:[#allocation108_spill] sm:$0xff]  ;;  %v6484_v34 = vld [vmem:[#allocation111_spill] sm:$0xff]  ;;  %v6488_v53 = vld [vmem:[#allocation113_spill] sm:$0xff] }
 0x273   : > { %v2361_v1 = vmax.f32 %v2329_v45, 0.0  ;;  %v2503_v27 = vrot.slane %v5161_v26, 1  ;;  %v2502_v16 = vsel %vm1774_vm1, %v2500_v33, %v2501_v15  ;;  %v1966_v36 = vrot.slane %v1886_v61, 7 }
 0x274   : > { %2391 = vst.msk [vmem:[%s5492_s25 + $0x160] sm:$0xff] %vm2368_vm3, %v2358_v60  ;;  %v2257_v28 = vpop.permute.xlu0 %2256  ;;  %v2014_v60 = vsel %vm1919_vm2, %v6480_v5, %v1962_v62  ;;  %v2641_v56 = vrot.slane %v2577_v17, 7  ;;  %v2642_v41 = vrot.slane %v2578_v2, 7  ;;  %v2579_v12 = vadd.f32 %v2502_v16, %v6481_v42  ;;  %v6490_v5 = vld [vmem:[#allocation122_spill] sm:$0xff]  ;;  %v6492_v42 = vld [vmem:[#allocation25_spill] sm:$0xff] }
 0x275   : > { %2394 = vst.msk [vmem:[%s5492_s25 + $0x188] sm:$0xff] %vm2368_vm3, %v2361_v1  ;;  %v2328_v25 = vsel %vm1231_vm0, %v2012_v55, %v2257_v28  ;;  %v2263_v38 = vpop.permute.xlu1 %2262  ;;  %v2504_v1 = vrot.slane %v5023_v47, 1  ;;  %v1967_v57 = vsel %vm1919_vm2, %v1965_v8, %v1966_v36  ;;  %v2506_v55 = vrot.slane %v5179_v7, 1 }
 0x276   : > { %v2360_v20 = vmax.f32 %v2328_v25, 0.0  ;;  %v2331_v48 = vsel %vm1231_vm0, %v1961_v51, %v2263_v38  ;;  %v2580_v47 = vadd.f32 %v2501_v15, %v4895_v43  ;;  %v6482_v51 = vld [vmem:[#allocation100_spill] sm:$0xff]  ;;  %v2507_v33 = vrot.slane %v6483_v49, 1  ;;  %v6486_v15 = vld [vmem:[#allocation102_spill] sm:$0xff] }
 0x277   : > { %v2363_v3 = vmax.f32 %v2331_v48, 0.0  ;;  %v2505_v25 = vsel %vm1774_vm1, %v2503_v27, %v2504_v1  ;;  %v2015_v62 = vsel %vm1919_vm2, %v6482_v51, %v1965_v8  ;;  %v2509_v61 = vrot.slane %v6485_v29, 1  ;;  %v6496_v29 = vld [vmem:[#allocation14_spill] sm:$0xff] }
 0x278   : > { %2393 = vst.msk [vmem:[%s5492_s25 + $0x180] sm:$0xff] %vm2368_vm3, %v2360_v20  ;;  %v2261_v6 = vpop.permute.xlu0 %2260  ;;  %v2643_v20 = vsel %vm1919_vm2, %v2641_v56, %v2642_v41  ;;  %v2581_v43 = vadd.f32 %v2505_v25, %v6484_v34  ;;  %v2645_v63 = vrot.slane %v2580_v47, 7  ;;  %v2510_v2 = vrot.slane %v6488_v53, 1  ;;  %v6495_v34 = vld [vmem:[#allocation13_spill] sm:$0xff] }
 0x279   : > { %2396 = vst.msk [vmem:[%s5492_s25 + $0x1a8] sm:$0xff] %vm2368_vm3, %v2363_v3  ;;  %v2330_v18 = vsel %vm1231_vm0, %v2013_v11, %v2261_v6  ;;  %v2267_v23 = vpop.permute.xlu1 %2266  ;;  %v2644_v3 = vrot.slane %v2579_v12, 7  ;;  %v2508_v6 = vsel %vm1774_vm1, %v2506_v55, %v2507_v33  ;;  %v2515_v49 = vrot.slane %v5228_v14, 1 }
 0x27a   : > { %v2362_v59 = vmax.f32 %v2330_v18, 0.0  ;;  %v2333_v22 = vsel %vm1231_vm0, %v1964_v52, %v2267_v23  ;;  %v2582_v18 = vadd.f32 %v2504_v1, %v6486_v15  ;;  %v6487_v23 = vld [vmem:[#allocation104_spill] sm:$0xff]  ;;  %v2647_v16 = vrot.slane %v2581_v43, 7 }
 0x27b   : > { %v2365_v46 = vmax.f32 %v2333_v22, 0.0  ;;  %v2721_v52 = vsel %vm1919_vm2, %v6487_v23, %v2641_v56  ;;  %v2646_v22 = vsel %vm1919_vm2, %v2644_v3, %v2645_v63  ;;  %v2511_v1 = vsel %vm1774_vm1, %v2509_v61, %v2510_v2 }
 0x27c   : > { %2395 = vst.msk [vmem:[%s5492_s25 + $0x1a0] sm:$0xff] %vm2368_vm3, %v2362_v59  ;;  %v2265_v45 = vpop.permute.xlu0 %2264  ;;  %v2722_v12 = vsel %vm1919_vm2, %v6492_v42, %v2644_v3  ;;  %v2586_v43 = vadd.f32 %v2510_v2, %v6495_v34  ;;  %v2723_v61 = vsel %vm1919_vm2, %v6496_v29, %v2647_v16 }
 0x27d   : > { %2398 = vst.msk [vmem:[%s5492_s25 + $0x1c8] sm:$0xff] %vm2368_vm3, %v2365_v46  ;;  %v2332_v26 = vsel %vm1231_vm0, %v2014_v60, %v2265_v45  ;;  %v2271_v58 = vpop.permute.xlu1 %2270  ;;  %v6489_v46 = vld [vmem:[#allocation21_spill] sm:$0xff]  ;;  %v2512_v60 = vrot.slane %v6490_v5, 1 }
 0x27e   : > { %v2364_v28 = vmax.f32 %v2332_v26, 0.0  ;;  %v2335_v54 = vsel %vm1231_vm0, %v1967_v57, %v2271_v58  ;;  %v2583_v36 = vadd.f32 %v2508_v6, %v6489_v46  ;;  %v2648_v58 = vrot.slane %v2582_v18, 7  ;;  %v6491_v57 = vld [vmem:[#allocation106_spill] sm:$0xff]  ;;  %v6498_v18 = vld [vmem:[#allocation116_spill] sm:$0xff]  ;;  %v6500_v46 = vld [vmem:[#allocation17_spill] sm:$0xff] }
 0x27f   : > { %v2367_v38 = vmax.f32 %v2335_v54, 0.0  ;;  %v2584_v41 = vadd.f32 %v2507_v33, %v6491_v57 }
 0x280   : > { %2397 = vst.msk [vmem:[%s5492_s25 + $0x1c0] sm:$0xff] %vm2368_vm3, %v2364_v28  ;;  %v2269_v0 = vpop.permute.xlu0 %2268  ;;  %v6493_v28 = vld [vmem:[#allocation115_spill] sm:$0xff]  ;;  %v2649_v47 = vsel %vm1919_vm2, %v2647_v16, %v2648_v58  ;;  %v2650_v51 = vrot.slane %v2583_v36, 7  ;;  %v6502_v58 = vld [vmem:[#allocation125_spill] sm:$0xff] }
 0x281   : > { %2400 = vst.msk [vmem:[%s5492_s25 + $0x1e8] sm:$0xff] %vm2368_vm3, %v2367_v38  ;;  %v2334_v7 = vsel %vm1231_vm0, %v2015_v62, %v2269_v0  ;;  %v2932_v48 = vpop.permute.xlu1 %2931  ;;  %v2513_v54 = vrot.slane %v6493_v28, 1  ;;  %v6494_v62 = vld [vmem:[#allocation114_spill] sm:$0xff]  ;;  %v2651_v3 = vrot.slane %v2584_v41, 7  ;;  %v2521_v41 = vrot.slane %v5380_v19, 1 }
 0x282   : > { %v2366_v31 = vmax.f32 %v2334_v7, 0.0  ;;  %v3026_v11 = vsel %vm1231_vm0, %v2643_v20, %v2932_v48  ;;  %v2585_v0 = vadd.f32 %v2511_v1, %v6494_v62  ;;  %v2724_v36 = vsel %vm1919_vm2, %v6500_v46, %v2650_v51  ;;  %v6509_v46 = vld [vmem:[#allocation41_spill] sm:$0xff] }
 0x283   : > { %v3058_v17 = vmax.f32 %v3026_v11, 0.0  ;;  %v2514_v20 = vsel %vm1774_vm1, %v2512_v60, %v2513_v54  ;;  %v6497_v11 = vld [vmem:[#allocation120_spill] sm:$0xff]  ;;  %v2652_v63 = vsel %vm1919_vm2, %v2650_v51, %v2651_v3  ;;  %v2524_v3 = vrot.slane %v5411_v40, 1 }
 0x284   : > { %2399 = vst.msk [vmem:[%s5492_s25 + $0x1e0] sm:$0xff] %vm2368_vm3, %v2366_v31  ;;  %v2930_v8 = vpop.permute.xlu0 %2929  ;;  %v2516_v6 = vrot.slane %v6497_v11, 1  ;;  %v2653_v15 = vrot.slane %v2585_v0, 7  ;;  %v2587_v23 = vadd.f32 %v2514_v20, %v6498_v18  ;;  %v6501_v60 = vld [vmem:[#allocation124_spill] sm:$0xff]  ;;  %v2522_v0 = vrot.slane %v5352_v35, 1  ;;  %v6505_v20 = vld [vmem:[#allocation31_spill] sm:$0xff] }
 0x285   : > { %3259 = vst.msk [vmem:[%s5492_s25 + $0x18] sm:$0xff] %vm2368_vm3, %v3058_v17  ;;  %v3025_v27 = vsel %vm1231_vm0, %v2721_v52, %v2930_v8  ;;  %v2936_v59 = vpop.permute.xlu1 %2935  ;;  %v2518_v52 = vrot.slane %v5293_v10, 1 }
 0x286   : > { %v3057_v45 = vmax.f32 %v3025_v27, 0.0  ;;  %v3028_v56 = vsel %vm1231_vm0, %v2646_v22, %v2936_v59  ;;  %v2517_v2 = vsel %vm1774_vm1, %v2515_v49, %v2516_v6  ;;  %v2654_v59 = vrot.slane %v2586_v43, 7  ;;  %v6499_v22 = vld [vmem:[#allocation109_spill] sm:$0xff] }
 0x287   : > { %v3060_v26 = vmax.f32 %v3028_v56, 0.0  ;;  %v2588_v16 = vadd.f32 %v2513_v54, %v6499_v22  ;;  %v2589_v57 = vadd.f32 %v2517_v2, %v6502_v58  ;;  %v2523_v29 = vsel %vm1774_vm1, %v2521_v41, %v2522_v0  ;;  %v6508_v22 = vld [vmem:[#allocation74_spill] sm:$0xff] }
 0x288   : > { %3258 = vst.msk [vmem:[%s5492_s25 + $0x10] sm:$0xff] %vm2368_vm3, %v3057_v45  ;;  %v2934_v55 = vpop.permute.xlu0 %2933  ;;  %v2519_v45 = vrot.slane %v6501_v60, 1  ;;  %v2655_v1 = vsel %vm1919_vm2, %v2653_v15, %v2654_v59 }
 0x289   : > { %3261 = vst.msk [vmem:[%s5492_s25 + $0x38] sm:$0xff] %vm2368_vm3, %v3060_v26  ;;  %v3027_v25 = vsel %vm1231_vm0, %v2722_v12, %v2934_v55  ;;  %v2940_v38 = vpop.permute.xlu1 %2939  ;;  %v2656_v26 = vrot.slane %v2587_v23, 7  ;;  %v2657_v54 = vrot.slane %v2588_v16, 7  ;;  %v2594_v16 = vadd.f32 %v2522_v0, %v6508_v22 }
 0x28a   : > { %v3059_v33 = vmax.f32 %v3027_v25, 0.0  ;;  %v3030_v7 = vsel %vm1231_vm0, %v2649_v47, %v2940_v38  ;;  %v2520_v55 = vsel %vm1774_vm1, %v2518_v52, %v2519_v45  ;;  %v6503_v25 = vld [vmem:[#allocation117_spill] sm:$0xff]  ;;  %v6504_v47 = vld [vmem:[#allocation110_spill] sm:$0xff]  ;;  %v2593_v52 = vadd.f32 %v2523_v29, %v5316_v9 }
 0x28b   : > { %v3062_v48 = vmax.f32 %v3030_v7, 0.0  ;;  %v2590_v38 = vadd.f32 %v2516_v6, %v6503_v25  ;;  %v2725_v51 = vsel %vm1919_vm2, %v6504_v47, %v2653_v15  ;;  %v2659_v7 = vrot.slane %v2589_v57, 7  ;;  %v6507_v6 = vld [vmem:[#allocation112_spill] sm:$0xff] }
 0x28c   : > { %3260 = vst.msk [vmem:[%s5492_s25 + $0x30] sm:$0xff] %vm2368_vm3, %v3059_v33  ;;  %v2938_v31 = vpop.permute.xlu0 %2937  ;;  %v2658_v33 = vsel %vm1919_vm2, %v2656_v26, %v2657_v54  ;;  %v2528_v9 = vrot.slane %v5408_v4, 1  ;;  %v2666_v4 = vrot.slane %v2594_v16, 7 }
 0x28d   : > { %3263 = vst.msk [vmem:[%s5492_s25 + $0x58] sm:$0xff] %vm2368_vm3, %v3062_v48  ;;  %v3029_v14 = vsel %vm1231_vm0, %v2723_v61, %v2938_v31  ;;  %v2944_v17 = vpop.permute.xlu1 %2943  ;;  %v2591_v48 = vadd.f32 %v2520_v55, %v6505_v20  ;;  %v2660_v35 = vrot.slane %v2590_v38, 7  ;;  %v6506_v31 = vld [vmem:[#allocation123_spill] sm:$0xff] }
 0x28e   : > { %v3061_v8 = vmax.f32 %v3029_v14, 0.0  ;;  %v3032_v53 = vsel %vm1231_vm0, %v2652_v63, %v2944_v17  ;;  %v2592_v11 = vadd.f32 %v2519_v45, %v6506_v31  ;;  %v2726_v14 = vsel %vm1919_vm2, %v6507_v6, %v2656_v26 }
 0x28f   : > { %v3064_v27 = vmax.f32 %v3032_v53, 0.0  ;;  %v2525_v63 = vrot.slane %v5383_v44, 1  ;;  %v2661_v18 = vsel %vm1919_vm2, %v2659_v7, %v2660_v35  ;;  %v2662_v23 = vrot.slane %v2591_v48, 7  ;;  %v6512_v35 = vld [vmem:[#allocation66_spill] sm:$0xff] }
 0x290   : > { %3262 = vst.msk [vmem:[%s5492_s25 + $0x50] sm:$0xff] %vm2368_vm3, %v3061_v8  ;;  %v2942_v5 = vpop.permute.xlu0 %2941  ;;  %v2527_v8 = vrot.slane %v5436_v21, 1  ;;  %v2663_v44 = vrot.slane %v2592_v11, 7  ;;  %v6513_v11 = vld [vmem:[#allocation59_spill] sm:$0xff] }
 0x291   : > { %3265 = vst.msk [vmem:[%s5492_s25 + $0x78] sm:$0xff] %vm2368_vm3, %v3064_v27  ;;  %v3031_v10 = vsel %vm1231_vm0, %v2724_v36, %v2942_v5  ;;  %v2948_v56 = vpop.permute.xlu1 %2947  ;;  %v2526_v27 = vsel %vm1774_vm1, %v2524_v3, %v2525_v63  ;;  %v2727_v36 = vsel %vm1919_vm2, %v6509_v46, %v2659_v7 }
 0x292   : > { %v3063_v42 = vmax.f32 %v3031_v10, 0.0  ;;  %v3034_v12 = vsel %vm1231_vm0, %v2655_v1, %v2948_v56  ;;  %v2664_v45 = vsel %vm1919_vm2, %v2662_v23, %v2663_v44  ;;  %v2665_v10 = vrot.slane %v2593_v52, 7 }
 0x293   : > { %v3066_v28 = vmax.f32 %v3034_v12, 0.0  ;;  %v2595_v56 = vadd.f32 %v2526_v27, %v5364_v37  ;;  %v2530_v1 = vrot.slane %v5450_v32, 1  ;;  %v2529_v57 = vsel %vm1774_vm1, %v2527_v8, %v2528_v9  ;;  %v6510_v12 = vld [vmem:[#allocation63_spill] sm:$0xff]  ;;  %v6514_v8 = vld [vmem:[#allocation126_spill] sm:$0xff] }
 0x294   : > { %3264 = vst.msk [vmem:[%s5492_s25 + $0x70] sm:$0xff] %vm2368_vm3, %v3063_v42  ;;  %v2946_v62 = vpop.permute.xlu0 %2945  ;;  %v2596_v42 = vadd.f32 %v2525_v63, %v5336_v30  ;;  %v2728_v55 = vsel %vm1919_vm2, %v6510_v12, %v2662_v23  ;;  %v2531_v37 = vrot.slane %v5428_v50, 1  ;;  %v2667_v25 = vsel %vm1919_vm2, %v2665_v10, %v2666_v4 }
 0x295   : > { %3267 = vst.msk [vmem:[%s5492_s25 + $0x98] sm:$0xff] %vm2368_vm3, %v3066_v28  ;;  %v3033_v19 = vsel %vm1231_vm0, %v2725_v51, %v2946_v62  ;;  %v2952_v49 = vpop.permute.xlu1 %2951  ;;  %v2668_v38 = vrot.slane %v2595_v56, 7  ;;  %v2597_v30 = vadd.f32 %v2529_v57, %v5393_v24  ;;  %v2598_v50 = vadd.f32 %v2528_v9, %v5372_v13  ;;  %v6519_v56 = vld [vmem:[#allocation69_spill] sm:$0xff] }
 0x296   : > { %v3065_v34 = vmax.f32 %v3033_v19, 0.0  ;;  %v3036_v43 = vsel %vm1231_vm0, %v2658_v33, %v2952_v49  ;;  %v2532_v62 = vsel %vm1774_vm1, %v2530_v1, %v2531_v37  ;;  %v2669_v19 = vrot.slane %v2596_v42, 7  ;;  %v6511_v49 = vld [vmem:[#allocation48_spill] sm:$0xff] }
 0x297   : > { %v3068_v61 = vmax.f32 %v3036_v43, 0.0  ;;  %v2729_v33 = vsel %vm1919_vm2, %v6511_v49, %v2665_v10  ;;  %v2671_v3 = vrot.slane %v2597_v30, 7  ;;  %v2600_v31 = vadd.f32 %v2531_v37, %v6512_v35 }
 0x298   : > { %3266 = vst.msk [vmem:[%s5492_s25 + $0x90] sm:$0xff] %vm2368_vm3, %v3065_v34  ;;  %v2950_v17 = vpop.permute.xlu0 %2949  ;;  %v2670_v48 = vsel %vm1919_vm2, %v2668_v38, %v2669_v19  ;;  %v2599_v34 = vadd.f32 %v2532_v62, %v5416_v39  ;;  %v2730_v6 = vsel %vm1919_vm2, %v6513_v11, %v2668_v38  ;;  %v6521_v38 = vld [vmem:[#allocation43_spill] sm:$0xff]  ;;  %v6528_v11 = vld [vmem:[#allocation78_spill] sm:$0xff] }
 0x299   : > { %3269 = vst.msk [vmem:[%s5492_s25 + $0xb8] sm:$0xff] %vm2368_vm3, %v3068_v61  ;;  %v3035_v40 = vsel %vm1231_vm0, %v2726_v14, %v2950_v17  ;;  %v2956_v15 = vpop.permute.xlu1 %2955  ;;  %v2672_v61 = vrot.slane %v2598_v50, 7  ;;  %v2675_v52 = vrot.slane %v2600_v31, 7 }
 0x29a   : > { %v3067_v53 = vmax.f32 %v3035_v40, 0.0  ;;  %v3038_v2 = vsel %vm1231_vm0, %v2661_v18, %v2956_v15  ;;  %v2674_v40 = vrot.slane %v2599_v34, 7  ;;  %v6526_v34 = vld [vmem:[#allocation61_spill] sm:$0xff] }
 0x29b   : > { %v3070_v59 = vmax.f32 %v3038_v2, 0.0  ;;  %v2673_v63 = vsel %vm1919_vm2, %v2671_v3, %v2672_v61  ;;  %v6527_v61 = vld [vmem:[#allocation72_spill] sm:$0xff] }
 0x29c   : > { %3268 = vst.msk [vmem:[%s5492_s25 + $0xb0] sm:$0xff] %vm2368_vm3, %v3067_v53  ;;  %v2954_v5 = vpop.permute.xlu0 %2953  ;;  %v6515_v53 = vld [vmem:[#allocation121_spill] sm:$0xff]  ;;  %v2732_v1 = vsel %vm1919_vm2, %v6519_v56, %v2674_v40 }
 0x29d   : > { %3271 = vst.msk [vmem:[%s5492_s25 + $0xd8] sm:$0xff] %vm2368_vm3, %v3070_v59  ;;  %v3037_v21 = vsel %vm1231_vm0, %v2727_v36, %v2954_v5  ;;  %v2960_v60 = vpop.permute.xlu1 %2959  ;;  %v6516_v2 = vrot.slane %v6515_v53, 1  ;;  %v6517_v59 = vld [vmem:[#allocation49_spill] sm:$0xff]  ;;  %v2676_v36 = vsel %vm1919_vm2, %v2674_v40, %v2675_v52  ;;  %v6518_v5 = vld [vmem:[#allocation47_spill] sm:$0xff] }
 0x29e   : > { %v3069_v26 = vmax.f32 %v3037_v21, 0.0  ;;  %v3040_v58 = vsel %vm1231_vm0, %v2664_v45, %v2960_v60  ;;  %v2731_v44 = vsel %vm1919_vm2, %v6517_v59, %v2671_v3  ;;  %v2677_v9 = vrot.slane %v6518_v5, 7 }
 0x29f   : > { %v3072_v41 = vmax.f32 %v3040_v58, 0.0  ;;  %v2602_v27 = vadd.f32 %v6516_v2, %v6514_v8 }
 0x2a0   : > { %3270 = vst.msk [vmem:[%s5492_s25 + $0xd0] sm:$0xff] %vm2368_vm3, %v3069_v26  ;;  %v2958_v28 = vpop.permute.xlu0 %2957 }
 0x2a1   : > { %3273 = vst.msk [vmem:[%s5492_s25 + $0xf8] sm:$0xff] %vm2368_vm3, %v3072_v41  ;;  %v3039_v32 = vsel %vm1231_vm0, %v2728_v55, %v2958_v28  ;;  %v2964_v54 = vpop.permute.xlu1 %2963  ;;  %v2678_v10 = vrot.slane %v2602_v27, 7  ;;  %v6520_v55 = vld [vmem:[#allocation118_spill] sm:$0xff] }
 0x2a2   : > { %v3071_v47 = vmax.f32 %v3039_v32, 0.0  ;;  %v3042_v51 = vsel %vm1231_vm0, %v2667_v25, %v2964_v54  ;;  %v2733_v28 = vsel %vm1919_vm2, %v6520_v55, %v2677_v9 }
 0x2a3   : > { %v3074_v0 = vmax.f32 %v3042_v51, 0.0  ;;  %v2679_v41 = vsel %vm1919_vm2, %v2677_v9, %v2678_v10  ;;  %v6522_v51 = vld [vmem:[#allocation50_spill] sm:$0xff] }
 0x2a4   : > { %3272 = vst.msk [vmem:[%s5492_s25 + $0xf0] sm:$0xff] %vm2368_vm3, %v3071_v47  ;;  %v2962_v7 = vpop.permute.xlu0 %2961  ;;  %v6523_v62 = vrot.slane %v6522_v51, 7 }
 0x2a5   : > { %3275 = vst.msk [vmem:[%s5492_s25 + $0x118] sm:$0xff] %vm2368_vm3, %v3074_v0  ;;  %v3041_v24 = vsel %vm1231_vm0, %v2729_v33, %v2962_v7  ;;  %v2968_v20 = vpop.permute.xlu1 %2967  ;;  %v6524_v0 = vld [vmem:[#allocation27_spill] sm:$0xff] }
 0x2a6   : > { %v3073_v43 = vmax.f32 %v3041_v24, 0.0  ;;  %v3044_v13 = vsel %vm1231_vm0, %v2670_v48, %v2968_v20  ;;  %v2734_v19 = vsel %vm1919_vm2, %v6524_v0, %v6523_v62  ;;  %v6525_v24 = vld [vmem:[#allocation75_spill] sm:$0xff] }
 0x2a7   : > { %v3076_v29 = vmax.f32 %v3044_v13, 0.0 }
 0x2a8   : > { %3274 = vst.msk [vmem:[%s5492_s25 + $0x110] sm:$0xff] %vm2368_vm3, %v3073_v43  ;;  %v2966_v14 = vpop.permute.xlu0 %2965 }
 0x2a9   : > { %3277 = vst.msk [vmem:[%s5492_s25 + $0x138] sm:$0xff] %vm2368_vm3, %v3076_v29  ;;  %v3043_v17 = vsel %vm1231_vm0, %v2730_v6, %v2966_v14  ;;  %v2972_v39 = vpop.permute.xlu1 %2971  ;;  %v6529_v6 = vrot.slane %v6528_v11, 7  ;;  %v6530_v14 = vld [vmem:[#allocation65_spill] sm:$0xff] }
 0x2aa   : > { %v3075_v15 = vmax.f32 %v3043_v17, 0.0  ;;  %v3046_v18 = vsel %vm1231_vm0, %v2673_v63, %v2972_v39 }
 0x2ab   : > { %v3078_v23 = vmax.f32 %v3046_v18, 0.0  ;;  %v2736_v17 = vsel %vm1919_vm2, %v6530_v14, %v6529_v6 }
 0x2ac   : > { %3276 = vst.msk [vmem:[%s5492_s25 + $0x130] sm:$0xff] %vm2368_vm3, %v3075_v15  ;;  %v2970_v22 = vpop.permute.xlu0 %2969 }
 0x2ad   : > { %3279 = vst.msk [vmem:[%s5492_s25 + $0x158] sm:$0xff] %vm2368_vm3, %v3078_v23  ;;  %v3045_v16 = vsel %vm1231_vm0, %v2731_v44, %v2970_v22  ;;  %v2976_v46 = vpop.permute.xlu1 %2975 }
 0x2ae   : > { %v3077_v21 = vmax.f32 %v3045_v16, 0.0  ;;  %v3048_v60 = vsel %vm1231_vm0, %v2676_v36, %v2976_v46 }
 0x2af   : > { %v3080_v45 = vmax.f32 %v3048_v60, 0.0 }
 0x2b0   : > { %3278 = vst.msk [vmem:[%s5492_s25 + $0x150] sm:$0xff] %vm2368_vm3, %v3077_v21  ;;  %v2974_v26 = vpop.permute.xlu0 %2973 }
 0x2b1   : > { %3281 = vst.msk [vmem:[%s5492_s25 + $0x178] sm:$0xff] %vm2368_vm3, %v3080_v45  ;;  %v3047_v58 = vsel %vm1231_vm0, %v2732_v1, %v2974_v26  ;;  %v2980_v57 = vpop.permute.xlu1 %2979 }
 0x2b2   : > { %v3079_v4 = vmax.f32 %v3047_v58, 0.0  ;;  %v3050_v42 = vsel %vm1231_vm0, %v2679_v41, %v2980_v57 }
 0x2b3   : > { %v3082_v12 = vmax.f32 %v3050_v42, 0.0 }
 0x2b4   : > { %3280 = vst.msk [vmem:[%s5492_s25 + $0x170] sm:$0xff] %vm2368_vm3, %v3079_v4  ;;  %v2978_v37 = vpop.permute.xlu0 %2977 }
 0x2b5   : > { %3283 = vst.msk [vmem:[%s5492_s25 + $0x198] sm:$0xff] %vm2368_vm3, %v3082_v12  ;;  %v3049_v32 = vsel %vm1231_vm0, %v2733_v28, %v2978_v37  ;;  %v2984_v54 = vpop.permute.xlu1 %2983 }
 0x2b6   : > { %v3081_v25 = vmax.f32 %v3049_v32, 0.0  ;;  %v3052_v30 = vsel %vm1231_vm0, %v6521_v38, %v2984_v54 }
 0x2b7   : > { %v3084_v47 = vmax.f32 %v3052_v30, 0.0 }
 0x2b8   : > { %3282 = vst.msk [vmem:[%s5492_s25 + $0x190] sm:$0xff] %vm2368_vm3, %v3081_v25  ;;  %v2982_v50 = vpop.permute.xlu0 %2981 }
 0x2b9   : > { %3285 = vst.msk [vmem:[%s5492_s25 + $0x1b8] sm:$0xff] %vm2368_vm3, %v3084_v47  ;;  %v3051_v49 = vsel %vm1231_vm0, %v2734_v19, %v2982_v50  ;;  %v2988_v33 = vpop.permute.xlu1 %2987 }
 0x2ba   : > { %v3083_v7 = vmax.f32 %v3051_v49, 0.0  ;;  %v3054_v20 = vsel %vm1231_vm0, %v6525_v24, %v2988_v33 }
 0x2bb   : > { %v3086_v48 = vmax.f32 %v3054_v20, 0.0 }
 0x2bc   : > { %3284 = vst.msk [vmem:[%s5492_s25 + $0x1b0] sm:$0xff] %vm2368_vm3, %v3083_v7  ;;  %v2986_v3 = vpop.permute.xlu0 %2985 }
 0x2bd   : > { %3287 = vst.msk [vmem:[%s5492_s25 + $0x1d8] sm:$0xff] %vm2368_vm3, %v3086_v48  ;;  %v3053_v43 = vsel %vm1231_vm0, %v6526_v34, %v2986_v3  ;;  %v2992_v13 = vpop.permute.xlu1 %2991 }
 0x2be   : > { %v3085_v29 = vmax.f32 %v3053_v43, 0.0  ;;  %v3056_v35 = vsel %vm1231_vm0, %v6527_v61, %v2992_v13 }
 0x2bf   : > { %v3088_v31 = vmax.f32 %v3056_v35, 0.0 }
 0x2c0   : > { %3286 = vst.msk [vmem:[%s5492_s25 + $0x1d0] sm:$0xff] %vm2368_vm3, %v3085_v29  ;;  %v2990_v39 = vpop.permute.xlu0 %2989 }
 0x2c1   : > { %3289 = vst.msk [vmem:[%s5492_s25 + $0x1f8] sm:$0xff] %vm2368_vm3, %v3088_v31  ;;  %v3055_v63 = vsel %vm1231_vm0, %v2736_v17, %v2990_v39 }
 0x2c2   : > { %v3087_v40 = vmax.f32 %v3055_v63, 0.0 }
 0x2c4   : > { %3288 = vst.msk [vmem:[%s5492_s25 + $0x1f0] sm:$0xff] %vm2368_vm3, %v3087_v40 }
 0x2c5   : > { %3391 = shalt.err (!%p3388_p6)
}
 0x2c6   : > { %s3392_s15 = scalar_lea.hbm %s5921_s9, 8192  ;;  %s3396_s24 = scalar_lea.hbm %s5981_s5, 16384 }
 0x2c7   : > { %p3393_p7 = scmp.ne.s32.totalorder %s5921_s9, %s3392_s15  ;;  %p3397_p11 = scmp.lt.u32.totalorder %s5921_s9, %s5981_s5 }
 0x2c8   : > { %p3398_p12 = scmp.lt.u32.totalorder %s3396_s24, %s3392_s15  ;;  %p3400_p0 = scmp.lt.u32.totalorder %s3392_s15, %s5921_s9 }
 0x2c9   : > { %p3394_p9 = pnand %p3393_p7, %p3535_p4 }
 0x2ca   : > { %p3399_p13 = por %p3398_p12, %p3397_p11 }
 0x2cb   : > { %p3395_p10 = pneg %p3394_p9 }
 0x2cc   : > { %p3401_p1 = por %p3400_p0, %p3399_p13 }
 0x2ce   : > { %p3402_p2 = pnand %p3401_p1, %p3395_p10 }
 0x2d0   : > { %3405 = shalt.err (!%p3402_p2)
}
 0x2d1   : > { %s3464_s7 = smov 128  }
 0x2d2   : > { %3299 = dma.vmem_to_hbm [thread:$0]  (%p3535_p4), %s5923_s29, 8192, %s5921_s9, %s5929_s21, %s3464_s7, %s3464_s7, %s3462_s14  }
 0x2d3 PF: > { %p3305_p3 = scmp.ge.s32.totalorder %s3456_s23, 2  ;;  %s3154_s8 = sand.u32 1, %s3436_s18  }
 0x2d4   : > { %s3155_s10 = scalar_lea.sflag [#allocation4], %s3154_s8 }
 0x2d5   : > { %p3302_p5 = pnand %p3305_p3, %p3542_p8 }
 0x2d7   : > { %3431 = dma.done.wait (!%p3302_p5), %s3155_s10, 8192  }
 0x2d8   : > { %3433 = vsyncadd (!%p3302_p5), %s3155_s10, 4294959104  ;;  %s18_s23 = sadd.s32 1, %s3456_s23   ;;  %s6531_s18 = smov %s3440_s19 }
 0x2d9   : > { %p15_p6 = scmp.ge.s32.totalorder %s18_s23, 4   ;;  %s6532_s19 = smov %s3444_s20 }
 0x2da   : > { %s6533_s20 = smov %s3548_s6  ;;  %s6534_s21 = smov %s3452_s22 }
 0x2db   : > { %s6535_s22 = smov %s6537_s26  ;;  %17 = sbr.rel (!%p15_p6) target bundleno = 4 (0x4), region = 85 }
 0x2e2   :  { %3160 = vsyncpa [#allocation4], 1 }
 0x2e3   :  { %3162 = vsyncpa [#allocation4 + $0x1], 1 }

</bundles_post_ra>
